<compile_context>
chip_gen: v6e
topology: v6e:2x2x1
jax: 0.10.0
libtpu: 0.0.40
codegen_flags: <defaults>
</compile_context>

<pallas_src>
import functools

import jax
import jax.numpy as jnp
from jax.experimental import pallas as pl
from jax.experimental.pallas import tpu as pltpu

_OUT_LANES = 128  # lane-dense width of the output slab and of each bias row


def _disc_kernel(x_ref, adjI_ref, wx_ref, w2_ref, wijh_ref, wd_ref, bias_ref,
                 out_ref, *, d1, d2, A, l2):
    """One grid step == one block of BT batch elements (everything in VMEM)."""
    f32 = jnp.float32
    mm = x_ref.dtype                          # MXU operand dtype (bf16)

    BT, N, F = x_ref.shape
    A2 = 2 * A

    # Bias slab: one f32 row per bias, every row starts at lane 0 (tile-aligned).
    b_all = bias_ref[...]                      # (4, 128) f32
    b1 = b_all[0:1, :d1]
    b2 = b_all[1:2, :d2]
    bij = b_all[2:3, :A2]                      # [bi | bj]
    bd = b_all[3:4, :l2 + 1]                   # [bd1@Wd2+bd2 | (...)@Wo + bo]

    x_flat = x_ref[...].reshape(BT * N, F)     # (BT*N, F)  bf16
    adjI = adjI_ref[...]                       # (BT, N, N) f32, adj + I

    # ---- single x-side matmul: x @ [Wi_x | Wj_x | W1] ----------------------
    xw_all = jnp.dot(x_flat, wx_ref[...], preferred_element_type=f32)   # (BT*N, A2+d1)
    x_pre = xw_all[:, :A2]                     # x contribution to GraphAggr gates
    xw1 = xw_all[:, A2:A2 + d1] + b1           # (BT*N, d1)

    def spmm(hw_flat, d):
        """(adj + I) @ hw on the VPU: broadcast-MAC unrolled over the (tiny) node
        axis; f32 accumulator.  hw_flat: (BT*N, d) f32 -> (BT, N, d) f32."""
        hw = hw_flat.reshape(BT, N, d)
        acc = jnp.zeros((BT, N, d), f32)
        for j in range(N):                     # N is a trace-time constant
            acc = acc + adjI[:, :, j:j + 1] * hw[:, j:j + 1, :]
        return acc

    # ---- GraphConv_ layer 1: h1 = tanh((adj + I) @ (x W1 + b1)) ------------
    h1 = jnp.tanh(spmm(xw1, d1))                                        # (BT, N, d1)

    # ---- GraphConv_ layer 2 -------------------------------------------------
    hw2 = jnp.dot(h1.reshape(BT * N, d1).astype(mm), w2_ref[...],
                  preferred_element_type=f32) + b2
    h2 = jnp.tanh(spmm(hw2, d2))                                        # (BT, N, d2)

    # ---- GraphAggr over cat([h2, x], -1): Wi|Wj fused, x part precomputed ---
    pre = (jnp.dot(h2.reshape(BT * N, d2).astype(mm), wijh_ref[...],
                   preferred_element_type=f32) + x_pre + bij)           # (BT*N, 2A)
    gate = jax.nn.sigmoid(pre[:, :A]) * jnp.tanh(pre[:, A:])            # (BT*N, A)
    agg = jnp.tanh(jnp.sum(gate.reshape(BT, N, A), axis=1))             # (BT, A)

    # ---- multidense + output head folded into one matmul --------------------
    hf = jnp.dot(agg.astype(mm), wd_ref[...], preferred_element_type=f32) + bd
    h = hf[:, :l2]                                                      # hidden
    out = jax.nn.sigmoid(hf[:, l2:l2 + 1])                              # (BT, 1)

    # ---- single lane-dense unmasked store: [hidden | output | zero pad] -----
    pad = jnp.zeros((BT, _OUT_LANES - l2 - 1), f32)
    out_ref[...] = jnp.concatenate([h, out, pad], axis=-1)


def _round_up(v, m):
    return ((v + m - 1) // m) * m


def _default_num_blocks():
    """v7x has 2 TensorCores/chip -> grid should be a multiple of 2; on v5e/v6e
    (one TC) extra grid steps are pure serial overhead -> one step."""
    try:
        kind = jax.devices()[0].device_kind.lower()
    except Exception:
        return 1
    return 2 if ("v7" in kind or "7x" in kind) else 1


def discriminator_forward(x, adj, params, *, num_blocks=None,
                          matmul_dtype=jnp.bfloat16):
    """x: (B, N, F) f32, adj: (B, N, N) f32. Returns (output (B, 1), hidden (B, L2))."""
    B, N, F = x.shape
    d1 = params["w1"].shape[1]
    d2 = params["w2"].shape[1]
    A = params["wi"].shape[1]
    l2 = params["wd2"].shape[1]
    f32 = jnp.float32
    md = matmul_dtype

    assert 2 * A <= _OUT_LANES and l2 + 1 <= _OUT_LANES
    assert d1 <= _OUT_LANES and d2 <= _OUT_LANES

    if num_blocks is None:
        num_blocks = _default_num_blocks()
    num_blocks = max(1, min(int(num_blocks), B))

    # Large batch block: sublane-multiple BT, as few grid steps as possible.
    BT = _round_up(pl.cdiv(B, num_blocks), 8)
    nblk = pl.cdiv(B, BT)
    B_pad = nblk * BT

    # Fold the "+ (hW + b)" residual into the adjacency; keep it f32 (VPU path).
    adjI = adj.astype(f32) + jnp.eye(N, dtype=f32)

    if B_pad != B:
        pad_rows = B_pad - B
        x = jnp.pad(x, ((0, pad_rows), (0, 0), (0, 0)))
        adjI = jnp.pad(adjI, ((0, pad_rows), (0, 0), (0, 0)))  # padded rows -> zeros

    # ---- weight packing (all folds done in f32, cast to bf16 last) ----------
    wi = params["wi"].astype(f32)
    wj = params["wj"].astype(f32)
    # x-side fused weight: [Wi_x | Wj_x | W1]  (gate part lane-0 aligned)
    wx = jnp.concatenate([wi[d2:], wj[d2:], params["w1"].astype(f32)], axis=1)
    # h2-side fused GraphAggr weight: [Wi_h | Wj_h]
    wijh = jnp.concatenate([wi[:d2], wj[:d2]], axis=1)

    # multidense (Linear -> Dropout(0) -> Linear -> Dropout(0)) has no activation
    # between the Linears, so fold them, then fold the output head on top:
    wd12 = params["wd1"].astype(f32) @ params["wd2"].astype(f32)          # (A, l2)
    bd12 = params["bd1"].astype(f32) @ params["wd2"].astype(f32) + params["bd2"].astype(f32)
    wo = params["wo"].astype(f32)
    bo = params["bo"].astype(f32)
    wd = jnp.concatenate([wd12, wd12 @ wo], axis=1)                       # (A, l2+1)
    bd = jnp.concatenate([bd12, bd12 @ wo + bo], axis=1)                  # (1, l2+1)

    # f32 bias slab: one lane-padded row per bias (tile-aligned slices in-kernel).
    def lane_pad(b):
        return jnp.pad(b.astype(f32), ((0, 0), (0, _OUT_LANES - b.shape[1])))

    bij = jnp.concatenate([params["bi"], params["bj"]], axis=1)
    bias_all = jnp.concatenate(
        [lane_pad(params["b1"]), lane_pad(params["b2"]),
         lane_pad(bij), lane_pad(bd)], axis=0)                            # (4, 128)

    x_mm = x.astype(md)
    wx_mm = wx.astype(md)
    w2_mm = params["w2"].astype(md)
    wijh_mm = wijh.astype(md)
    wd_mm = wd.astype(md)

    def full_block(arr):
        # weights / bias slab: one full-array block, identical for every grid step
        return pl.BlockSpec(arr.shape, lambda b, _nd=arr.ndim: (0,) * _nd)

    kernel = functools.partial(_disc_kernel, d1=d1, d2=d2, A=A, l2=l2)

    slab = pl.pallas_call(
        kernel,
        grid=(nblk,),
        in_specs=[
            pl.BlockSpec((BT, N, F), lambda b: (b, 0, 0)),   # x        (bf16)
            pl.BlockSpec((BT, N, N), lambda b: (b, 0, 0)),   # adj + I  (f32)
            full_block(wx_mm), full_block(w2_mm), full_block(wijh_mm),
            full_block(wd_mm), full_block(bias_all),
        ],
        out_specs=pl.BlockSpec((BT, _OUT_LANES), lambda b: (b, 0)),
        out_shape=jax.ShapeDtypeStruct((B_pad, _OUT_LANES), jnp.float32),
        compiler_params=pltpu.CompilerParams(
            dimension_semantics=("parallel",)),
    )(x_mm, adjI, wx_mm, w2_mm, wijh_mm, wd_mm, bias_all)

    hidden = slab[:B, :l2]
    output = slab[:B, l2:l2 + 1]
    return output, hidden


def reference_forward(x, adj, p):
    """Pure-JAX f32 reference of the same forward pass (correctness check)."""
    xw1 = x @ p["w1"] + p["b1"]
    h1 = jnp.tanh(jnp.einsum("bij,bjf->bif", adj, xw1) + xw1)
    hw2 = h1 @ p["w2"] + p["b2"]
    h2 = jnp.tanh(jnp.einsum("bij,bjf->bif", adj, hw2) + hw2)
    cat = jnp.concatenate([h2, x], axis=-1)
    i = jax.nn.sigmoid(cat @ p["wi"] + p["bi"])
    j = jnp.tanh(cat @ p["wj"] + p["bj"])
    agg = jnp.tanh(jnp.sum(i * j, axis=1))
    h = agg @ p["wd1"] + p["bd1"]
    h = h @ p["wd2"] + p["bd2"]
    out = jax.nn.sigmoid(h @ p["wo"] + p["bo"])
    return out, h


def init_params(key, F, gc_out, aggr_dim, linear_dim):
    d1, d2 = gc_out
    l1, l2 = linear_dim
    shapes = {
        "w1": (F, d1), "b1": (1, d1),
        "w2": (d1, d2), "b2": (1, d2),
        "wi": (d2 + F, aggr_dim), "bi": (1, aggr_dim),
        "wj": (d2 + F, aggr_dim), "bj": (1, aggr_dim),
        "wd1": (aggr_dim, l1), "bd1": (1, l1),
        "wd2": (l1, l2), "bd2": (1, l2),
        "wo": (l2, 1), "bo": (1, 1),
    }
    params = {}
    keys = jax.random.split(key, len(shapes))
    for k_rng, (name, shp) in zip(keys, sorted(shapes.items())):
        fan_in = shp[0]
        params[name] = (jax.random.normal(k_rng, shp, jnp.float32)
                        * (1.0 / jnp.sqrt(jnp.float32(fan_in))))
    return params


if __name__ == "__main__":
    # Small shapes: batch=12, nodes=8, node-features=8, conv_dim=[8,[16,8]],
    # aggr_dim=32, linear_dim=[32,16].
    B, N, F = 12, 8, 8
    GC_OUT = [16, 8]
    AGGR_DIM = 32
    LINEAR_DIM = [32, 16]

    key = jax.random.PRNGKey(0)
    kx, kadj, kp = jax.random.split(key, 3)

    x = jax.random.normal(kx, (B, N, F), jnp.float32)
    a = (jax.random.uniform(kadj, (B, N, N)) > 0.5).astype(jnp.float32)
    adj = jnp.maximum(a, jnp.transpose(a, (0, 2, 1)))   # symmetric 0/1 adjacency

    params = init_params(kp, F, GC_OUT, AGGR_DIM, LINEAR_DIM)

    out, hidden = discriminator_forward(x, adj, params)
    out = jax.block_until_ready(out)
    hidden = jax.block_until_ready(hidden)

    ref_out, ref_hidden = reference_forward(x, adj, params)

    assert out.shape == (B, 1) and hidden.shape == (B, LINEAR_DIM[-1])
    # bf16 MXU operands -> relaxed tolerance vs. the f32 reference.
    assert jnp.allclose(out, ref_out, atol=5e-2, rtol=5e-2), \
        float(jnp.max(jnp.abs(out - ref_out)))
    assert jnp.allclose(hidden, ref_hidden, atol=5e-2, rtol=5e-2), \
        float(jnp.max(jnp.abs(hidden - ref_hidden)))

    print("KERNEL_OK")
</pallas_src>

<mosaic_0001>
module attributes {stable_mosaic.version = 11 : i64} {
  func.func @_disc_kernel(%arg0: i32, %arg1: memref<16x8x8xbf16, #tpu.memory_space<vmem>>, %arg2: memref<16x8x8xf32, #tpu.memory_space<vmem>>, %arg3: memref<8x80xbf16, #tpu.memory_space<vmem>>, %arg4: memref<16x8xbf16, #tpu.memory_space<vmem>>, %arg5: memref<8x64xbf16, #tpu.memory_space<vmem>>, %arg6: memref<32x17xbf16, #tpu.memory_space<vmem>>, %arg7: memref<4x128xf32, #tpu.memory_space<vmem>>, %arg8: memref<16x128xf32, #tpu.memory_space<vmem>>) attributes {dimension_semantics = [#tpu.dimension_semantics<parallel>], iteration_bounds = array<i64: 1>, scalar_prefetch = 0 : i64, scratch_operands = 0 : i64, tpu.core_type = #tpu.core_type<tc>, window_params = [{transform_indices = @transform_0, window_bounds = array<i64: 16, 8, 8>}, {transform_indices = @transform_1, window_bounds = array<i64: 16, 8, 8>}, {pipeline_mode = #tpu.pipeline_mode<synchronous>, transform_indices = @transform_2, window_bounds = array<i64: 8, 80>}, {pipeline_mode = #tpu.pipeline_mode<synchronous>, transform_indices = @transform_3, window_bounds = array<i64: 16, 8>}, {pipeline_mode = #tpu.pipeline_mode<synchronous>, transform_indices = @transform_4, window_bounds = array<i64: 8, 64>}, {pipeline_mode = #tpu.pipeline_mode<synchronous>, transform_indices = @transform_5, window_bounds = array<i64: 32, 17>}, {pipeline_mode = #tpu.pipeline_mode<synchronous>, transform_indices = @transform_6, window_bounds = array<i64: 4, 128>}, {transform_indices = @transform_7, window_bounds = array<i64: 16, 128>}]} {
    %c0 = arith.constant 0 : index
    %c0_0 = arith.constant 0 : index
    %0 = vector.load %arg7[%c0, %c0_0] : memref<4x128xf32, #tpu.memory_space<vmem>>, vector<4x128xf32>
    %1 = vector.extract_strided_slice %0 {offsets = [0, 0], sizes = [1, 16], strides = [1, 1]} : vector<4x128xf32> to vector<1x16xf32>
    %2 = vector.extract_strided_slice %0 {offsets = [1, 0], sizes = [1, 8], strides = [1, 1]} : vector<4x128xf32> to vector<1x8xf32>
    %3 = vector.extract_strided_slice %0 {offsets = [2, 0], sizes = [1, 64], strides = [1, 1]} : vector<4x128xf32> to vector<1x64xf32>
    %4 = vector.extract_strided_slice %0 {offsets = [3, 0], sizes = [1, 17], strides = [1, 1]} : vector<4x128xf32> to vector<1x17xf32>
    %c0_1 = arith.constant 0 : index
    %c0_2 = arith.constant 0 : index
    %c0_3 = arith.constant 0 : index
    %5 = vector.load %arg1[%c0_1, %c0_2, %c0_3] : memref<16x8x8xbf16, #tpu.memory_space<vmem>>, vector<16x8x8xbf16>
    %6 = vector.shape_cast %5 : vector<16x8x8xbf16> to vector<128x8xbf16>
    %c0_4 = arith.constant 0 : index
    %c0_5 = arith.constant 0 : index
    %c0_6 = arith.constant 0 : index
    %7 = vector.load %arg2[%c0_4, %c0_5, %c0_6] : memref<16x8x8xf32, #tpu.memory_space<vmem>>, vector<16x8x8xf32>
    %c0_7 = arith.constant 0 : index
    %c0_8 = arith.constant 0 : index
    %8 = vector.load %arg3[%c0_7, %c0_8] : memref<8x80xbf16, #tpu.memory_space<vmem>>, vector<8x80xbf16>
    %cst = arith.constant dense<0.000000e+00> : vector<128x80xf32>
    %9 = tpu.matmul %6, %8, %cst {dimension_numbers = #tpu.dot_dimension_numbers<[1], [0], [0], [1], [0, 0, 1, 1], [], []>} : vector<128x8xbf16>, vector<8x80xbf16>, vector<128x80xf32> -> vector<128x80xf32>
    %10 = vector.extract_strided_slice %9 {offsets = [0, 0], sizes = [128, 64], strides = [1, 1]} : vector<128x80xf32> to vector<128x64xf32>
    %11 = vector.extract_strided_slice %9 {offsets = [0, 64], sizes = [128, 16], strides = [1, 1]} : vector<128x80xf32> to vector<128x16xf32>
    %12 = vector.broadcast %1 : vector<1x16xf32> to vector<128x16xf32>
    %13 = arith.addf %11, %12 : vector<128x16xf32>
    %14 = vector.shape_cast %13 : vector<128x16xf32> to vector<16x8x16xf32>
    %cst_9 = arith.constant 0.000000e+00 : f32
    %15 = vector.broadcast %cst_9 : f32 to vector<16x8x16xf32>
    %16 = vector.extract_strided_slice %7 {offsets = [0, 0, 0], sizes = [16, 8, 1], strides = [1, 1, 1]} : vector<16x8x8xf32> to vector<16x8x1xf32>
    %17 = vector.extract_strided_slice %14 {offsets = [0, 0, 0], sizes = [16, 1, 16], strides = [1, 1, 1]} : vector<16x8x16xf32> to vector<16x1x16xf32>
    %18 = vector.broadcast %16 : vector<16x8x1xf32> to vector<16x8x16xf32>
    %19 = vector.broadcast %17 : vector<16x1x16xf32> to vector<16x8x16xf32>
    %20 = arith.mulf %18, %19 : vector<16x8x16xf32>
    %21 = arith.addf %15, %20 : vector<16x8x16xf32>
    %22 = vector.extract_strided_slice %7 {offsets = [0, 0, 1], sizes = [16, 8, 1], strides = [1, 1, 1]} : vector<16x8x8xf32> to vector<16x8x1xf32>
    %23 = vector.extract_strided_slice %14 {offsets = [0, 1, 0], sizes = [16, 1, 16], strides = [1, 1, 1]} : vector<16x8x16xf32> to vector<16x1x16xf32>
    %24 = vector.broadcast %22 : vector<16x8x1xf32> to vector<16x8x16xf32>
    %25 = vector.broadcast %23 : vector<16x1x16xf32> to vector<16x8x16xf32>
    %26 = arith.mulf %24, %25 : vector<16x8x16xf32>
    %27 = arith.addf %21, %26 : vector<16x8x16xf32>
    %28 = vector.extract_strided_slice %7 {offsets = [0, 0, 2], sizes = [16, 8, 1], strides = [1, 1, 1]} : vector<16x8x8xf32> to vector<16x8x1xf32>
    %29 = vector.extract_strided_slice %14 {offsets = [0, 2, 0], sizes = [16, 1, 16], strides = [1, 1, 1]} : vector<16x8x16xf32> to vector<16x1x16xf32>
    %30 = vector.broadcast %28 : vector<16x8x1xf32> to vector<16x8x16xf32>
    %31 = vector.broadcast %29 : vector<16x1x16xf32> to vector<16x8x16xf32>
    %32 = arith.mulf %30, %31 : vector<16x8x16xf32>
    %33 = arith.addf %27, %32 : vector<16x8x16xf32>
    %34 = vector.extract_strided_slice %7 {offsets = [0, 0, 3], sizes = [16, 8, 1], strides = [1, 1, 1]} : vector<16x8x8xf32> to vector<16x8x1xf32>
    %35 = vector.extract_strided_slice %14 {offsets = [0, 3, 0], sizes = [16, 1, 16], strides = [1, 1, 1]} : vector<16x8x16xf32> to vector<16x1x16xf32>
    %36 = vector.broadcast %34 : vector<16x8x1xf32> to vector<16x8x16xf32>
    %37 = vector.broadcast %35 : vector<16x1x16xf32> to vector<16x8x16xf32>
    %38 = arith.mulf %36, %37 : vector<16x8x16xf32>
    %39 = arith.addf %33, %38 : vector<16x8x16xf32>
    %40 = vector.extract_strided_slice %7 {offsets = [0, 0, 4], sizes = [16, 8, 1], strides = [1, 1, 1]} : vector<16x8x8xf32> to vector<16x8x1xf32>
    %41 = vector.extract_strided_slice %14 {offsets = [0, 4, 0], sizes = [16, 1, 16], strides = [1, 1, 1]} : vector<16x8x16xf32> to vector<16x1x16xf32>
    %42 = vector.broadcast %40 : vector<16x8x1xf32> to vector<16x8x16xf32>
    %43 = vector.broadcast %41 : vector<16x1x16xf32> to vector<16x8x16xf32>
    %44 = arith.mulf %42, %43 : vector<16x8x16xf32>
    %45 = arith.addf %39, %44 : vector<16x8x16xf32>
    %46 = vector.extract_strided_slice %7 {offsets = [0, 0, 5], sizes = [16, 8, 1], strides = [1, 1, 1]} : vector<16x8x8xf32> to vector<16x8x1xf32>
    %47 = vector.extract_strided_slice %14 {offsets = [0, 5, 0], sizes = [16, 1, 16], strides = [1, 1, 1]} : vector<16x8x16xf32> to vector<16x1x16xf32>
    %48 = vector.broadcast %46 : vector<16x8x1xf32> to vector<16x8x16xf32>
    %49 = vector.broadcast %47 : vector<16x1x16xf32> to vector<16x8x16xf32>
    %50 = arith.mulf %48, %49 : vector<16x8x16xf32>
    %51 = arith.addf %45, %50 : vector<16x8x16xf32>
    %52 = vector.extract_strided_slice %7 {offsets = [0, 0, 6], sizes = [16, 8, 1], strides = [1, 1, 1]} : vector<16x8x8xf32> to vector<16x8x1xf32>
    %53 = vector.extract_strided_slice %14 {offsets = [0, 6, 0], sizes = [16, 1, 16], strides = [1, 1, 1]} : vector<16x8x16xf32> to vector<16x1x16xf32>
    %54 = vector.broadcast %52 : vector<16x8x1xf32> to vector<16x8x16xf32>
    %55 = vector.broadcast %53 : vector<16x1x16xf32> to vector<16x8x16xf32>
    %56 = arith.mulf %54, %55 : vector<16x8x16xf32>
    %57 = arith.addf %51, %56 : vector<16x8x16xf32>
    %58 = vector.extract_strided_slice %7 {offsets = [0, 0, 7], sizes = [16, 8, 1], strides = [1, 1, 1]} : vector<16x8x8xf32> to vector<16x8x1xf32>
    %59 = vector.extract_strided_slice %14 {offsets = [0, 7, 0], sizes = [16, 1, 16], strides = [1, 1, 1]} : vector<16x8x16xf32> to vector<16x1x16xf32>
    %60 = vector.broadcast %58 : vector<16x8x1xf32> to vector<16x8x16xf32>
    %61 = vector.broadcast %59 : vector<16x1x16xf32> to vector<16x8x16xf32>
    %62 = arith.mulf %60, %61 : vector<16x8x16xf32>
    %63 = arith.addf %57, %62 : vector<16x8x16xf32>
    %64 = math.tanh %63 : vector<16x8x16xf32>
    %65 = vector.shape_cast %64 : vector<16x8x16xf32> to vector<128x16xf32>
    %66 = arith.truncf %65 : vector<128x16xf32> to vector<128x16xbf16>
    %c0_10 = arith.constant 0 : index
    %c0_11 = arith.constant 0 : index
    %67 = vector.load %arg4[%c0_10, %c0_11] : memref<16x8xbf16, #tpu.memory_space<vmem>>, vector<16x8xbf16>
    %cst_12 = arith.constant dense<0.000000e+00> : vector<128x8xf32>
    %68 = tpu.matmul %66, %67, %cst_12 {dimension_numbers = #tpu.dot_dimension_numbers<[1], [0], [0], [1], [0, 0, 1, 1], [], []>} : vector<128x16xbf16>, vector<16x8xbf16>, vector<128x8xf32> -> vector<128x8xf32>
    %69 = vector.broadcast %2 : vector<1x8xf32> to vector<128x8xf32>
    %70 = arith.addf %68, %69 : vector<128x8xf32>
    %71 = vector.shape_cast %70 : vector<128x8xf32> to vector<16x8x8xf32>
    %cst_13 = arith.constant 0.000000e+00 : f32
    %72 = vector.broadcast %cst_13 : f32 to vector<16x8x8xf32>
    %73 = vector.extract_strided_slice %7 {offsets = [0, 0, 0], sizes = [16, 8, 1], strides = [1, 1, 1]} : vector<16x8x8xf32> to vector<16x8x1xf32>
    %74 = vector.extract_strided_slice %71 {offsets = [0, 0, 0], sizes = [16, 1, 8], strides = [1, 1, 1]} : vector<16x8x8xf32> to vector<16x1x8xf32>
    %75 = vector.broadcast %73 : vector<16x8x1xf32> to vector<16x8x8xf32>
    %76 = vector.broadcast %74 : vector<16x1x8xf32> to vector<16x8x8xf32>
    %77 = arith.mulf %75, %76 : vector<16x8x8xf32>
    %78 = arith.addf %72, %77 : vector<16x8x8xf32>
    %79 = vector.extract_strided_slice %7 {offsets = [0, 0, 1], sizes = [16, 8, 1], strides = [1, 1, 1]} : vector<16x8x8xf32> to vector<16x8x1xf32>
    %80 = vector.extract_strided_slice %71 {offsets = [0, 1, 0], sizes = [16, 1, 8], strides = [1, 1, 1]} : vector<16x8x8xf32> to vector<16x1x8xf32>
    %81 = vector.broadcast %79 : vector<16x8x1xf32> to vector<16x8x8xf32>
    %82 = vector.broadcast %80 : vector<16x1x8xf32> to vector<16x8x8xf32>
    %83 = arith.mulf %81, %82 : vector<16x8x8xf32>
    %84 = arith.addf %78, %83 : vector<16x8x8xf32>
    %85 = vector.extract_strided_slice %7 {offsets = [0, 0, 2], sizes = [16, 8, 1], strides = [1, 1, 1]} : vector<16x8x8xf32> to vector<16x8x1xf32>
    %86 = vector.extract_strided_slice %71 {offsets = [0, 2, 0], sizes = [16, 1, 8], strides = [1, 1, 1]} : vector<16x8x8xf32> to vector<16x1x8xf32>
    %87 = vector.broadcast %85 : vector<16x8x1xf32> to vector<16x8x8xf32>
    %88 = vector.broadcast %86 : vector<16x1x8xf32> to vector<16x8x8xf32>
    %89 = arith.mulf %87, %88 : vector<16x8x8xf32>
    %90 = arith.addf %84, %89 : vector<16x8x8xf32>
    %91 = vector.extract_strided_slice %7 {offsets = [0, 0, 3], sizes = [16, 8, 1], strides = [1, 1, 1]} : vector<16x8x8xf32> to vector<16x8x1xf32>
    %92 = vector.extract_strided_slice %71 {offsets = [0, 3, 0], sizes = [16, 1, 8], strides = [1, 1, 1]} : vector<16x8x8xf32> to vector<16x1x8xf32>
    %93 = vector.broadcast %91 : vector<16x8x1xf32> to vector<16x8x8xf32>
    %94 = vector.broadcast %92 : vector<16x1x8xf32> to vector<16x8x8xf32>
    %95 = arith.mulf %93, %94 : vector<16x8x8xf32>
    %96 = arith.addf %90, %95 : vector<16x8x8xf32>
    %97 = vector.extract_strided_slice %7 {offsets = [0, 0, 4], sizes = [16, 8, 1], strides = [1, 1, 1]} : vector<16x8x8xf32> to vector<16x8x1xf32>
    %98 = vector.extract_strided_slice %71 {offsets = [0, 4, 0], sizes = [16, 1, 8], strides = [1, 1, 1]} : vector<16x8x8xf32> to vector<16x1x8xf32>
    %99 = vector.broadcast %97 : vector<16x8x1xf32> to vector<16x8x8xf32>
    %100 = vector.broadcast %98 : vector<16x1x8xf32> to vector<16x8x8xf32>
    %101 = arith.mulf %99, %100 : vector<16x8x8xf32>
    %102 = arith.addf %96, %101 : vector<16x8x8xf32>
    %103 = vector.extract_strided_slice %7 {offsets = [0, 0, 5], sizes = [16, 8, 1], strides = [1, 1, 1]} : vector<16x8x8xf32> to vector<16x8x1xf32>
    %104 = vector.extract_strided_slice %71 {offsets = [0, 5, 0], sizes = [16, 1, 8], strides = [1, 1, 1]} : vector<16x8x8xf32> to vector<16x1x8xf32>
    %105 = vector.broadcast %103 : vector<16x8x1xf32> to vector<16x8x8xf32>
    %106 = vector.broadcast %104 : vector<16x1x8xf32> to vector<16x8x8xf32>
    %107 = arith.mulf %105, %106 : vector<16x8x8xf32>
    %108 = arith.addf %102, %107 : vector<16x8x8xf32>
    %109 = vector.extract_strided_slice %7 {offsets = [0, 0, 6], sizes = [16, 8, 1], strides = [1, 1, 1]} : vector<16x8x8xf32> to vector<16x8x1xf32>
    %110 = vector.extract_strided_slice %71 {offsets = [0, 6, 0], sizes = [16, 1, 8], strides = [1, 1, 1]} : vector<16x8x8xf32> to vector<16x1x8xf32>
    %111 = vector.broadcast %109 : vector<16x8x1xf32> to vector<16x8x8xf32>
    %112 = vector.broadcast %110 : vector<16x1x8xf32> to vector<16x8x8xf32>
    %113 = arith.mulf %111, %112 : vector<16x8x8xf32>
    %114 = arith.addf %108, %113 : vector<16x8x8xf32>
    %115 = vector.extract_strided_slice %7 {offsets = [0, 0, 7], sizes = [16, 8, 1], strides = [1, 1, 1]} : vector<16x8x8xf32> to vector<16x8x1xf32>
    %116 = vector.extract_strided_slice %71 {offsets = [0, 7, 0], sizes = [16, 1, 8], strides = [1, 1, 1]} : vector<16x8x8xf32> to vector<16x1x8xf32>
    %117 = vector.broadcast %115 : vector<16x8x1xf32> to vector<16x8x8xf32>
    %118 = vector.broadcast %116 : vector<16x1x8xf32> to vector<16x8x8xf32>
    %119 = arith.mulf %117, %118 : vector<16x8x8xf32>
    %120 = arith.addf %114, %119 : vector<16x8x8xf32>
    %121 = math.tanh %120 : vector<16x8x8xf32>
    %122 = vector.shape_cast %121 : vector<16x8x8xf32> to vector<128x8xf32>
    %123 = arith.truncf %122 : vector<128x8xf32> to vector<128x8xbf16>
    %c0_14 = arith.constant 0 : index
    %c0_15 = arith.constant 0 : index
    %124 = vector.load %arg5[%c0_14, %c0_15] : memref<8x64xbf16, #tpu.memory_space<vmem>>, vector<8x64xbf16>
    %cst_16 = arith.constant dense<0.000000e+00> : vector<128x64xf32>
    %125 = tpu.matmul %123, %124, %cst_16 {dimension_numbers = #tpu.dot_dimension_numbers<[1], [0], [0], [1], [0, 0, 1, 1], [], []>} : vector<128x8xbf16>, vector<8x64xbf16>, vector<128x64xf32> -> vector<128x64xf32>
    %126 = arith.addf %125, %10 : vector<128x64xf32>
    %127 = vector.broadcast %3 : vector<1x64xf32> to vector<128x64xf32>
    %128 = arith.addf %126, %127 : vector<128x64xf32>
    %129 = vector.extract_strided_slice %128 {offsets = [0, 0], sizes = [128, 32], strides = [1, 1]} : vector<128x64xf32> to vector<128x32xf32>
    %130 = arith.negf %129 : vector<128x32xf32>
    %131 = math.exp %130 : vector<128x32xf32>
    %cst_17 = arith.constant 1.000000e+00 : f32
    %132 = vector.broadcast %cst_17 : f32 to vector<128x32xf32>
    %133 = arith.addf %132, %131 : vector<128x32xf32>
    %134 = arith.divf %132, %133 : vector<128x32xf32>
    %135 = vector.extract_strided_slice %128 {offsets = [0, 32], sizes = [128, 32], strides = [1, 1]} : vector<128x64xf32> to vector<128x32xf32>
    %136 = math.tanh %135 : vector<128x32xf32>
    %137 = arith.mulf %134, %136 : vector<128x32xf32>
    %138 = vector.shape_cast %137 : vector<128x32xf32> to vector<16x8x32xf32>
    %cst_18 = arith.constant dense<0.000000e+00> : vector<16x32xf32>
    %139 = vector.multi_reduction <add>, %138, %cst_18 [1] : vector<16x8x32xf32> to vector<16x32xf32>
    %140 = math.tanh %139 : vector<16x32xf32>
    %141 = arith.truncf %140 : vector<16x32xf32> to vector<16x32xbf16>
    %c0_19 = arith.constant 0 : index
    %c0_20 = arith.constant 0 : index
    %142 = vector.load %arg6[%c0_19, %c0_20] : memref<32x17xbf16, #tpu.memory_space<vmem>>, vector<32x17xbf16>
    %cst_21 = arith.constant dense<0.000000e+00> : vector<16x17xf32>
    %143 = tpu.matmul %141, %142, %cst_21 {dimension_numbers = #tpu.dot_dimension_numbers<[1], [0], [0], [1], [0, 0, 1, 1], [], []>} : vector<16x32xbf16>, vector<32x17xbf16>, vector<16x17xf32> -> vector<16x17xf32>
    %144 = vector.broadcast %4 : vector<1x17xf32> to vector<16x17xf32>
    %145 = arith.addf %143, %144 : vector<16x17xf32>
    %146 = vector.extract_strided_slice %145 {offsets = [0, 0], sizes = [16, 16], strides = [1, 1]} : vector<16x17xf32> to vector<16x16xf32>
    %147 = vector.extract_strided_slice %145 {offsets = [0, 16], sizes = [16, 1], strides = [1, 1]} : vector<16x17xf32> to vector<16x1xf32>
    %148 = arith.negf %147 : vector<16x1xf32>
    %149 = math.exp %148 : vector<16x1xf32>
    %cst_22 = arith.constant 1.000000e+00 : f32
    %150 = vector.broadcast %cst_22 : f32 to vector<16x1xf32>
    %151 = arith.addf %150, %149 : vector<16x1xf32>
    %152 = arith.divf %150, %151 : vector<16x1xf32>
    %cst_23 = arith.constant 0.000000e+00 : f32
    %153 = vector.broadcast %cst_23 : f32 to vector<16x111xf32>
    %154 = tpu.concatenate %146, %152, %153 in 1 : vector<16x16xf32>, vector<16x1xf32>, vector<16x111xf32> -> vector<16x128xf32>
    %c0_24 = arith.constant 0 : index
    %c0_25 = arith.constant 0 : index
    %155 = vector.load %arg8[%c0_24, %c0_25] : memref<16x128xf32, #tpu.memory_space<vmem>>, vector<16x128xf32>
    tpu.vector_store %arg8[%c0_24, %c0_25], %154 {strides = array<i32>} : memref<16x128xf32, #tpu.memory_space<vmem>>, vector<16x128xf32>,
    return
  }
  func.func @transform_0(%arg0: i32) -> (i32, i32, i32) {
    %c0_i32 = arith.constant 0 : i32
    %c0_i32_0 = arith.constant 0 : i32
    %c0_i32_1 = arith.constant 0 : i32
    return %arg0, %c0_i32, %c0_i32_0 : i32, i32, i32
  }
  func.func @transform_1(%arg0: i32) -> (i32, i32, i32) {
    %c0_i32 = arith.constant 0 : i32
    %c0_i32_0 = arith.constant 0 : i32
    %c0_i32_1 = arith.constant 0 : i32
    return %arg0, %c0_i32, %c0_i32_0 : i32, i32, i32
  }
  func.func @transform_2(%arg0: i32) -> (i32, i32) {
    %c0_i32 = arith.constant 0 : i32
    %c0_i32_0 = arith.constant 0 : i32
    %c0_i32_1 = arith.constant 0 : i32
    return %c0_i32, %c0_i32_0 : i32, i32
  }
  func.func @transform_3(%arg0: i32) -> (i32, i32) {
    %c0_i32 = arith.constant 0 : i32
    %c0_i32_0 = arith.constant 0 : i32
    %c0_i32_1 = arith.constant 0 : i32
    return %c0_i32, %c0_i32_0 : i32, i32
  }
  func.func @transform_4(%arg0: i32) -> (i32, i32) {
    %c0_i32 = arith.constant 0 : i32
    %c0_i32_0 = arith.constant 0 : i32
    %c0_i32_1 = arith.constant 0 : i32
    return %c0_i32, %c0_i32_0 : i32, i32
  }
  func.func @transform_5(%arg0: i32) -> (i32, i32) {
    %c0_i32 = arith.constant 0 : i32
    %c0_i32_0 = arith.constant 0 : i32
    %c0_i32_1 = arith.constant 0 : i32
    return %c0_i32, %c0_i32_0 : i32, i32
  }
  func.func @transform_6(%arg0: i32) -> (i32, i32) {
    %c0_i32 = arith.constant 0 : i32
    %c0_i32_0 = arith.constant 0 : i32
    %c0_i32_1 = arith.constant 0 : i32
    return %c0_i32, %c0_i32_0 : i32, i32
  }
  func.func @transform_7(%arg0: i32) -> (i32, i32) {
    %c0_i32 = arith.constant 0 : i32
    %c0_i32_0 = arith.constant 0 : i32
    return %arg0, %c0_i32 : i32, i32
  }
}

</mosaic_0001>

<bundles_post_ra>
// kernel: tpu_custom_call.1
= control target key start
LH: loop header
LB: loop body
LE: loop exit
PB: predicated region body
PF: predicated region fallthrough
CT: control target
= control target key end

     0   :  { %vm127_vm0 = vcmask 1043456   ;;  %v228_v3 = vlaneseq  ;;  %v5407_v4 = vmov 1   ;;  %vm102_vm1 = vcmask 64512   ;;  %s3622_s14 = smov 64   ;;  %s5393_s0 = inlined_call_operand.vmem [shape: bf16[16,8,8], index: 0, kind: input, shape index: {}]   ;;  %s5394_s1 = inlined_call_operand.vmem [shape: f32[16,8,8], index: 1, kind: input, shape index: {}]   ;;  %s5395_s2 = inlined_call_operand.vmem [shape: bf16[8,80], index: 2, kind: input, shape index: {}]   ;;  %s5396_s3 = inlined_call_operand.vmem [shape: bf16[16,8], index: 3, kind: input, shape index: {}]   ;;  %s5397_s4 = inlined_call_operand.vmem [shape: bf16[8,64], index: 4, kind: input, shape index: {}]   ;;  %s5398_s5 = inlined_call_operand.vmem [shape: bf16[32,17], index: 5, kind: input, shape index: {}]   ;;  %s5399_s6 = inlined_call_operand.vmem [shape: f32[4,128], index: 6, kind: input, shape index: {}]   ;;  %s5400_s7 = inlined_call_operand.hbm [shape: f32[16,128], index: 7, kind: output, shape index: {}]  }
   0x1   :  { %v61_v0 = vld [vmem:[%s5395_s2] sm:$0xf]  ;;  %3323 = vset.pattern.permute.xlu1 %v5407_v4  ;;  %v3387_v6 = vld [vmem:[%s5393_s0 + $0x8] sm:$0xff]   ;;  %3326 = vset.pattern.permute.xlu0 %v5407_v4  ;;  %v3388_v11 = vld [vmem:[%s5393_s0 + $0x10] sm:$0xff]   ;;  %v5409_v16 = vmov 0  }
   0x2   :  { %v3682_v1 = vld [vmem:[%s5394_s1] sm:$0xff]  ;;  %3305 = vmatprep.subr.msk.bf16.mxu0 %vm127_vm0, %v61_v0  ;;  %v129_v5 = vsel %vm127_vm0, %v61_v0, 0  ;;  %v3694_v7 = vshrl.u32 %v228_v3, 7  ;;  %v3700_v8 = vld [vmem:[%s5394_s1 + $0x8] sm:$0xff]  ;;  %3306 = vmatprep.subr.msk.bf16.mxu1 %vm127_vm0, %v61_v0  ;;  %v3721_v13 = vld [vmem:[%s5394_s1 + $0x10] sm:$0xff] }
   0x3   :  { %v3386_v2 = vld [vmem:[%s5393_s0] sm:$0xff]   ;;  %3242 = vmatpush3.bf16.msra.mxu0 %v129_v5  ;;  %429 = vperm.xlu1 %3323, %v3682_v1   ;;  %v3726_v14 = vld [vmem:[%s5394_s1 + $0x18] sm:$0xff]  ;;  %v3739_v18 = vld [vmem:[%s5394_s1 + $0x48] sm:$0xff] }
   0x4   :  { %3243 = vmatprep.mubr.msk.bf16.mxu0 %vm102_vm1, %v3386_v2  ;;  %v28_v9 = vld [vmem:[%s5399_s6] sm:$0xf]  ;;  %v3707_v10 = vsub.s32 0, %v3694_v7  ;;  %3304 = vmatpush3.bf16.msra.mxu1 %v129_v5  ;;  %v3389_v15 = vld [vmem:[%s5393_s0 + $0x18] sm:$0xff]   ;;  %v3392_v19 = vld [vmem:[%s5393_s0 + $0x30] sm:$0xff]  }
   0x5   :  { %v3390_v17 = vld [vmem:[%s5393_s0 + $0x20] sm:$0xff]   ;;  %v3393_v20 = vld [vmem:[%s5393_s0 + $0x38] sm:$0xff]   ;;  %3255 = vmatprep.mubr.msk.bf16.mxu1 %vm102_vm1, %v3392_v19 }
   0x6   :  { %3244 = vmatmul.mubr.msk.bf16.vlgmr.msra.gmra.mxu0 %vm102_vm1, %v3387_v6  ;;  %v231_v12 = vrot.slane %v28_v9, %v3707_v10 }
   0x7   :  { %433 = vperm.xlu1 %3323, %v3700_v8   ;;  %3247 = vmatprep.mubr.msk.bf16.mxu0 %vm102_vm1, %v3388_v11 }
   0x8   :  { %233 = vrot.lane.b32.xlu0 %v231_v12, %s3622_s14  ;;  %3256 = vmatmul.mubr.msk.bf16.vlgmr.msra.gmra.mxu1 %vm102_vm1, %v3393_v20 }
   0xb   :  { %3324 = vset.pattern.permute.xlu1 %v5409_v16 }
   0xc   :  { %264 = vperm.xlu1 %3324, %v3721_v13   ;;  %441 = vperm.xlu0 %3326, %v3726_v14  }
   0xe   :  { %3248 = vmatmul.mubr.msk.bf16.gmra.mxu0 %vm102_vm1, %v3389_v15 }
   0xf   :  { %3251 = vmatprep.mubr.msk.bf16.mxu0 %vm102_vm1, %v3390_v17 }
  0x10   :  { %3325 = vset.pattern.permute.xlu1 %v5407_v4  ;;  %465 = vperm.xlu0 %3326, %v3739_v18  }
  0x11   :  { %437 = vperm.xlu1 %3325, %v3721_v13  }
  0x12   :  { %12 = vsyncpa [#allocation3], 0  ;;  %v3758_v21 = vld [vmem:[%s5394_s1 + $0x58] sm:$0xff]  ;;  %v3391_v22 = vld [vmem:[%s5393_s0 + $0x28] sm:$0xff]   ;;  %v5403_v23 = vmov 2   ;;  %v5419_v24 = vmov 7  }
  0x13   :  { %v3773_v25 = vld [vmem:[%s5394_s1 + $0x28] sm:$0xff]  ;;  %v3780_v26 = vld [vmem:[%s5394_s1 + $0x30] sm:$0xff]  ;;  %v5413_v27 = vmov 3   ;;  %v5411_v28 = vmov 4   ;;  %v3798_v29 = vld [vmem:[%s5394_s1 + $0x38] sm:$0xff]  ;;  %v5405_v35 = vmov 5  }
  0x14   :  { %473 = vperm.xlu0 %3326, %v3758_v21   ;;  %v3803_v30 = vld [vmem:[%s5394_s1 + $0x20] sm:$0xff]  ;;  %v3817_v32 = vld [vmem:[%s5394_s1 + $0x50] sm:$0xff]  ;;  %v3825_v33 = vld [vmem:[%s5394_s1 + $0x68] sm:$0xff]  ;;  %v5401_v37 = vmov 6   ;;  %vm1608_vm2 = vcmask 130048   ;;  %vm2859_vm3 = vcmask 261120  }
  0x15   :  { %3327 = vset.pattern.permute.xlu1 %v5403_v23  ;;  %v3810_v31 = vld [vmem:[%s5394_s1 + $0x40] sm:$0xff]  ;;  %5564 = vst [vmem:[#allocation5_spill] sm:$0xff] %v3825_v33  ;;  %v3832_v34 = vld [vmem:[%s5394_s1 + $0x78] sm:$0xff]  ;;  %v3853_v36 = vld [vmem:[%s5394_s1 + $0x70] sm:$0xff]  ;;  %vm3044_vm4 = vcmask 1041409   ;;  %vm3046_vm5 = vcmask 1042434  }
  0x16   :  { %589 = vperm.xlu1 %3327, %v3682_v1   ;;  %3252 = vmatmul.mubr.msk.bf16.gmra.mxu0 %vm102_vm1, %v3391_v22  ;;  %v3938_v55 = vld [vmem:[%s5394_s1 + $0x60] sm:$0xff]  ;;  %vm3048_vm6 = vcmask 1043459   ;;  %vm3632_vm7 = vmmov 0   ;;  %vm3050_vm8 = vcmask 1044484   ;;  %vm3052_vm9 = vcmask 1045509  }
  0x17   :  { %vm3054_vm10 = vcmask 1046534   ;;  %vm3056_vm11 = vcmask 1047559   ;;  %vm3136_vm12 = vcmask 138240  }
  0x18   :  { %3350 = vset.pattern.permute.xlu0 %v5419_v24 }
  0x19   :  { %1397 = vperm.xlu0 %3350, %v3721_v13  }
  0x1a   :  { %593 = vperm.xlu1 %3327, %v3700_v8  }
  0x1d   :  { %1409 = vperm.xlu0 %3350, %v3773_v25  }
  0x1e   :  { %601 = vperm.xlu1 %3327, %v3726_v14  }
  0x21   :  { %1413 = vperm.xlu0 %3350, %v3780_v26  }
  0x22   :  { %3328 = vset.pattern.permute.xlu1 %v5413_v27 }
  0x23   :  { %749 = vperm.xlu1 %3328, %v3682_v1  }
  0x25   :  { %3359 = vset.pattern.permute.xlu0 %v5409_v16 }
  0x26   :  { %254 = vperm.xlu0 %3359, %v3682_v1  }
  0x27   :  { %757 = vperm.xlu1 %3328, %v3721_v13  }
  0x2a   :  { %259 = vperm.xlu0 %3359, %v3700_v8  }
  0x2b   :  { %761 = vperm.xlu1 %3328, %v3726_v14  }
  0x2e   :  { %269 = vperm.xlu0 %3359, %v3726_v14  }
  0x2f   :  { %3329 = vset.pattern.permute.xlu1 %v5411_v28 }
  0x30   :  { %913 = vperm.xlu1 %3329, %v3700_v8  }
  0x32   :  { %279 = vperm.xlu0 %3359, %v3773_v25  }
  0x34   :  { %917 = vperm.xlu1 %3329, %v3721_v13  }
  0x36   :  { %289 = vperm.xlu0 %3359, %v3798_v29  }
  0x38   :  { %3330 = vset.pattern.permute.xlu1 %v5409_v16 }
  0x39   :  { %274 = vperm.xlu1 %3330, %v3803_v30  }
  0x3a   :  { %294 = vperm.xlu0 %3359, %v3810_v31  }
  0x3d   :  { %3331 = vset.pattern.permute.xlu1 %v5407_v4 }
  0x3e   :  { %445 = vperm.xlu1 %3331, %v3803_v30   ;;  %304 = vperm.xlu0 %3359, %v3817_v32  }
  0x42   :  { %449 = vperm.xlu1 %3331, %v3773_v25   ;;  %319 = vperm.xlu0 %3359, %v3825_v33  }
  0x46   :  { %3332 = vset.pattern.permute.xlu1 %v5405_v35  ;;  %329 = vperm.xlu0 %3359, %v3832_v34  }
  0x47   :  { %1073 = vperm.xlu1 %3332, %v3700_v8  }
  0x4a   :  { %3366 = vset.pattern.permute.xlu0 %v5403_v23 }
  0x4b   :  { %3333 = vset.pattern.permute.xlu1 %v5409_v16  ;;  %597 = vperm.xlu0 %3366, %v3721_v13  }
  0x4c   :  { %284 = vperm.xlu1 %3333, %v3780_v26  }
  0x4f   :  { %609 = vperm.xlu0 %3366, %v3773_v25  }
  0x50   :  { %3334 = vset.pattern.permute.xlu1 %v5407_v4 }
  0x51   :  { %453 = vperm.xlu1 %3334, %v3780_v26  }
  0x53   :  { %613 = vperm.xlu0 %3366, %v3780_v26  }
  0x55   :  { %457 = vperm.xlu1 %3334, %v3798_v29  }
  0x57   :  { %621 = vperm.xlu0 %3366, %v3810_v31  }
  0x59   :  { %3335 = vset.pattern.permute.xlu1 %v5405_v35 }
  0x5a   :  { %1081 = vperm.xlu1 %3335, %v3726_v14  }
  0x5b   :  { %641 = vperm.xlu0 %3366, %v3825_v33  }
  0x5e   :  { %3336 = vset.pattern.permute.xlu1 %v5403_v23 }
  0x5f   :  { %605 = vperm.xlu1 %3336, %v3803_v30   ;;  %645 = vperm.xlu0 %3366, %v3853_v36  }
  0x63   :  { %3337 = vset.pattern.permute.xlu1 %v5401_v37  ;;  %3371 = vset.pattern.permute.xlu0 %v5413_v27 }
  0x64   :  { %1229 = vperm.xlu1 %3337, %v3682_v1   ;;  %753 = vperm.xlu0 %3371, %v3700_v8  }
  0x68   :  { %1233 = vperm.xlu1 %3337, %v3700_v8   ;;  %769 = vperm.xlu0 %3371, %v3773_v25  }
  0x6c   :  { %3338 = vset.pattern.permute.xlu1 %v5403_v23  ;;  %773 = vperm.xlu0 %3371, %v3780_v26  }
  0x6d   :  { %617 = vperm.xlu1 %3338, %v3798_v29  }
  0x70   :  { %781 = vperm.xlu0 %3371, %v3810_v31  }
  0x71   :  { %3339 = vset.pattern.permute.xlu1 %v5401_v37 }
  0x72   :  { %1241 = vperm.xlu1 %3339, %v3726_v14  }
  0x74   :  { %801 = vperm.xlu0 %3371, %v3825_v33  }
  0x76   :  { %3340 = vset.pattern.permute.xlu1 %v5413_v27 }
  0x77   :  { %765 = vperm.xlu1 %3340, %v3803_v30  }
  0x78   :  { %805 = vperm.xlu0 %3371, %v3853_v36  }
  0x7a   :  { %v3884_v40 = vpop.permute.xlu0 %233 }
  0x7b   :  { %3341 = vset.pattern.permute.xlu1 %v5419_v24 }
  0x7c   :  { %1389 = vperm.xlu1 %3341, %v3682_v1   ;;  %3376 = vset.pattern.permute.xlu0 %v5411_v28 }
  0x7d   :  { %909 = vperm.xlu0 %3376, %v3682_v1  }
  0x7e   :  { %v3877_v38 = vpop.permute.xlu1 %429 }
  0x80   :  { %1393 = vperm.xlu1 %3341, %v3700_v8  }
  0x81   :  { %921 = vperm.xlu0 %3376, %v3726_v14  }
  0x82   :  { %v3881_v39 = vpop.permute.xlu1 %433 }
  0x83   :  { %5565 = vst [vmem:[#allocation6_spill] sm:$0xff] %v3881_v39 }
  0x84   :  { %3342 = vset.pattern.permute.xlu1 %v5413_v27 }
  0x85   :  { %777 = vperm.xlu1 %3342, %v3798_v29   ;;  %929 = vperm.xlu0 %3376, %v3773_v25  }
  0x87   :  { %v3889_v41 = vpop.permute.xlu1 %264  ;;  %v3891_v42 = vpop.permute.xlu0 %441 }
  0x88   :  { %5566 = vst [vmem:[#allocation7_spill] sm:$0xff] %v3889_v41  ;;  %5567 = vst [vmem:[#allocation8_spill] sm:$0xff] %v3891_v42 }
  0x89   :  { %3343 = vset.pattern.permute.xlu1 %v5419_v24  ;;  %941 = vperm.xlu0 %3376, %v3810_v31  }
  0x8a   :  { %1401 = vperm.xlu1 %3343, %v3726_v14  }
  0x8b   :  { %v3898_v44 = vpop.permute.xlu0 %465 }
  0x8c   :  { %v3896_v43 = vpop.permute.xlu1 %437  ;;  %5569 = vst [vmem:[#allocation10_spill] sm:$0xff] %v3898_v44 }
  0x8d   :  { %5568 = vst [vmem:[#allocation9_spill] sm:$0xff] %v3896_v43  ;;  %953 = vperm.xlu0 %3376, %v3758_v21  }
  0x8e   :  { %3344 = vset.pattern.permute.xlu1 %v5411_v28 }
  0x8f   :  { %925 = vperm.xlu1 %3344, %v3803_v30   ;;  %v3903_v45 = vpop.permute.xlu0 %473 }
  0x90   :  { %5570 = vst [vmem:[#allocation11_spill] sm:$0xff] %v3903_v45  ;;  %v5620_v45 = vmov 0  }
  0x91   :  { %v3905_v46 = vpop.permute.xlu1 %589  ;;  %961 = vperm.xlu0 %3376, %v3825_v33  }
  0x92   :  { %5571 = vst [vmem:[#allocation12_spill] sm:$0xff] %v3905_v46 }
  0x93   :  { %933 = vperm.xlu1 %3344, %v3780_v26  }
  0x94   :  { %v3911_v48 = vpop.permute.xlu0 %1397 }
  0x95   :  { %v3909_v47 = vpop.permute.xlu1 %593  ;;  %5573 = vst [vmem:[#allocation14_spill] sm:$0xff] %v3911_v48  ;;  %3380 = vset.pattern.permute.xlu0 %v5405_v35 }
  0x96   :  { %5572 = vst [vmem:[#allocation13_spill] sm:$0xff] %v3909_v47  ;;  %1069 = vperm.xlu0 %3380, %v3682_v1  }
  0x97   :  { %937 = vperm.xlu1 %3344, %v3798_v29  }
  0x98   :  { %v3918_v50 = vpop.permute.xlu0 %1409 }
  0x99   :  { %v3916_v49 = vpop.permute.xlu1 %601  ;;  %5575 = vst [vmem:[#allocation16_spill] sm:$0xff] %v3918_v50  ;;  %v5630_v50 = vmov 5  }
  0x9a   :  { %5574 = vst [vmem:[#allocation15_spill] sm:$0xff] %v3916_v49  ;;  %1077 = vperm.xlu0 %3380, %v3721_v13  }
  0x9b   :  { %3345 = vset.pattern.permute.xlu1 %v5409_v16 }
  0x9c   :  { %299 = vperm.xlu1 %3345, %v3739_v18   ;;  %v3923_v51 = vpop.permute.xlu0 %1413 }
  0x9d   :  { %5576 = vst [vmem:[#allocation17_spill] sm:$0xff] %v3923_v51 }
  0x9e   :  { %v3925_v52 = vpop.permute.xlu1 %749  ;;  %1101 = vperm.xlu0 %3380, %v3810_v31  }
  0x9f   :  { %5577 = vst [vmem:[#allocation18_spill] sm:$0xff] %v3925_v52 }
  0xa0   :  { %3346 = vset.pattern.permute.xlu1 %v5407_v4 }
  0xa1   :  { %461 = vperm.xlu1 %3346, %v3810_v31   ;;  %v3932_v54 = vpop.permute.xlu0 %254 }
  0xa2   :  { %v3930_v53 = vpop.permute.xlu1 %757  ;;  %5579 = vst [vmem:[#allocation20_spill] sm:$0xff] %v3932_v54  ;;  %1109 = vperm.xlu0 %3380, %v3817_v32  }
  0xa3   :  { %5578 = vst [vmem:[#allocation19_spill] sm:$0xff] %v3930_v53 }
  0xa5   :  { %3347 = vset.pattern.permute.xlu1 %v5405_v35  ;;  %v3944_v57 = vpop.permute.xlu0 %259 }
  0xa6   :  { %1085 = vperm.xlu1 %3347, %v3803_v30   ;;  %v3942_v56 = vpop.permute.xlu1 %761  ;;  %5581 = vst [vmem:[#allocation22_spill] sm:$0xff] %v3944_v57  ;;  %1117 = vperm.xlu0 %3380, %v3938_v55  }
  0xa7   :  { %5580 = vst [vmem:[#allocation21_spill] sm:$0xff] %v3942_v56 }
  0xa9   :  { %v3948_v58 = vpop.permute.xlu0 %269 }
  0xaa   :  { %1089 = vperm.xlu1 %3347, %v3773_v25   ;;  %5582 = vst [vmem:[#allocation23_spill] sm:$0xff] %v3948_v58  ;;  %1129 = vperm.xlu0 %3380, %v3832_v34  }
  0xab   :  { %v3950_v59 = vpop.permute.xlu1 %913 }
  0xac   :  { %5583 = vst [vmem:[#allocation24_spill] sm:$0xff] %v3950_v59 }
  0xad   :  { %v3954_v60 = vpop.permute.xlu0 %279 }
  0xae   :  { %3348 = vset.pattern.permute.xlu1 %v5409_v16  ;;  %5584 = vst [vmem:[#allocation25_spill] sm:$0xff] %v3954_v60  ;;  %3382 = vset.pattern.permute.xlu0 %v5401_v37 }
  0xaf   :  { %309 = vperm.xlu1 %3348, %v3758_v21   ;;  %v3957_v61 = vpop.permute.xlu1 %917  ;;  %1237 = vperm.xlu0 %3382, %v3721_v13  }
  0xb0   :  { %5585 = vst [vmem:[#allocation26_spill] sm:$0xff] %v3957_v61 }
  0xb1   :  { %v3961_v62 = vpop.permute.xlu0 %289 }
  0xb2   :  { %5586 = vst [vmem:[#allocation27_spill] sm:$0xff] %v3961_v62 }
  0xb3   :  { %3349 = vset.pattern.permute.xlu1 %v5407_v4  ;;  %1249 = vperm.xlu0 %3382, %v3773_v25  }
  0xb4   :  { %469 = vperm.xlu1 %3349, %v3817_v32   ;;  %v3965_v63 = vpop.permute.xlu1 %274 }
  0xb5   :  { %5587 = vst [vmem:[#allocation28_spill] sm:$0xff] %v3965_v63  ;;  %v3968_v0 = vpop.permute.xlu0 %294 }
  0xb6   :  { %5588 = vst [vmem:[#allocation29_spill] sm:$0xff] %v3968_v0 }
  0xb7   :  { %1253 = vperm.xlu0 %3382, %v3780_v26  }
  0xb8   :  { %3351 = vset.pattern.permute.xlu1 %v5405_v35 }
  0xb9   :  { %1093 = vperm.xlu1 %3351, %v3780_v26   ;;  %v3973_v1 = vpop.permute.xlu1 %445  ;;  %v3975_v2 = vpop.permute.xlu0 %304 }
  0xba   :  { %5589 = vst [vmem:[#allocation30_spill] sm:$0xff] %v3973_v1  ;;  %5590 = vst [vmem:[#allocation31_spill] sm:$0xff] %v3975_v2  ;;  %v5623_v2 = vmov 1  }
  0xbb   :  { %1269 = vperm.xlu0 %3382, %v3817_v32  }
  0xbd   :  { %1097 = vperm.xlu1 %3351, %v3798_v29   ;;  %v3979_v3 = vpop.permute.xlu1 %449  ;;  %v3981_v5 = vpop.permute.xlu0 %319 }
  0xbe   :  { %5591 = vst [vmem:[#allocation32_spill] sm:$0xff] %v3979_v3  ;;  %5592 = vst [vmem:[#allocation33_spill] sm:$0xff] %v3981_v5 }
  0xbf   :  { %1281 = vperm.xlu0 %3382, %v3825_v33  }
  0xc1   :  { %3352 = vset.pattern.permute.xlu1 %v5403_v23  ;;  %v3988_v8 = vpop.permute.xlu0 %329 }
  0xc2   :  { %625 = vperm.xlu1 %3352, %v3739_v18   ;;  %v3986_v6 = vpop.permute.xlu1 %1073  ;;  %5594 = vst [vmem:[#allocation35_spill] sm:$0xff] %v3988_v8 }
  0xc3   :  { %5593 = vst [vmem:[#allocation34_spill] sm:$0xff] %v3986_v6  ;;  %3384 = vset.pattern.permute.xlu0 %v5419_v24 }
  0xc4   :  { %1429 = vperm.xlu0 %3384, %v3817_v32  }
  0xc6   :  { %3353 = vset.pattern.permute.xlu1 %v5401_v37  ;;  %v3996_v11 = vpop.permute.xlu0 %597 }
  0xc7   :  { %1245 = vperm.xlu1 %3353, %v3803_v30   ;;  %v3994_v9 = vpop.permute.xlu1 %284  ;;  %5596 = vst [vmem:[#allocation37_spill] sm:$0xff] %v3996_v11 }
  0xc8   :  { %5595 = vst [vmem:[#allocation36_spill] sm:$0xff] %v3994_v9  ;;  %1437 = vperm.xlu0 %3384, %v3938_v55  }
  0xca   :  { %v4000_v12 = vpop.permute.xlu0 %609 }
  0xcb   :  { %3354 = vset.pattern.permute.xlu1 %v5403_v23  ;;  %5597 = vst [vmem:[#allocation38_spill] sm:$0xff] %v4000_v12 }
  0xcc   :  { %629 = vperm.xlu1 %3354, %v3817_v32   ;;  %v4003_v13 = vpop.permute.xlu1 %453  ;;  %1449 = vperm.xlu0 %3384, %v3832_v34  }
  0xcd   :  { %5598 = vst [vmem:[#allocation39_spill] sm:$0xff] %v4003_v13 }
  0xce   :  { %v4006_v14 = vpop.permute.xlu0 %613 }
  0xcf   :  { %5599 = vst [vmem:[#allocation40_spill] sm:$0xff] %v4006_v14 }
  0xd0   :  { %633 = vperm.xlu1 %3354, %v3758_v21   ;;  %v4009_v15 = vpop.permute.xlu1 %457 }
  0xd1   :  { %5600 = vst [vmem:[#allocation41_spill] sm:$0xff] %v4009_v15 }
  0xd2   :  { %v4011_v17 = vpop.permute.xlu0 %621 }
  0xd3   :  { %5601 = vst [vmem:[#allocation42_spill] sm:$0xff] %v4011_v17 }
  0xd4   :  { %3355 = vset.pattern.permute.xlu1 %v5401_v37 }
  0xd5   :  { %1257 = vperm.xlu1 %3355, %v3798_v29   ;;  %v4015_v19 = vpop.permute.xlu1 %1081 }
  0xd6   :  { %5602 = vst [vmem:[#allocation43_spill] sm:$0xff] %v4015_v19  ;;  %v4017_v20 = vpop.permute.xlu0 %641 }
  0xd7   :  { %5603 = vst [vmem:[#allocation44_spill] sm:$0xff] %v4017_v20 }
  0xd9   :  { %3356 = vset.pattern.permute.xlu1 %v5413_v27 }
  0xda   :  { %785 = vperm.xlu1 %3356, %v3739_v18   ;;  %v4021_v22 = vpop.permute.xlu1 %605  ;;  %v4023_v25 = vpop.permute.xlu0 %645 }
  0xdb   :  { %5604 = vst [vmem:[#allocation45_spill] sm:$0xff] %v4021_v22  ;;  %5605 = vst [vmem:[#allocation46_spill] sm:$0xff] %v4023_v25  ;;  %v5615_v25 = vmov 4  }
  0xde   :  { %3357 = vset.pattern.permute.xlu1 %v5419_v24 }
  0xdf   :  { %1405 = vperm.xlu1 %3357, %v3803_v30   ;;  %v4027_v26 = vpop.permute.xlu1 %1229  ;;  %v4029_v37 = vpop.permute.xlu0 %753 }
  0xe0   :  { %5606 = vst [vmem:[#allocation47_spill] sm:$0xff] %v4027_v26  ;;  %5607 = vst [vmem:[#allocation48_spill] sm:$0xff] %v4029_v37 }
  0xe3   :  { %3358 = vset.pattern.permute.xlu1 %v5413_v27  ;;  %v4032_v23 = vpop.permute.xlu1 %1233  ;;  %v4035_v35 = vpop.permute.xlu0 %769 }
  0xe4   :  { %5608 = vst [vmem:[#allocation49_spill] sm:$0xff] %v4032_v23  ;;  %789 = vperm.xlu1 %3358, %v3817_v32   ;;  %5609 = vst [vmem:[#allocation50_spill] sm:$0xff] %v4035_v35 }
  0xe7   :  { %v4040_v16 = vpop.permute.xlu0 %773 }
  0xe8   :  { %793 = vperm.xlu1 %3358, %v3758_v21   ;;  %v4038_v4 = vpop.permute.xlu1 %617  ;;  %5611 = vst [vmem:[#allocation52_spill] sm:$0xff] %v4040_v16 }
  0xe9   :  { %5610 = vst [vmem:[#allocation51_spill] sm:$0xff] %v4038_v4  ;;  %v4134_v4 = vsub.s32 3, %v3694_v7 }
  0xeb   :  { %v4043_v30 = vpop.permute.xlu0 %781 }
  0xec   :  { %3360 = vset.pattern.permute.xlu1 %v5419_v24  ;;  %5612 = vst [vmem:[#allocation53_spill] sm:$0xff] %v4043_v30 }
  0xed   :  { %1417 = vperm.xlu1 %3360, %v3798_v29   ;;  %v4046_v28 = vpop.permute.xlu1 %1241 }
  0xee   :  { %5613 = vst [vmem:[#allocation54_spill] sm:$0xff] %v4046_v28 }
  0xef   :  { %v4048_v27 = vpop.permute.xlu0 %801 }
  0xf0   :  { %5614 = vst [vmem:[#allocation55_spill] sm:$0xff] %v4048_v27 }
  0xf1   :  { %3361 = vset.pattern.permute.xlu1 %v5615_v25 }
  0xf2   :  { %945 = vperm.xlu1 %3361, %v3739_v18   ;;  %v4052_v8 = vpop.permute.xlu1 %765 }
  0xf3   :  { %5616 = vst [vmem:[#allocation56_spill] sm:$0xff] %v4052_v8  ;;  %v4054_v20 = vpop.permute.xlu0 %805  ;;  %v4118_v8 = vsub.s32 2, %v3694_v7 }
  0xf4   :  { %5617 = vst [vmem:[#allocation57_spill] sm:$0xff] %v4054_v20 }
  0xf6   :  { %949 = vperm.xlu1 %3361, %v3817_v32   ;;  %v4073_v32 = vpop.f32.mrf.mxu0 }
  0xf7   :  { %v4057_v5 = vpop.permute.xlu1 %1389  ;;  %5626 = vst [vmem:[#allocation64_spill] sm:$0xff] %v4073_v32 }
  0xf8   :  { %5618 = vst [vmem:[#allocation58_spill] sm:$0xff] %v4057_v5  ;;  %v4059_v24 = vpop.permute.xlu0 %909  ;;  %v4080_v0 = vpop.f32.mrf.mxu0 }
  0xf9   :  { %5619 = vst [vmem:[#allocation59_spill] sm:$0xff] %v4059_v24  ;;  %5629 = vst [vmem:[#allocation67_spill] sm:$0xff] %v4080_v0 }
  0xfa   :  { %3362 = vset.pattern.permute.xlu1 %v5620_v45 }
  0xfb   :  { %314 = vperm.xlu1 %3362, %v3938_v55   ;;  %v4063_v29 = vpop.permute.xlu1 %1393 }
  0xfc   :  { %5621 = vst [vmem:[#allocation60_spill] sm:$0xff] %v4063_v29  ;;  %v4065_v27 = vpop.permute.xlu0 %921  ;;  %v4086_v29 = vpop.f32.mrf.mxu0 }
  0xfd   :  { %5622 = vst [vmem:[#allocation61_spill] sm:$0xff] %v4065_v27  ;;  %5632 = vst [vmem:[#allocation69_spill] sm:$0xff] %v4086_v29 }
  0xff   :  { %3363 = vset.pattern.permute.xlu1 %v5623_v2 }
 0x100   :  { %477 = vperm.xlu1 %3363, %v3938_v55   ;;  %v4069_v44 = vpop.permute.xlu1 %777  ;;  %v4071_v20 = vpop.permute.xlu0 %929 }
 0x101   :  { %5624 = vst [vmem:[#allocation62_spill] sm:$0xff] %v4069_v44  ;;  %5625 = vst [vmem:[#allocation63_spill] sm:$0xff] %v4071_v20  ;;  %v4092_v20 = vadd.f32 %v4086_v29, %v3884_v40  ;;  %v4109_v29 = vadd.f32 %v4073_v32, %v3884_v40 }
 0x103   :  { %v343_v23 = vrot.slane %v4109_v29, %v3707_v10  ;;  %v663_v24 = vrot.slane %v4109_v29, %v4118_v8 }
 0x104   :  { %481 = vperm.xlu1 %3363, %v3825_v33   ;;  %v4078_v17 = vpop.permute.xlu0 %941  ;;  %v4101_v33 = vsub.s32 1, %v3694_v7 }
 0x105   :  { %v4076_v30 = vpop.permute.xlu1 %1401  ;;  %5628 = vst [vmem:[#allocation66_spill] sm:$0xff] %v4078_v17 }
 0x106   :  { %5627 = vst [vmem:[#allocation65_spill] sm:$0xff] %v4076_v30  ;;  %5636 = vst [vmem:[#allocation73_spill] sm:$0xff] %v4101_v33  ;;  %v503_v32 = vrot.slane %v4109_v29, %v4101_v33 }
 0x108   :  { %3364 = vset.pattern.permute.xlu1 %v5630_v50  ;;  %v4084_v51 = vpop.permute.xlu0 %953 }
 0x109   :  { %1105 = vperm.xlu1 %3364, %v3739_v18   ;;  %5631 = vst [vmem:[#allocation68_spill] sm:$0xff] %v4084_v51  ;;  %v347_v51 = vrot.slane %v4092_v20, %v3707_v10 }
 0x10a   :  { %v4088_v5 = vpop.permute.xlu1 %925 }
 0x10b   :  { %5633 = vst [vmem:[#allocation70_spill] sm:$0xff] %v4088_v5  ;;  %v507_v5 = vrot.slane %v4092_v20, %v4101_v33  ;;  %v399_v26 = vmul.f32 %v347_v51, %v3948_v58  ;;  %v4137_v51 = vsub.s32 4, %v3694_v7  ;;  %v558_v58 = vmul.f32 %v503_v32, %v3896_v43 }
 0x10c   :  { %v4095_v44 = vpop.permute.xlu0 %961  ;;  %v718_v32 = vmul.f32 %v663_v24, %v3996_v11 }
 0x10d   :  { %3365 = vset.pattern.permute.xlu1 %v5620_v45  ;;  %5634 = vst [vmem:[#allocation71_spill] sm:$0xff] %v4095_v44  ;;  %v987_v52 = vrot.slane %v4092_v20, %v4137_v51  ;;  %v983_v11 = vrot.slane %v4109_v29, %v4137_v51 }
 0x10e   :  { %324 = vperm.xlu1 %3365, %v3853_v36   ;;  %v4098_v17 = vpop.permute.xlu1 %933 }
 0x10f   :  { %5635 = vst [vmem:[#allocation72_spill] sm:$0xff] %v4098_v17  ;;  %v559_v17 = vmul.f32 %v507_v5, %v3891_v42  ;;  %v398_v42 = vmul.f32 %v343_v23, %v3889_v41  ;;  %v1039_v41 = vmul.f32 %v987_v52, %v4065_v27  ;;  %v4176_v52 = vsub.s32 7, %v3694_v7 }
 0x111   :  { %v4114_v44 = vpop.permute.xlu0 %1069  ;;  %v575_v5 = vadd.f32 %v559_v17, %v399_v26  ;;  %v574_v26 = vadd.f32 %v558_v58, %v398_v42 }
 0x112   :  { %3367 = vset.pattern.permute.xlu1 %v5623_v2  ;;  %v4112_v45 = vpop.permute.xlu1 %937  ;;  %5638 = vst [vmem:[#allocation75_spill] sm:$0xff] %v4114_v44 }
 0x113   :  { %5637 = vst [vmem:[#allocation74_spill] sm:$0xff] %v4112_v45  ;;  %485 = vperm.xlu1 %3367, %v3853_v36   ;;  %v667_v45 = vrot.slane %v4092_v20, %v4118_v8  ;;  %v734_v58 = vadd.f32 %v718_v32, %v574_v26  ;;  %v1467_v32 = vrot.slane %v4092_v20, %v4176_v52 }
 0x115   :  { %v4126_v2 = vpop.permute.xlu0 %1077  ;;  %v719_v35 = vmul.f32 %v667_v45, %v3916_v49  ;;  %v4158_v45 = vsub.s32 5, %v3694_v7 }
 0x116   :  { %5639 = vst [vmem:[#allocation76_spill] sm:$0xff] %v4126_v2 }
 0x117   :  { %489 = vperm.xlu1 %3367, %v3832_v34   ;;  %v4131_v44 = vpop.permute.xlu1 %299  ;;  %v735_v17 = vadd.f32 %v719_v35, %v575_v5  ;;  %v1147_v35 = vrot.slane %v4092_v20, %v4158_v45 }
 0x118   :  { %5640 = vst [vmem:[#allocation77_spill] sm:$0xff] %v4131_v44  ;;  %v827_v44 = vrot.slane %v4092_v20, %v4134_v4 }
 0x119   :  { %v4143_v16 = vpop.permute.xlu0 %1101 }
 0x11a   :  { %5641 = vst [vmem:[#allocation78_spill] sm:$0xff] %v4143_v16  ;;  %v879_v49 = vmul.f32 %v827_v44, %v3942_v56  ;;  %v823_v16 = vrot.slane %v4109_v29, %v4134_v4  ;;  %v4173_v44 = vsub.s32 6, %v3694_v7 }
 0x11b   :  { %3368 = vset.pattern.permute.xlu1 %v5630_v50  ;;  %v5644_v50 = vmov 2  }
 0x11c   :  { %1113 = vperm.xlu1 %3368, %v3758_v21   ;;  %v4152_v23 = vpop.permute.xlu1 %461  ;;  %v895_v42 = vadd.f32 %v879_v49, %v735_v17  ;;  %v878_v56 = vmul.f32 %v823_v16, %v3930_v53  ;;  %v1143_v49 = vrot.slane %v4109_v29, %v4158_v45  ;;  %v1199_v17 = vmul.f32 %v1147_v35, %v4015_v19 }
 0x11d   :  { %5642 = vst [vmem:[#allocation79_spill] sm:$0xff] %v4152_v23  ;;  %v4155_v43 = vpop.permute.xlu0 %1109  ;;  %v1307_v26 = vrot.slane %v4092_v20, %v4173_v44  ;;  %v1038_v53 = vmul.f32 %v983_v11, %v3957_v61 }
 0x11e   :  { %5643 = vst [vmem:[#allocation80_spill] sm:$0xff] %v4155_v43  ;;  %v1055_v27 = vadd.f32 %v1039_v41, %v895_v42  ;;  %v894_v41 = vadd.f32 %v878_v56, %v734_v58  ;;  %v1198_v35 = vmul.f32 %v1143_v49, %v4126_v2  ;;  %v1519_v43 = vmul.f32 %v1467_v32, %v4076_v30 }
 0x11f   :  { %v1359_v19 = vmul.f32 %v1307_v26, %v4046_v28  ;;  %v1303_v56 = vrot.slane %v4109_v29, %v4173_v44  ;;  %v1463_v58 = vrot.slane %v4109_v29, %v4176_v52 }
 0x120   :  { %3369 = vset.pattern.permute.xlu1 %v5644_v50  ;;  %v1215_v42 = vadd.f32 %v1199_v17, %v1055_v27  ;;  %v1054_v23 = vadd.f32 %v1038_v53, %v894_v41 }
 0x121   :  { %637 = vperm.xlu1 %3369, %v3938_v55   ;;  %v4168_v24 = vpop.permute.xlu1 %1085  ;;  %v4170_v5 = vpop.permute.xlu0 %1117  ;;  %v1518_v32 = vmul.f32 %v1463_v58, %v3911_v48 }
 0x122   :  { %5645 = vst [vmem:[#allocation81_spill] sm:$0xff] %v4170_v5  ;;  %v5646_v5 = vmov 6   ;;  %v1375_v27 = vadd.f32 %v1359_v19, %v1215_v42  ;;  %v1214_v11 = vadd.f32 %v1198_v35, %v1054_v23  ;;  %v4214_v19 = vpop.f32.mrf.mxu0  ;;  %v5654_v23 = vmov 3  }
 0x123   :  { %5651 = vst [vmem:[#allocation86_spill] sm:$0xff] %v4214_v19  ;;  %v5657_v35 = vmov 7   ;;  %v4232_v58 = vadd.f32 %v3884_v40, %v4214_v19 }
 0x124   :  { %v1535_v26 = vadd.f32 %v1519_v43, %v1375_v27  ;;  %v4219_v43 = vpop.f32.mrf.mxu0 }
 0x125   :  { %3370 = vset.pattern.permute.xlu1 %v5646_v5  ;;  %v4189_v7 = vpop.permute.xlu1 %1089  ;;  %v4192_v16 = vpop.permute.xlu0 %1129  ;;  %5653 = vst [vmem:[#allocation88_spill] sm:$0xff] %v4219_v43 }
 0x126   :  { %1261 = vperm.xlu1 %3370, %v3810_v31   ;;  %5647 = vst [vmem:[#allocation82_spill] sm:$0xff] %v4192_v16  ;;  %3397 = vtanh.f32 %v1535_v26  ;;  %v4225_v42 = vpop.f32.mrf.mxu0  ;;  %v4239_v26 = vadd.f32 %v4219_v43, %v3884_v40 }
 0x127   :  { %5656 = vst [vmem:[#allocation90_spill] sm:$0xff] %v4225_v42 }
 0x128   :  { %v519_v43 = vrot.slane %v4239_v26, %v4101_v33  ;;  %v679_v2 = vrot.slane %v4239_v26, %v4118_v8 }
 0x12a   :  { %1265 = vperm.xlu1 %3370, %v3739_v18   ;;  %v4199_v20 = vpop.permute.xlu1 %309  ;;  %v4205_v17 = vpop.permute.xlu0 %1237 }
 0x12b   :  { %5648 = vst [vmem:[#allocation83_spill] sm:$0xff] %v4199_v20  ;;  %5649 = vst [vmem:[#allocation84_spill] sm:$0xff] %v4205_v17  ;;  %v1358_v49 = vmul.f32 %v1303_v56, %v4205_v17  ;;  %v659_v17 = vrot.slane %v4232_v58, %v4118_v8 }
 0x12d   :  { %v1374_v53 = vadd.f32 %v1358_v49, %v1214_v11  ;;  %v4235_v11 = vpop.f32.mrf.mxu0 }
 0x12e   :  { %3372 = vset.pattern.permute.xlu1 %v5644_v50  ;;  %5659 = vst [vmem:[#allocation92_spill] sm:$0xff] %v4235_v11  ;;  %v4289_v16 = vadd.f32 %v4235_v11, %v3884_v40 }
 0x12f   :  { %649 = vperm.xlu1 %3372, %v3832_v34   ;;  %v4211_v41 = vpop.permute.xlu1 %469  ;;  %v1534_v30 = vadd.f32 %v1518_v32, %v1374_v53  ;;  %v339_v32 = vrot.slane %v4232_v58, %v3707_v10  ;;  %v499_v53 = vrot.slane %v4232_v58, %v4101_v33 }
 0x130   :  { %5650 = vst [vmem:[#allocation85_spill] sm:$0xff] %v4211_v41 }
 0x131   :  { %3399 = vtanh.f32 %v1534_v30  ;;  %v397_v28 = vmul.f32 %v339_v32, %v3944_v57  ;;  %v819_v32 = vrot.slane %v4232_v58, %v4134_v4  ;;  %v562_v57 = vmul.f32 %v519_v43, %v4003_v13 }
 0x132   :  { %v717_v43 = vmul.f32 %v659_v17, %v3909_v47 }
 0x133   :  { %3373 = vset.pattern.permute.xlu1 %v5646_v5  ;;  %v3398_v56 = vpop.eup %3397 }
 0x134   :  { %1273 = vperm.xlu1 %3373, %v3758_v21   ;;  %v4217_v29 = vpop.permute.xlu1 %1093 }
 0x135   :  { %5652 = vst [vmem:[#allocation87_spill] sm:$0xff] %v4217_v29 }
 0x138   :  { %3374 = vset.pattern.permute.xlu1 %v5654_v23  ;;  %v4222_v50 = vpop.permute.xlu1 %1097 }
 0x139   :  { %5655 = vst [vmem:[#allocation89_spill] sm:$0xff] %v4222_v50  ;;  %797 = vperm.xlu1 %3374, %v3938_v55  }
 0x13d   :  { %3375 = vset.pattern.permute.xlu1 %v5657_v35  ;;  %v4228_v30 = vpop.permute.xlu1 %625 }
 0x13e   :  { %5658 = vst [vmem:[#allocation91_spill] sm:$0xff] %v4228_v30  ;;  %1421 = vperm.xlu1 %3375, %v3810_v31   ;;  %v3400_v27 = vpop.eup %3399  ;;  %v4251_v31 = vadd.f32 %v3884_v40, %v4080_v0  ;;  %v363_v30 = vrot.slane %v4289_v16, %v3707_v10 }
 0x13f   :  { %v1565_v49 = vpack.c.bf16 %v3398_v56, %v3400_v27  ;;  %v4253_v56 = vpop.f32.mrf.mxu0  ;;  %v359_v27 = vrot.slane %v4239_v26, %v3707_v10 }
 0x140   :  { %5661 = vst [vmem:[#allocation94_spill] sm:$0xff] %v4253_v56  ;;  %v335_v0 = vrot.slane %v4251_v31, %v3707_v10  ;;  %v655_v11 = vrot.slane %v4251_v31, %v4118_v8 }
 0x141   :  { %1588 = vrot.lane.b32.xlu0 %v1565_v49, %s3622_s14  ;;  %v4264_v49 = vadd.f32 %v3884_v40, %v4253_v56  ;;  %v495_v56 = vrot.slane %v4251_v31, %v4101_v33 }
 0x142   :  { %1425 = vperm.xlu1 %3375, %v3739_v18   ;;  %v4246_v19 = vpop.permute.xlu1 %1245  ;;  %v557_v18 = vmul.f32 %v499_v53, %v3881_v39  ;;  %v402_v39 = vmul.f32 %v359_v27, %v3994_v9  ;;  %v396_v20 = vmul.f32 %v335_v0, %v3932_v54  ;;  %v1139_v9 = vrot.slane %v4232_v58, %v4158_v45 }
 0x143   :  { %5660 = vst [vmem:[#allocation93_spill] sm:$0xff] %v4246_v19  ;;  %v515_v53 = vrot.slane %v4264_v49, %v4101_v33  ;;  %v556_v17 = vmul.f32 %v495_v56, %v3877_v38  ;;  %v722_v54 = vmul.f32 %v679_v2, %v4006_v14  ;;  %v835_v14 = vrot.slane %v4264_v49, %v4134_v4 }
 0x144   :  { %v573_v61 = vadd.f32 %v557_v18, %v397_v28  ;;  %v979_v28 = vrot.slane %v4232_v58, %v4137_v51  ;;  %v877_v18 = vmul.f32 %v819_v32, %v4029_v37  ;;  %v578_v47 = vadd.f32 %v562_v57, %v402_v39 }
 0x145   :  { %v675_v37 = vrot.slane %v4264_v49, %v4118_v8  ;;  %v523_v39 = vrot.slane %v4289_v16, %v4101_v33 }
 0x146   :  { %3377 = vset.pattern.permute.xlu1 %v5654_v23  ;;  %v4277_v23 = vadd.f32 %v3884_v40, %v4225_v42  ;;  %v355_v42 = vrot.slane %v4264_v49, %v3707_v10  ;;  %v733_v32 = vadd.f32 %v717_v43, %v573_v61  ;;  %v815_v61 = vrot.slane %v4251_v31, %v4134_v4 }
 0x147   :  { %809 = vperm.xlu1 %3377, %v3832_v34   ;;  %v4269_v48 = vpop.permute.xlu1 %629  ;;  %v572_v43 = vadd.f32 %v556_v17, %v396_v20  ;;  %v721_v57 = vmul.f32 %v675_v37, %v4000_v12  ;;  %v563_v20 = vmul.f32 %v523_v39, %v4009_v15  ;;  %v999_v17 = vrot.slane %v4239_v26, %v4137_v51 }
 0x148   :  { %5662 = vst [vmem:[#allocation95_spill] sm:$0xff] %v4269_v48  ;;  %v351_v13 = vrot.slane %v4277_v23, %v3707_v10  ;;  %v511_v0 = vrot.slane %v4277_v23, %v4101_v33  ;;  %v561_v48 = vmul.f32 %v515_v53, %v3979_v3  ;;  %v893_v41 = vadd.f32 %v877_v18, %v733_v32 }
 0x149   :  { %v1037_v53 = vmul.f32 %v979_v28, %v3950_v59  ;;  %v738_v18 = vadd.f32 %v722_v54, %v578_v47  ;;  %v1197_v32 = vmul.f32 %v1139_v9, %v3986_v6  ;;  %v839_v47 = vrot.slane %v4239_v26, %v4134_v4  ;;  %v5669_v59 = vld [vmem:[#allocation59_spill] sm:$0xff] }
 0x14a   :  { %v560_v56 = vmul.f32 %v511_v0, %v3973_v1  ;;  %v716_v0 = vmul.f32 %v655_v11, %v3905_v46  ;;  %v975_v54 = vrot.slane %v4251_v31, %v4137_v51  ;;  %v1299_v9 = vrot.slane %v4232_v58, %v4173_v44  ;;  %v5666_v11 = vld [vmem:[#allocation18_spill] sm:$0xff] }
 0x14b   :  { %3378 = vset.pattern.permute.xlu1 %v5657_v35  ;;  %v4297_v27 = vpop.permute.xlu1 %633  ;;  %v876_v28 = vmul.f32 %v815_v61, %v5666_v11  ;;  %v5670_v61 = vld [vmem:[#allocation51_spill] sm:$0xff] }
 0x14c   :  { %5663 = vst [vmem:[#allocation96_spill] sm:$0xff] %v4297_v27  ;;  %1433 = vperm.xlu1 %3378, %v3758_v21   ;;  %v671_v21 = vrot.slane %v4277_v23, %v4118_v8  ;;  %v401_v27 = vmul.f32 %v355_v42, %v3954_v60  ;;  %v400_v42 = vmul.f32 %v351_v13, %v3965_v63 }
 0x14d   :  { %v403_v13 = vmul.f32 %v363_v30, %v3961_v62  ;;  %v1053_v60 = vadd.f32 %v1037_v53, %v893_v41  ;;  %v831_v41 = vrot.slane %v4277_v23, %v4134_v4  ;;  %v1036_v46 = vmul.f32 %v975_v54, %v5669_v59  ;;  %v5676_v54 = vld [vmem:[#allocation47_spill] sm:$0xff] }
 0x14e   :  { %v577_v3 = vadd.f32 %v561_v48, %v401_v27  ;;  %v576_v37 = vadd.f32 %v560_v56, %v400_v42  ;;  %v683_v48 = vrot.slane %v4289_v16, %v4118_v8  ;;  %v732_v27 = vadd.f32 %v716_v0, %v572_v43  ;;  %v5667_v56 = vld [vmem:[#allocation50_spill] sm:$0xff] }
 0x14f   :  { %v881_v53 = vmul.f32 %v835_v14, %v5667_v56  ;;  %v1459_v43 = vrot.slane %v4232_v58, %v4176_v52  ;;  %v1213_v0 = vadd.f32 %v1197_v32, %v1053_v60  ;;  %v579_v12 = vadd.f32 %v563_v20, %v403_v13  ;;  %v5672_v14 = vld [vmem:[#allocation49_spill] sm:$0xff]  ;;  %v5673_v58 = vld [vmem:[#allocation72_spill] sm:$0xff] }
 0x150   :  { %3379 = vset.pattern.permute.xlu1 %v5615_v25  ;;  %v4329_v2 = vpop.permute.xlu1 %1257  ;;  %v720_v25 = vmul.f32 %v671_v21, %v4021_v22  ;;  %v1135_v21 = vrot.slane %v4251_v31, %v4158_v45  ;;  %v737_v42 = vadd.f32 %v721_v57, %v577_v3  ;;  %v5668_v22 = vld [vmem:[#allocation52_spill] sm:$0xff]  ;;  %v723_v11 = vmul.f32 %v683_v48, %v5670_v61  ;;  %v4371_v57 = vpop.permute.xlu0 %1249 }
 0x151   :  { %5664 = vst [vmem:[#allocation97_spill] sm:$0xff] %v4329_v2  ;;  %957 = vperm.xlu1 %3379, %v3938_v55   ;;  %v882_v6 = vmul.f32 %v839_v47, %v5668_v22  ;;  %v892_v15 = vadd.f32 %v876_v28, %v732_v27  ;;  %v843_v62 = vrot.slane %v4289_v16, %v4134_v4  ;;  %5671 = vst [vmem:[#allocation99_spill] sm:$0xff] %v4371_v57  ;;  %v5678_v56 = vld [vmem:[#allocation56_spill] sm:$0xff] }
 0x152   :  { %v736_v39 = vadd.f32 %v720_v25, %v576_v37  ;;  %v995_v3 = vrot.slane %v4264_v49, %v4137_v51  ;;  %v1357_v60 = vmul.f32 %v1299_v9, %v5672_v14  ;;  %v1042_v32 = vmul.f32 %v999_v17, %v5673_v58  ;;  %v5674_v25 = vld [vmem:[#allocation75_spill] sm:$0xff] }
 0x153   :  { %v1196_v13 = vmul.f32 %v1135_v21, %v5674_v25  ;;  %v1159_v20 = vrot.slane %v4239_v26, %v4158_v45  ;;  %v5677_v37 = vrot.slane %v4251_v31, %v4173_v44  ;;  %v897_v27 = vadd.f32 %v881_v53, %v737_v42 }
 0x154   :  { %v991_v28 = vrot.slane %v4277_v23, %v4137_v51  ;;  %v1003_v9 = vrot.slane %v4289_v16, %v4137_v51  ;;  %v1373_v17 = vadd.f32 %v1357_v60, %v1213_v0  ;;  %v898_v58 = vadd.f32 %v882_v6, %v738_v18  ;;  %v5680_v6 = vld [vmem:[#allocation5_spill] sm:$0xff]  ;;  %v5682_v18 = vld [vmem:[#allocation63_spill] sm:$0xff] }
 0x155   :  { %965 = vperm.xlu1 %3379, %v3853_v36   ;;  %v4352_v30 = vpop.permute.xlu1 %785  ;;  %v1356_v48 = vmul.f32 %v5677_v37, %v5676_v54  ;;  %v1052_v21 = vadd.f32 %v1036_v46, %v892_v15  ;;  %v1202_v22 = vmul.f32 %v1159_v20, %v4217_v29  ;;  %v739_v61 = vadd.f32 %v723_v11, %v579_v12  ;;  %v5681_v12 = vld [vmem:[#allocation62_spill] sm:$0xff]  ;;  %v4403_v11 = vpop.permute.xlu0 %1253 }
 0x156   :  { %5665 = vst [vmem:[#allocation98_spill] sm:$0xff] %v4352_v30  ;;  %v880_v14 = vmul.f32 %v831_v41, %v5678_v56  ;;  %v1151_v25 = vrot.slane %v4277_v23, %v4158_v45  ;;  %v1155_v42 = vrot.slane %v4264_v49, %v4158_v45  ;;  %v5679_v53 = vmov 5   ;;  %5683 = vst [vmem:[#allocation5_spill] sm:$0xff] %v4403_v11  ;;  %v5686_v29 = vld [vmem:[#allocation58_spill] sm:$0xff] }
 0x157   :  { %v1058_v37 = vadd.f32 %v1042_v32, %v898_v58  ;;  %v1212_v54 = vadd.f32 %v1196_v13, %v1052_v21  ;;  %v1315_v0 = vrot.slane %v4264_v49, %v4173_v44  ;;  %v1319_v46 = vrot.slane %v4239_v26, %v4173_v44  ;;  %v5685_v13 = vld [vmem:[#allocation70_spill] sm:$0xff] }
 0x158   :  { %v883_v15 = vmul.f32 %v843_v62, %v5681_v12  ;;  %v1041_v41 = vmul.f32 %v995_v3, %v5682_v18  ;;  %v1479_v60 = vrot.slane %v4239_v26, %v4176_v52  ;;  %v1163_v58 = vrot.slane %v4289_v16, %v4158_v45  ;;  %v5688_v18 = vld [vmem:[#allocation74_spill] sm:$0xff] }
 0x159   :  { %969 = vperm.xlu1 %3379, %v3832_v34   ;;  %v1040_v20 = vmul.f32 %v991_v28, %v5685_v13  ;;  %v1218_v21 = vadd.f32 %v1202_v22, %v1058_v37  ;;  %v1323_v62 = vrot.slane %v4289_v16, %v4173_v44  ;;  %v896_v3 = vadd.f32 %v880_v14, %v736_v39  ;;  %v5689_v39 = vld [vmem:[#allocation60_spill] sm:$0xff] }
 0x15a   :  { %v4379_v47 = vpop.permute.xlu1 %1405  ;;  %v5687_v12 = vrot.slane %v4251_v31, %v4176_v52  ;;  %v1043_v56 = vmul.f32 %v1003_v9, %v5688_v18  ;;  %v1471_v59 = vrot.slane %v4277_v23, %v4176_v52  ;;  %v1372_v1 = vadd.f32 %v1356_v48, %v1212_v54 }
 0x15b   :  { %5675 = vst [vmem:[#allocation100_spill] sm:$0xff] %v4379_v47  ;;  %v1200_v22 = vmul.f32 %v1151_v25, %v4168_v24  ;;  %v1201_v28 = vmul.f32 %v1155_v42, %v4189_v7  ;;  %v1362_v37 = vmul.f32 %v1319_v46, %v4403_v11  ;;  %v1517_v14 = vmul.f32 %v1459_v43, %v5689_v39  ;;  %v5691_v46 = vld [vmem:[#allocation17_spill] sm:$0xff] }
 0x15c   :  { %v1516_v26 = vmul.f32 %v5687_v12, %v5686_v29  ;;  %v899_v13 = vadd.f32 %v883_v15, %v739_v61  ;;  %v1057_v63 = vadd.f32 %v1041_v41, %v897_v27  ;;  %v1203_v31 = vmul.f32 %v1163_v58, %v4222_v50 }
 0x15d   :  { %3381 = vset.pattern.permute.xlu1 %v5679_v53  ;;  %v1311_v53 = vrot.slane %v4277_v23, %v4173_v44  ;;  %v1056_v9 = vadd.f32 %v1040_v20, %v896_v3  ;;  %v1361_v23 = vmul.f32 %v1315_v0, %v4371_v57  ;;  %v1378_v54 = vadd.f32 %v1362_v37, %v1218_v21 }
 0x15e   :  { %1121 = vperm.xlu1 %3381, %v5680_v6   ;;  %v1059_v48 = vadd.f32 %v1043_v56, %v899_v13  ;;  %v1475_v42 = vrot.slane %v4264_v49, %v4176_v52  ;;  %v1522_v11 = vmul.f32 %v1479_v60, %v5691_v46  ;;  %v1363_v43 = vmul.f32 %v1323_v62, %v4329_v2  ;;  %v5722_v2 = vld [vmem:[#allocation31_spill] sm:$0xff] }
 0x15f   :  { %v4409_v32 = vpop.permute.xlu1 %789  ;;  %v1360_v25 = vmul.f32 %v1311_v53, %v4246_v19  ;;  %v1532_v61 = vadd.f32 %v1516_v26, %v1372_v1  ;;  %v1216_v27 = vadd.f32 %v1200_v22, %v1056_v9  ;;  %v1217_v15 = vadd.f32 %v1201_v28, %v1057_v63  ;;  %v5693_v63 = vld [vmem:[#allocation16_spill] sm:$0xff]  ;;  %v3394_v26 = vld [vmem:[%s5396_s3] sm:$0xff]  }
 0x160   :  { %5684 = vst [vmem:[#allocation101_spill] sm:$0xff] %v4409_v32  ;;  %v1520_v41 = vmul.f32 %v1471_v59, %v4379_v47  ;;  %v1533_v58 = vadd.f32 %v1517_v14, %v1373_v17  ;;  %v1219_v0 = vadd.f32 %v1203_v31, %v1059_v48  ;;  %v1483_v56 = vrot.slane %v4289_v16, %v4176_v52  ;;  %v4567_v47 = vpop.permute.xlu0 %1269 }
 0x161   :  { %v1377_v13 = vadd.f32 %v1361_v23, %v1217_v15  ;;  %v1538_v49 = vadd.f32 %v1522_v11, %v1378_v54  ;;  %v1376_v20 = vadd.f32 %v1360_v25, %v1216_v27  ;;  %3401 = vtanh.f32 %v1532_v61  ;;  %3259 = vmatprep.subr.bf16.mxu1 %v3394_v26  ;;  %5726 = vst [vmem:[#allocation122_spill] sm:$0xff] %v4567_v47 }
 0x162   :  { %1125 = vperm.xlu1 %3381, %v3853_v36   ;;  %v1379_v21 = vadd.f32 %v1363_v43, %v1219_v0  ;;  %v1521_v59 = vmul.f32 %v1475_v42, %v5693_v63  ;;  %3403 = vtanh.f32 %v1533_v58  ;;  %3260 = vmatpush3.bf16.msra.mxu1 %v3394_v26  ;;  %v4477_v42 = vpop.f32.mrf.mxu0 }
 0x163   :  { %v4429_v12 = vpop.permute.xlu1 %793  ;;  %v1536_v53 = vadd.f32 %v1520_v41, %v1376_v20  ;;  %3405 = vtanh.f32 %v1538_v49  ;;  %5704 = vst [vmem:[#allocation112_spill] sm:$0xff] %v4477_v42  ;;  %v5711_v20 = vld [vmem:[#allocation79_spill] sm:$0xff] }
 0x164   :  { %5690 = vst [vmem:[#allocation58_spill] sm:$0xff] %v4429_v12  ;;  %v4479_v43 = vpop.f32.mrf.mxu0 }
 0x165   :  { %5705 = vst [vmem:[#allocation113_spill] sm:$0xff] %v4479_v43  ;;  %v4485_v27 = vadd.f32 %v3884_v40, %v4479_v43 }
 0x166   :  { %3383 = vset.pattern.permute.xlu1 %v5646_v5  ;;  %v4487_v15 = vpop.f32.mrf.mxu0 }
 0x167   :  { %1277 = vperm.xlu1 %3383, %v3938_v55   ;;  %v1537_v55 = vadd.f32 %v1521_v59, %v1377_v13  ;;  %5707 = vst [vmem:[#allocation115_spill] sm:$0xff] %v4487_v15  ;;  %v367_v41 = vrot.slane %v4485_v27, %v3707_v10  ;;  %v527_v58 = vrot.slane %v4485_v27, %v4101_v33  ;;  %v5710_v13 = vld [vmem:[#allocation29_spill] sm:$0xff] }
 0x168   :  { %v4442_v60 = vpop.permute.xlu1 %1417 }
 0x169   :  { %5692 = vst [vmem:[#allocation60_spill] sm:$0xff] %v4442_v60  ;;  %v1523_v1 = vmul.f32 %v1483_v56, %v4442_v60  ;;  %v4495_v56 = vpop.f32.mrf.mxu0  ;;  %v404_v49 = vmul.f32 %v367_v41, %v5710_v13  ;;  %v4525_v41 = vadd.f32 %v4487_v15, %v3884_v40  ;;  %v5720_v13 = vld [vmem:[#allocation66_spill] sm:$0xff] }
 0x16a   :  { %5709 = vst [vmem:[#allocation117_spill] sm:$0xff] %v4495_v56 }
 0x16b   :  { %v1539_v5 = vadd.f32 %v1523_v1, %v1379_v21  ;;  %1285 = vperm.xlu1 %3383, %v3853_v36   ;;  %v564_v21 = vmul.f32 %v527_v58, %v5711_v20  ;;  %v687_v1 = vrot.slane %v4485_v27, %v4118_v8  ;;  %v1167_v58 = vrot.slane %v4485_v27, %v4158_v45 }
 0x16c   :  { %v379_v46 = vrot.slane %v4525_v41, %v3707_v10 }
 0x16d   :  { %3407 = vtanh.f32 %v1539_v5  ;;  %v4447_v16 = vpop.permute.xlu1 %945  ;;  %v580_v5 = vadd.f32 %v564_v21, %v404_v49 }
 0x16e   :  { %5694 = vst [vmem:[#allocation102_spill] sm:$0xff] %v4447_v16  ;;  %3409 = vtanh.f32 %v1536_v53  ;;  %v3402_v62 = vpop.eup %3401  ;;  %v4505_v53 = vadd.f32 %v3884_v40, %v4495_v56 }
 0x16f   :  { %1289 = vperm.xlu1 %3383, %v3832_v34   ;;  %3411 = vtanh.f32 %v1537_v55  ;;  %v3404_v3 = vpop.eup %3403  ;;  %v5713_v55 = vld [vmem:[#allocation42_spill] sm:$0xff] }
 0x170   :  { %v3406_v22 = vpop.eup %3405  ;;  %v1564_v34 = vpack.c.bf16 %v3404_v3, %v3402_v62  ;;  %v724_v62 = vmul.f32 %v687_v1, %v5713_v55  ;;  %v847_v3 = vrot.slane %v4485_v27, %v4134_v4  ;;  %v691_v15 = vrot.slane %v4505_v53, %v4118_v8 }
 0x171   :  { %v4450_v17 = vpop.permute.xlu1 %949 }
 0x172   :  { %5695 = vst [vmem:[#allocation103_spill] sm:$0xff] %v4450_v17 }
 0x173   :  { %3385 = vset.pattern.permute.xlu1 %v5657_v35 }
 0x174   :  { %1441 = vperm.xlu1 %3385, %v5680_v6  }
 0x176   :  { %v4454_v11 = vpop.permute.xlu1 %314 }
 0x177   :  { %5696 = vst [vmem:[#allocation104_spill] sm:$0xff] %v4454_v11 }
 0x178   :  { %1445 = vperm.xlu1 %3385, %v3853_v36  }
 0x17a   :  { %v3408_v28 = vpop.eup %3407 }
 0x17b   :  { %v3410_v37 = vpop.eup %3409  ;;  %v4460_v14 = vpop.permute.xlu1 %477  ;;  %v1567_v35 = vpack.c.bf16 %v3408_v28, %v3406_v22  ;;  %v4514_v22 = vadd.f32 %v4477_v42, %v3884_v40  ;;  %v371_v28 = vrot.slane %v4505_v53, %v3707_v10 }
 0x17c   :  { %5697 = vst [vmem:[#allocation105_spill] sm:$0xff] %v4460_v14  ;;  %1586 = vrot.lane.b32.xlu1 %v1564_v34, %s3622_s14  ;;  %v3412_v6 = vpop.eup %3411  ;;  %v531_v34 = vrot.slane %v4505_v53, %v4101_v33 }
 0x17d   :  { %1592 = vrot.lane.b32.xlu0 %v1567_v35, %s3622_s14  ;;  %v1566_v31 = vpack.c.bf16 %v3412_v6, %v3410_v37  ;;  %v740_v37 = vadd.f32 %v724_v62, %v580_v5  ;;  %v5715_v35 = vld [vmem:[#allocation53_spill] sm:$0xff]  ;;  %v375_v49 = vrot.slane %v4514_v22, %v3707_v10  ;;  %v535_v21 = vrot.slane %v4514_v22, %v4101_v33 }
 0x17e   :  { %v884_v6 = vmul.f32 %v847_v3, %v5715_v35  ;;  %v5717_v5 = vld [vmem:[#allocation77_spill] sm:$0xff]  ;;  %v5718_v3 = vld [vmem:[#allocation10_spill] sm:$0xff]  ;;  %v1175_v43 = vrot.slane %v4514_v22, %v4158_v45  ;;  %v695_v20 = vrot.slane %v4514_v22, %v4118_v8  ;;  %v1015_v18 = vrot.slane %v4514_v22, %v4137_v51 }
 0x17f   :  { %v4464_v36 = vpop.permute.xlu1 %481  ;;  %v405_v62 = vmul.f32 %v371_v28, %v5717_v5  ;;  %v565_v56 = vmul.f32 %v531_v34, %v5718_v3  ;;  %v5719_v35 = vld [vmem:[#allocation85_spill] sm:$0xff]  ;;  %v539_v28 = vrot.slane %v4525_v41, %v4101_v33  ;;  %v5721_v34 = vld [vmem:[#allocation91_spill] sm:$0xff]  ;;  %v851_v5 = vrot.slane %v4505_v53, %v4134_v4 }
 0x180   :  { %5698 = vst [vmem:[#allocation106_spill] sm:$0xff] %v4464_v36  ;;  %1590 = vrot.lane.b32.xlu1 %v1566_v31, %s3622_s14  ;;  %v1007_v31 = vrot.slane %v4485_v27, %v4137_v51  ;;  %v900_v42 = vadd.f32 %v884_v6, %v740_v37  ;;  %v566_v55 = vmul.f32 %v535_v21, %v5719_v35  ;;  %v5723_v6 = vld [vmem:[#allocation95_spill] sm:$0xff] }
 0x181   :  { %v725_v3 = vmul.f32 %v691_v15, %v5721_v34  ;;  %v406_v37 = vmul.f32 %v375_v49, %v5722_v2  ;;  %v726_v21 = vmul.f32 %v695_v20, %v5723_v6  ;;  %v855_v35 = vrot.slane %v4514_v22, %v4134_v4  ;;  %v5725_v49 = vld [vmem:[#allocation78_spill] sm:$0xff] }
 0x182   :  { %v1044_v60 = vmul.f32 %v1007_v31, %v5720_v13  ;;  %v1011_v31 = vrot.slane %v4505_v53, %v4137_v51  ;;  %v581_v13 = vadd.f32 %v565_v56, %v405_v62  ;;  %v885_v50 = vmul.f32 %v851_v5, %v4352_v30 }
 0x183   :  { %v1327_v15 = vrot.slane %v4485_v27, %v4173_v44  ;;  %v1204_v2 = vmul.f32 %v1167_v58, %v5725_v49  ;;  %v582_v20 = vadd.f32 %v566_v55, %v406_v37  ;;  %v886_v6 = vmul.f32 %v855_v35, %v4409_v32  ;;  %v5728_v37 = vld [vmem:[#allocation11_spill] sm:$0xff] }
 0x184   :  { %v4467_v9 = vpop.permute.xlu1 %1105  ;;  %v1060_v63 = vadd.f32 %v1044_v60, %v900_v42  ;;  %v741_v57 = vadd.f32 %v725_v3, %v581_v13  ;;  %v699_v56 = vrot.slane %v4525_v41, %v4118_v8  ;;  %v1045_v5 = vmul.f32 %v1011_v31, %v4447_v16  ;;  %v5727_v60 = vld [vmem:[#allocation83_spill] sm:$0xff] }
 0x185   :  { %5699 = vst [vmem:[#allocation107_spill] sm:$0xff] %v4467_v9  ;;  %v1171_v62 = vrot.slane %v4505_v53, %v4158_v45  ;;  %v742_v30 = vadd.f32 %v726_v21, %v582_v20  ;;  %v1046_v19 = vmul.f32 %v1015_v18, %v4450_v17  ;;  %v1331_v55 = vrot.slane %v4505_v53, %v4173_v44 }
 0x186   :  { %v407_v42 = vmul.f32 %v379_v46, %v5727_v60  ;;  %v901_v35 = vadd.f32 %v885_v50, %v741_v57  ;;  %v1487_v3 = vrot.slane %v4485_v27, %v4176_v52  ;;  %v567_v31 = vmul.f32 %v539_v28, %v5728_v37  ;;  %v4590_v27 = vpop.permute.xlu0 %1281  ;;  %v5800_v60 = vld [vmem:[#allocation47_spill] sm:$0xff] }
 0x187   :  { %v1205_v13 = vmul.f32 %v1171_v62, %v4467_v9  ;;  %v902_v32 = vadd.f32 %v886_v6, %v742_v30  ;;  %v859_v21 = vrot.slane %v4525_v41, %v4134_v4  ;;  %v1220_v18 = vadd.f32 %v1204_v2, %v1060_v63  ;;  %5731 = vst [vmem:[#allocation124_spill] sm:$0xff] %v4590_v27  ;;  %v5732_v63 = vld [vmem:[#allocation80_spill] sm:$0xff] }
 0x188   :  { %v583_v9 = vadd.f32 %v567_v31, %v407_v42  ;;  %v1491_v2 = vrot.slane %v4505_v53, %v4176_v52  ;;  %v1206_v6 = vmul.f32 %v1175_v43, %v5732_v63  ;;  %v1179_v53 = vrot.slane %v4525_v41, %v4158_v45 }
 0x189   :  { %v4469_v23 = vpop.permute.xlu1 %324  ;;  %v1062_v57 = vadd.f32 %v1046_v19, %v902_v32  ;;  %v887_v30 = vmul.f32 %v859_v21, %v4429_v12  ;;  %v1339_v31 = vrot.slane %v4525_v41, %v4173_v44 }
 0x18a   :  { %5700 = vst [vmem:[#allocation108_spill] sm:$0xff] %v4469_v23 }
 0x18b   :  { %v1222_v42 = vadd.f32 %v1206_v6, %v1062_v57 }
 0x18e   :  { %v4471_v54 = vpop.permute.xlu1 %485 }
 0x18f   :  { %5701 = vst [vmem:[#allocation109_spill] sm:$0xff] %v4471_v54 }
 0x192   :  { %v4473_v25 = vpop.permute.xlu1 %489 }
 0x193   :  { %5702 = vst [vmem:[#allocation110_spill] sm:$0xff] %v4473_v25 }
 0x197   :  { %v4475_v48 = vpop.permute.xlu1 %1113 }
 0x198   :  { %5703 = vst [vmem:[#allocation111_spill] sm:$0xff] %v4475_v48 }
 0x19c   :  { %v4481_v61 = vpop.permute.xlu1 %637 }
 0x19d   :  { %5706 = vst [vmem:[#allocation114_spill] sm:$0xff] %v4481_v61 }
 0x1a1   :  { %v4493_v0 = vpop.permute.xlu1 %1261 }
 0x1a2   :  { %5708 = vst [vmem:[#allocation116_spill] sm:$0xff] %v4493_v0  ;;  %v1364_v58 = vmul.f32 %v1327_v15, %v4493_v0  ;;  %v5730_v15 = vld [vmem:[#allocation96_spill] sm:$0xff]  ;;  %v1061_v0 = vadd.f32 %v1045_v5, %v901_v35 }
 0x1a3   :  { %v727_v17 = vmul.f32 %v699_v56, %v5730_v15  ;;  %v5795_v15 = vld [vmem:[#allocation48_spill] sm:$0xff] }
 0x1a4   :  { %v1380_v62 = vadd.f32 %v1364_v58, %v1220_v18  ;;  %v1221_v28 = vadd.f32 %v1205_v13, %v1061_v0  ;;  %v1335_v58 = vrot.slane %v4514_v22, %v4173_v44  ;;  %v4606_v13 = vpop.permute.xlu0 %1429  ;;  %v1495_v18 = vrot.slane %v4514_v22, %v4176_v52 }
 0x1a5   :  { %v4501_v59 = vpop.permute.xlu1 %1265  ;;  %v743_v5 = vadd.f32 %v727_v17, %v583_v9  ;;  %5734 = vst [vmem:[#allocation126_spill] sm:$0xff] %v4606_v13  ;;  %v5735_v17 = vld [vmem:[#allocation68_spill] sm:$0xff] }
 0x1a6   :  { %5712 = vst [vmem:[#allocation118_spill] sm:$0xff] %v4501_v59  ;;  %v1365_v46 = vmul.f32 %v1331_v55, %v4501_v59  ;;  %v1019_v55 = vrot.slane %v4525_v41, %v4137_v51  ;;  %v1366_v43 = vmul.f32 %v1335_v58, %v4567_v47 }
 0x1a7   :  { %v903_v0 = vadd.f32 %v887_v30, %v743_v5 }
 0x1a8   :  { %v1381_v19 = vadd.f32 %v1365_v46, %v1221_v28  ;;  %v1047_v9 = vmul.f32 %v1019_v55, %v5735_v17  ;;  %v1382_v46 = vadd.f32 %v1366_v43, %v1222_v42  ;;  %v1499_v28 = vrot.slane %v4525_v41, %v4176_v52  ;;  %v5792_v17 = vld [vmem:[#allocation13_spill] sm:$0xff] }
 0x1aa   :  { %v4510_v26 = vpop.permute.xlu1 %649 }
 0x1ab   :  { %5714 = vst [vmem:[#allocation119_spill] sm:$0xff] %v4510_v26 }
 0x1af   :  { %v4533_v1 = vpop.permute.xlu1 %1273 }
 0x1b0   :  { %5716 = vst [vmem:[#allocation120_spill] sm:$0xff] %v4533_v1  ;;  %v1367_v57 = vmul.f32 %v1339_v31, %v4533_v1  ;;  %v5789_v1 = vld [vmem:[#allocation32_spill] sm:$0xff] }
 0x1b4   :  { %v4563_v34 = vpop.permute.xlu1 %797 }
 0x1b5   :  { %5724 = vst [vmem:[#allocation121_spill] sm:$0xff] %v4563_v34 }
 0x1b9   :  { %v4585_v20 = vpop.permute.xlu1 %1421 }
 0x1ba   :  { %5729 = vst [vmem:[#allocation123_spill] sm:$0xff] %v4585_v20  ;;  %v1524_v50 = vmul.f32 %v1487_v3, %v4585_v20  ;;  %v1207_v3 = vmul.f32 %v1179_v53, %v4475_v48 }
 0x1bc   :  { %v1540_v49 = vadd.f32 %v1524_v50, %v1380_v62  ;;  %v1063_v50 = vadd.f32 %v1047_v9, %v903_v0  ;;  %v1526_v62 = vmul.f32 %v1495_v18, %v4606_v13 }
 0x1bd   :  { %v4596_v56 = vpop.permute.xlu1 %1425 }
 0x1be   :  { %5733 = vst [vmem:[#allocation125_spill] sm:$0xff] %v4596_v56  ;;  %v1525_v32 = vmul.f32 %v1491_v2, %v4596_v56  ;;  %3413 = vtanh.f32 %v1540_v49  ;;  %v4617_v49 = vpop.f32.mrf.mxu1  ;;  %v1223_v30 = vadd.f32 %v1207_v3, %v1063_v50  ;;  %v1542_v2 = vadd.f32 %v1526_v62, %v1382_v46  ;;  %v5790_v56 = vld [vmem:[#allocation12_spill] sm:$0xff] }
 0x1bf   :  { %5737 = vst [vmem:[#allocation128_spill] sm:$0xff] %v4617_v49 }
 0x1c0   :  { %v1541_v35 = vadd.f32 %v1525_v32, %v1381_v19  ;;  %v1383_v5 = vadd.f32 %v1367_v57, %v1223_v30  ;;  %v4625_v19 = vpop.f32.mrf.mxu1 }
 0x1c1   :  { %5739 = vst [vmem:[#allocation130_spill] sm:$0xff] %v4625_v19  ;;  %v4644_v3 = vadd.f32 %v3884_v40, %v4625_v19 }
 0x1c2   :  { %3415 = vtanh.f32 %v1541_v35  ;;  %v4612_v21 = vpop.permute.xlu1 %809  ;;  %v4629_v58 = vpop.f32.mrf.mxu1 }
 0x1c3   :  { %5736 = vst [vmem:[#allocation127_spill] sm:$0xff] %v4612_v21  ;;  %3417 = vtanh.f32 %v1542_v2  ;;  %5741 = vst [vmem:[#allocation132_spill] sm:$0xff] %v4629_v58  ;;  %v4648_v18 = vadd.f32 %v4629_v58, %v3884_v40  ;;  %v543_v62 = vrot.slane %v4644_v3, %v4101_v33 }
 0x1c4   :  { %v4633_v35 = vpop.f32.mrf.mxu1 }
 0x1c5   :  { %5743 = vst [vmem:[#allocation134_spill] sm:$0xff] %v4633_v35  ;;  %v4638_v43 = vadd.f32 %v3884_v40, %v4633_v35  ;;  %v715_v19 = vrot.slane %v4648_v18, %v4118_v8 }
 0x1c7   :  { %v4622_v6 = vpop.permute.xlu1 %1433  ;;  %v387_v46 = vrot.slane %v4638_v43, %v3707_v10  ;;  %v547_v50 = vrot.slane %v4638_v43, %v4101_v33  ;;  %v707_v58 = vrot.slane %v4638_v43, %v4118_v8 }
 0x1c8   :  { %5738 = vst [vmem:[#allocation129_spill] sm:$0xff] %v4622_v6  ;;  %v1527_v55 = vmul.f32 %v1499_v28, %v4622_v6 }
 0x1c9   :  { %v569_v28 = vmul.f32 %v547_v50, %v4464_v36 }
 0x1ca   :  { %v1543_v22 = vadd.f32 %v1527_v55, %v1383_v5  ;;  %v383_v5 = vrot.slane %v4644_v3, %v3707_v10  ;;  %v568_v55 = vmul.f32 %v543_v62, %v4460_v14 }
 0x1cb   :  { %v3414_v42 = vpop.eup %3413 }
 0x1cc   :  { %3419 = vtanh.f32 %v1543_v22  ;;  %v4627_v32 = vpop.permute.xlu1 %957  ;;  %v703_v22 = vrot.slane %v4644_v3, %v4118_v8  ;;  %v408_v50 = vmul.f32 %v383_v5, %v4454_v11  ;;  %v1023_v5 = vrot.slane %v4644_v3, %v4137_v51 }
 0x1cd   :  { %5740 = vst [vmem:[#allocation131_spill] sm:$0xff] %v4627_v32 }
 0x1ce   :  { %v728_v62 = vmul.f32 %v703_v22, %v4481_v61  ;;  %v5749_v61 = vld [vmem:[#allocation35_spill] sm:$0xff] }
 0x1cf   :  { %v3416_v0 = vpop.eup %3415 }
 0x1d0   :  { %v4631_v53 = vpop.permute.xlu1 %965  ;;  %v1568_v41 = vpack.c.bf16 %v3416_v0, %v3414_v42  ;;  %v3418_v31 = vpop.eup %3417  ;;  %v4666_v42 = vadd.f32 %v4617_v49, %v3884_v40  ;;  %v5746_v0 = vld [vmem:[#allocation33_spill] sm:$0xff]  ;;  %v863_v40 = vrot.slane %v4644_v3, %v4134_v4  ;;  %v584_v49 = vadd.f32 %v568_v55, %v408_v50 }
 0x1d1   :  { %5742 = vst [vmem:[#allocation133_spill] sm:$0xff] %v4631_v53  ;;  %v731_v55 = vmul.f32 %v715_v19, %v4510_v26  ;;  %v875_v50 = vrot.slane %v4648_v18, %v4134_v4 }
 0x1d2   :  { %1594 = vrot.lane.b32.xlu1 %v1568_v41, %s3622_s14  ;;  %v409_v41 = vmul.f32 %v387_v46, %v5746_v0  ;;  %v5748_v0 = vld [vmem:[#allocation44_spill] sm:$0xff]  ;;  %v551_v22 = vrot.slane %v4666_v42, %v4101_v33  ;;  %v711_v26 = vrot.slane %v4666_v42, %v4118_v8 }
 0x1d3   :  { %v729_v14 = vmul.f32 %v707_v58, %v5748_v0  ;;  %v391_v0 = vrot.slane %v4666_v42, %v3707_v10  ;;  %v891_v19 = vmul.f32 %v875_v50, %v4612_v21  ;;  %v5753_v21 = vld [vmem:[#allocation81_spill] sm:$0xff] }
 0x1d4   :  { %v4640_v9 = vpop.permute.xlu1 %969  ;;  %v585_v46 = vadd.f32 %v569_v28, %v409_v41  ;;  %v867_v28 = vrot.slane %v4638_v43, %v4134_v4  ;;  %v744_v41 = vadd.f32 %v728_v62, %v584_v49  ;;  %v1035_v62 = vrot.slane %v4648_v18, %v4137_v51 }
 0x1d5   :  { %5744 = vst [vmem:[#allocation135_spill] sm:$0xff] %v4640_v9 }
 0x1d6   :  { %v745_v58 = vadd.f32 %v729_v14, %v585_v46  ;;  %v5751_v14 = vld [vmem:[#allocation55_spill] sm:$0xff] }
 0x1d7   :  { %v889_v46 = vmul.f32 %v867_v28, %v5751_v14  ;;  %v1195_v28 = vrot.slane %v4648_v18, %v4158_v45 }
 0x1d9   :  { %v3420_v57 = vpop.eup %3419  ;;  %v4656_v30 = vpop.permute.xlu1 %1121 }
 0x1da   :  { %5745 = vst [vmem:[#allocation136_spill] sm:$0xff] %v4656_v30  ;;  %v1569_v2 = vpack.c.bf16 %v3420_v57, %v3418_v31  ;;  %v395_v31 = vrot.slane %v4648_v18, %v3707_v10  ;;  %v555_v57 = vrot.slane %v4648_v18, %v4101_v33 }
 0x1dc   :  { %1596 = vrot.lane.b32.xlu0 %v1569_v2, %s3622_s14  ;;  %v571_v36 = vmul.f32 %v555_v57, %v4473_v25  ;;  %v888_v2 = vmul.f32 %v863_v40, %v4563_v34  ;;  %v411_v11 = vmul.f32 %v395_v31, %v5749_v61  ;;  %v1048_v57 = vmul.f32 %v1023_v5, %v4627_v32 }
 0x1dd   :  { %v4680_v35 = vpop.permute.xlu1 %1125  ;;  %v1183_v40 = vrot.slane %v4644_v3, %v4158_v45  ;;  %v570_v31 = vmul.f32 %v551_v22, %v4471_v54  ;;  %v410_v5 = vmul.f32 %v391_v0, %v4469_v23  ;;  %v1027_v32 = vrot.slane %v4638_v43, %v4137_v51 }
 0x1de   :  { %5747 = vst [vmem:[#allocation137_spill] sm:$0xff] %v4680_v35  ;;  %v587_v25 = vadd.f32 %v571_v36, %v411_v11  ;;  %v904_v49 = vadd.f32 %v888_v2, %v744_v41  ;;  %v1051_v11 = vmul.f32 %v1035_v62, %v4640_v9  ;;  %v1343_v36 = vrot.slane %v4644_v3, %v4173_v44 }
 0x1df   :  { %v586_v2 = vadd.f32 %v570_v31, %v410_v5  ;;  %v905_v41 = vadd.f32 %v889_v46, %v745_v58  ;;  %v1187_v0 = vrot.slane %v4638_v43, %v4158_v45  ;;  %v1208_v54 = vmul.f32 %v1183_v40, %v5753_v21  ;;  %v5756_v31 = vld [vmem:[#allocation71_spill] sm:$0xff]  ;;  %v5758_v21 = vld [vmem:[#allocation82_spill] sm:$0xff] }
 0x1e0   :  { %v747_v22 = vadd.f32 %v731_v55, %v587_v25  ;;  %v1064_v61 = vadd.f32 %v1048_v57, %v904_v49  ;;  %v4725_v55 = vpop.permute.xlu0 %1437  ;;  %v5755_v57 = vld [vmem:[#allocation46_spill] sm:$0xff]  ;;  %v871_v58 = vrot.slane %v4666_v42, %v4134_v4  ;;  %v1049_v62 = vmul.f32 %v1027_v32, %v5756_v31 }
 0x1e1   :  { %5754 = vst [vmem:[#allocation140_spill] sm:$0xff] %v4725_v55  ;;  %v730_v49 = vmul.f32 %v711_v26, %v5755_v57  ;;  %v1209_v5 = vmul.f32 %v1187_v0, %v4656_v30  ;;  %v1355_v40 = vrot.slane %v4648_v18, %v4173_v44  ;;  %v1211_v57 = vmul.f32 %v1195_v28, %v5758_v21  ;;  %v5785_v31 = vld [vmem:[#allocation30_spill] sm:$0xff] }
 0x1e2   :  { %v4703_v34 = vpop.permute.xlu1 %1277  ;;  %v907_v14 = vadd.f32 %v891_v19, %v747_v22  ;;  %v1224_v9 = vadd.f32 %v1208_v54, %v1064_v61  ;;  %v1347_v19 = vrot.slane %v4638_v43, %v4173_v44  ;;  %v1065_v26 = vadd.f32 %v1049_v62, %v905_v41  ;;  %v5759_v61 = vld [vmem:[#allocation57_spill] sm:$0xff] }
 0x1e3   :  { %5750 = vst [vmem:[#allocation138_spill] sm:$0xff] %v4703_v34  ;;  %v1368_v25 = vmul.f32 %v1343_v36, %v4703_v34  ;;  %v746_v22 = vadd.f32 %v730_v49, %v586_v2  ;;  %v1031_v36 = vrot.slane %v4666_v42, %v4137_v51  ;;  %v1503_v32 = vrot.slane %v4644_v3, %v4176_v52 }
 0x1e4   :  { %v1067_v46 = vadd.f32 %v1051_v11, %v907_v14  ;;  %v890_v11 = vmul.f32 %v871_v58, %v5759_v61  ;;  %v1225_v30 = vadd.f32 %v1209_v5, %v1065_v26  ;;  %v1191_v2 = vrot.slane %v4666_v42, %v4158_v45  ;;  %v4752_v3 = vpop.permute.xlu0 %1449  ;;  %v5777_v61 = vld [vmem:[#allocation61_spill] sm:$0xff] }
 0x1e5   :  { %v1384_v14 = vadd.f32 %v1368_v25, %v1224_v9  ;;  %v1050_v0 = vmul.f32 %v1031_v36, %v4631_v53  ;;  %v1528_v41 = vmul.f32 %v1503_v32, %v4725_v55  ;;  %v1351_v49 = vrot.slane %v4666_v42, %v4173_v44  ;;  %5760 = vst [vmem:[#allocation142_spill] sm:$0xff] %v4752_v3 }
 0x1e6   :  { %v4719_v50 = vpop.permute.xlu1 %1285  ;;  %v1227_v28 = vadd.f32 %v1211_v57, %v1067_v46  ;;  %v1369_v62 = vmul.f32 %v1347_v19, %v4590_v27  ;;  %v906_v9 = vadd.f32 %v890_v11, %v746_v22  ;;  %v1210_v25 = vmul.f32 %v1191_v2, %v4680_v35 }
 0x1e7   :  { %5752 = vst [vmem:[#allocation139_spill] sm:$0xff] %v4719_v50  ;;  %v1507_v58 = vrot.slane %v4638_v43, %v4176_v52  ;;  %v1515_v5 = vrot.slane %v4648_v18, %v4176_v52  ;;  %v1370_v57 = vmul.f32 %v1351_v49, %v4719_v50  ;;  %v1511_v43 = vrot.slane %v4666_v42, %v4176_v52 }
 0x1e8   :  { %v1066_v32 = vadd.f32 %v1050_v0, %v906_v9  ;;  %v1385_v46 = vadd.f32 %v1369_v62, %v1225_v30 }
 0x1e9   :  { %v1531_v22 = vmul.f32 %v1515_v5, %v4752_v3  ;;  %v5770_v3 = vld [vmem:[#allocation84_spill] sm:$0xff] }
 0x1ea   :  { %v4738_v34 = vpop.permute.xlu1 %1289  ;;  %v1226_v11 = vadd.f32 %v1210_v25, %v1066_v32 }
 0x1eb   :  { %5757 = vst [vmem:[#allocation141_spill] sm:$0xff] %v4738_v34  ;;  %v1371_v54 = vmul.f32 %v1355_v40, %v4738_v34  ;;  %v1544_v40 = vadd.f32 %v1528_v41, %v1384_v14  ;;  %v1589_v41 = vpop.permute.xlu0 %1588 }
 0x1ec   :  { %v1386_v14 = vadd.f32 %v1370_v57, %v1226_v11 }
 0x1ed   :  { %v1387_v36 = vadd.f32 %v1371_v54, %v1227_v28  ;;  %3421 = vtanh.f32 %v1544_v40 }
 0x1ef   :  { %v4759_v26 = vpop.permute.xlu1 %1441  ;;  %v1547_v34 = vadd.f32 %v1531_v22, %v1387_v36  ;;  %v1593_v28 = vpop.permute.xlu0 %1592  ;;  %v2522_v36 = vld [vmem:[%s5397_s4] sm:$0xf]  ;;  %s3630_s4 = smov 96  }
 0x1f0   :  { %5761 = vst [vmem:[#allocation143_spill] sm:$0xff] %v4759_v26  ;;  %v1529_v19 = vmul.f32 %v1507_v58, %v4759_v26  ;;  %3307 = vmatprep.subr.msk.bf16.mxu0 %vm127_vm0, %v2522_v36  ;;  %v2548_v32 = vsel %vm127_vm0, %v2522_v36, 0  ;;  %v5767_v36 = vld [vmem:[#allocation19_spill] sm:$0xff]  ;;  %v5776_v26 = vld [vmem:[#allocation21_spill] sm:$0xff] }
 0x1f1   :  { %3278 = vmatpush3.bf16.msra.mxu0 %v2548_v32 }
 0x1f2   :  { %v1545_v2 = vadd.f32 %v1529_v19, %v1385_v46  ;;  %v4787_v19 = vld [vmem:[%s5399_s6] sm:$0xf] }
 0x1f3   :  { %v4766_v18 = vpop.permute.xlu1 %1445  ;;  %5763 = vst [vmem:[#allocation145_spill] sm:$0xff] %v4787_v19  ;;  %v4791_v22 = vrot.slane %v4787_v19, %v4101_v33 }
 0x1f4   :  { %5762 = vst [vmem:[#allocation144_spill] sm:$0xff] %v4766_v18  ;;  %3423 = vtanh.f32 %v1545_v2  ;;  %v1530_v54 = vmul.f32 %v1511_v43, %v4766_v18 }
 0x1f5   :  { %3425 = vtanh.f32 %v1547_v34 }
 0x1f6   :  { %v1546_v0 = vadd.f32 %v1530_v54, %v1386_v14 }
 0x1f7   :  { %v1587_v30 = vpop.permute.xlu1 %1586 }
 0x1f8   :  { %3427 = vtanh.f32 %v1546_v0  ;;  %3261 = vmatprep.mubr.msk.bf16.mxu1 %vm1608_vm2, %v1587_v30 }
 0x1f9   :  { %3262 = vmatmul.mubr.msk.bf16.vlgmr.msra.gmra.mxu1 %vm1608_vm2, %v1589_v41 }
 0x1fa   :  { %v3422_v42 = vpop.eup %3421 }
 0x1fb   :  { %v1591_v49 = vpop.permute.xlu1 %1590 }
 0x1fc   :  { %3265 = vmatprep.mubr.msk.bf16.mxu1 %vm1608_vm2, %v1591_v49 }
 0x201   :  { %v3424_v62 = vpop.eup %3423  ;;  %3266 = vmatmul.mubr.msk.bf16.gmra.mxu1 %vm1608_vm2, %v1593_v28 }
 0x202   :  { %v1570_v9 = vpack.c.bf16 %v3424_v62, %v3422_v42  ;;  %v3426_v25 = vpop.eup %3425 }
 0x204   :  { %1598 = vrot.lane.b32.xlu1 %v1570_v9, %s3622_s14  ;;  %v5764_v9 = vld [vmem:[#allocation7_spill] sm:$0xff] }
 0x205   :  { %v3428_v34 = vpop.eup %3427 }
 0x206   :  { %v1571_v58 = vpack.c.bf16 %v3426_v25, %v3428_v34  ;;  %v5765_v34 = vld [vmem:[#allocation9_spill] sm:$0xff] }
 0x208   :  { %1600 = vrot.lane.b32.xlu0 %v1571_v58, %s3622_s14 }
 0x244   :  { %v1595_v5 = vpop.permute.xlu1 %1594 }
 0x245   :  { %3269 = vmatprep.mubr.msk.bf16.mxu1 %vm1608_vm2, %v1595_v5  ;;  %v5766_v5 = vld [vmem:[#allocation37_spill] sm:$0xff] }
 0x24e   :  { %v1597_v40 = vpop.permute.xlu0 %1596 }
 0x24f   :  { %3270 = vmatmul.mubr.msk.bf16.gmra.mxu1 %vm1608_vm2, %v1597_v40 }
 0x276   :  { %v1599_v57 = vpop.permute.xlu1 %1598 }
 0x277   :  { %3273 = vmatprep.mubr.msk.bf16.mxu1 %vm1608_vm2, %v1599_v57  ;;  %v5768_v57 = vld [vmem:[#allocation26_spill] sm:$0xff] }
 0x27a   :  { %v1601_v46 = vpop.permute.xlu0 %1600 }
 0x27b   :  { %3274 = vmatmul.mubr.msk.bf16.gmra.mxu1 %vm1608_vm2, %v1601_v46 }
 0x2b9   :  { %v3263_v11 = vpop.f32.mrf.mxu1 }
 0x2ba   :  { %v1676_v2 = vadd.f32 %v3263_v11, %v4791_v22  ;;  %v5769_v11 = vld [vmem:[#allocation76_spill] sm:$0xff] }
 0x2bb   :  { %v1667_v43 = vpop.f32.mrf.mxu1 }
 0x2bc   :  { %v1741_v14 = vrot.slane %v1676_v2, %v3707_v10  ;;  %v1837_v54 = vrot.slane %v1676_v2, %v4101_v33  ;;  %v1933_v0 = vrot.slane %v1676_v2, %v4118_v8  ;;  %v2029_v30 = vrot.slane %v1676_v2, %v4134_v4 }
 0x2bd   :  { %v2125_v41 = vrot.slane %v1676_v2, %v4137_v51  ;;  %v2221_v49 = vrot.slane %v1676_v2, %v4158_v45  ;;  %v2317_v42 = vrot.slane %v1676_v2, %v4173_v44  ;;  %v2413_v28 = vrot.slane %v1676_v2, %v4176_v52  ;;  %v3264_v62 = vpop.f32.mrf.mxu1 }
 0x2be   :  { %v1796_v25 = vmul.f32 %v1741_v14, %v5764_v9  ;;  %v1892_v58 = vmul.f32 %v1837_v54, %v5765_v34  ;;  %v1988_v40 = vmul.f32 %v1933_v0, %v5766_v5  ;;  %v2084_v32 = vmul.f32 %v2029_v30, %v5767_v36  ;;  %v5771_v0 = vld [vmem:[#allocation14_spill] sm:$0xff]  ;;  %v5772_v34 = vld [vmem:[#allocation20_spill] sm:$0xff] }
 0x2bf   :  { %v2180_v46 = vmul.f32 %v2125_v41, %v5768_v57  ;;  %v4808_v19 = vmul.f32 %v2221_v49, %v5769_v11  ;;  %v4811_v18 = vmul.f32 %v2317_v42, %v5770_v3  ;;  %v4814_v50 = vadd.f32 %v1667_v43, %v4791_v22  ;;  %v1670_v2 = vpop.f32.mrf.mxu1  ;;  %v5773_v11 = vld [vmem:[#allocation23_spill] sm:$0xff] }
 0x2c0   :  { %v1908_v21 = vadd.f32 %v1892_v58, %v1796_v25  ;;  %v4817_v14 = vadd.f32 %v3264_v62, %v4791_v22  ;;  %v4820_v54 = vadd.f32 %v1670_v2, %v4791_v22  ;;  %v4823_v30 = vmul.f32 %v2413_v28, %v5771_v0  ;;  %v5774_v0 = vld [vmem:[#allocation8_spill] sm:$0xff]  ;;  %v5775_v43 = vld [vmem:[#allocation15_spill] sm:$0xff] }
 0x2c1   :  { %v1733_v41 = vrot.slane %v4814_v50, %v3707_v10  ;;  %v1829_v3 = vrot.slane %v4814_v50, %v4101_v33  ;;  %v3267_v42 = vpop.f32.mrf.mxu1  ;;  %v5794_v12 = vrot.slane %v4814_v50, %v4134_v4 }
 0x2c2   :  { %v2004_v62 = vadd.f32 %v1988_v40, %v1908_v21  ;;  %v1745_v9 = vrot.slane %v4817_v14, %v3707_v10  ;;  %v1841_v28 = vrot.slane %v4817_v14, %v4101_v33  ;;  %v1937_v25 = vrot.slane %v4817_v14, %v4118_v8 }
 0x2c3   :  { %v1794_v58 = vmul.f32 %v1733_v41, %v5772_v34  ;;  %v1890_v5 = vmul.f32 %v1829_v3, %v3877_v38  ;;  %v2033_v36 = vrot.slane %v4817_v14, %v4134_v4  ;;  %v2129_v57 = vrot.slane %v4817_v14, %v4137_v51  ;;  %v1683_v21 = vpop.f32.mrf.mxu1 }
 0x2c4   :  { %v2100_v40 = vadd.f32 %v2084_v32, %v2004_v62  ;;  %v1797_v2 = vmul.f32 %v1745_v9, %v5773_v11  ;;  %v1893_v49 = vmul.f32 %v1841_v28, %v5774_v0  ;;  %v1989_v35 = vmul.f32 %v1937_v25, %v5775_v43  ;;  %v5778_v9 = vld [vmem:[#allocation43_spill] sm:$0xff]  ;;  %v5781_v0 = vld [vmem:[#allocation6_spill] sm:$0xff] }
 0x2c5   :  { %v2085_v53 = vmul.f32 %v2033_v36, %v5776_v26  ;;  %v2181_v41 = vmul.f32 %v2129_v57, %v5777_v61  ;;  %v2225_v38 = vrot.slane %v4817_v14, %v4158_v45  ;;  %v2321_v3 = vrot.slane %v4817_v14, %v4173_v44  ;;  %v3268_v34 = vpop.f32.mrf.mxu1  ;;  %v5779_v61 = vld [vmem:[#allocation54_spill] sm:$0xff] }
 0x2c6   :  { %v4854_v55 = vadd.f32 %v2180_v46, %v2100_v40  ;;  %v1909_v32 = vadd.f32 %v1893_v49, %v1797_v2  ;;  %v1737_v43 = vrot.slane %v4820_v54, %v3707_v10  ;;  %v1833_v25 = vrot.slane %v4820_v54, %v4101_v33  ;;  %v5780_v57 = vld [vmem:[#allocation22_spill] sm:$0xff] }
 0x2c7   :  { %v4861_v26 = vmul.f32 %v2225_v38, %v5778_v9  ;;  %v4864_v28 = vmul.f32 %v2321_v3, %v5779_v61  ;;  %v1929_v46 = vrot.slane %v4820_v54, %v4118_v8  ;;  %v1686_v36 = vpop.f32.mrf.mxu1  ;;  %v2025_v11 = vrot.slane %v4820_v54, %v4134_v4 }
 0x2c8   :  { %v2005_v49 = vadd.f32 %v1989_v35, %v1909_v32  ;;  %v1795_v40 = vmul.f32 %v1737_v43, %v5780_v57  ;;  %v4874_v2 = vadd.f32 %v3267_v42, %v4791_v22  ;;  %v1891_v38 = vmul.f32 %v1833_v25, %v5781_v0  ;;  %v5783_v0 = vld [vmem:[#allocation39_spill] sm:$0xff] }
 0x2c9   :  { %v4878_v3 = vadd.f32 %v1683_v21, %v4791_v22  ;;  %v4881_v9 = vadd.f32 %v3268_v34, %v4791_v22  ;;  %v4884_v61 = vadd.f32 %v1686_v36, %v4791_v22  ;;  %v5784_v21 = vld [vmem:[#allocation28_spill] sm:$0xff]  ;;  %v1906_v48 = vadd.f32 %v1890_v5, %v1794_v58 }
 0x2ca   :  { %v2101_v35 = vadd.f32 %v2085_v53, %v2005_v49  ;;  %v1757_v32 = vrot.slane %v4874_v2, %v3707_v10  ;;  %v1853_v43 = vrot.slane %v4874_v2, %v4101_v33  ;;  %v5782_v49 = vld [vmem:[#allocation36_spill] sm:$0xff]  ;;  %v1907_v63 = vadd.f32 %v1891_v38, %v1795_v40 }
 0x2cb   :  { %v1749_v34 = vrot.slane %v4878_v3, %v3707_v10  ;;  %v1845_v25 = vrot.slane %v4878_v3, %v4101_v33  ;;  %v1941_v53 = vrot.slane %v4878_v3, %v4118_v8  ;;  %v2037_v42 = vrot.slane %v4878_v3, %v4134_v4 }
 0x2cc   :  { %v2197_v36 = vadd.f32 %v2181_v41, %v2101_v35  ;;  %v4901_v57 = vmul.f32 %v1757_v32, %v5782_v49  ;;  %v4904_v62 = vmul.f32 %v1853_v43, %v5783_v0  ;;  %v1761_v6 = vrot.slane %v4881_v9, %v3707_v10  ;;  %v5788_v41 = vld [vmem:[#allocation25_spill] sm:$0xff] }
 0x2cd   :  { %v1798_v27 = vmul.f32 %v1749_v34, %v5784_v21  ;;  %v1894_v23 = vmul.f32 %v1845_v25, %v5785_v31  ;;  %v1857_v13 = vrot.slane %v4881_v9, %v4101_v33  ;;  %v1753_v32 = vrot.slane %v4884_v61, %v3707_v10  ;;  %v5786_v21 = vld [vmem:[#allocation27_spill] sm:$0xff]  ;;  %v5787_v34 = vld [vmem:[#allocation41_spill] sm:$0xff] }
 0x2ce   :  { %v1849_v43 = vrot.slane %v4884_v61, %v4101_v33  ;;  %v4923_v31 = vmul.f32 %v1761_v6, %v5786_v21  ;;  %v1945_v49 = vrot.slane %v4884_v61, %v4118_v8  ;;  %v2041_v0 = vrot.slane %v4884_v61, %v4134_v4 }
 0x2cf   :  { %v4926_v25 = vmul.f32 %v1857_v13, %v5787_v34  ;;  %v1799_v35 = vmul.f32 %v1753_v32, %v5788_v41  ;;  %v5791_v6 = vrot.slane %v4814_v50, %v4118_v8  ;;  %v1987_v13 = vmul.f32 %v1929_v46, %v5792_v17  ;;  %v5793_v34 = vld [vmem:[#allocation18_spill] sm:$0xff]  ;;  %v5798_v32 = vld [vmem:[#allocation75_spill] sm:$0xff] }
 0x2d0   :  { %v1895_v47 = vmul.f32 %v1849_v43, %v5789_v1  ;;  %v2082_v20 = vmul.f32 %v5794_v12, %v5793_v34  ;;  %v2083_v59 = vmul.f32 %v2025_v11, %v5795_v15  ;;  %v2117_v41 = vrot.slane %v4814_v50, %v4137_v51  ;;  %v5796_v15 = vld [vmem:[#allocation59_spill] sm:$0xff]  ;;  %v5797_v11 = vld [vmem:[#allocation24_spill] sm:$0xff] }
 0x2d1   :  { %v1986_v21 = vmul.f32 %v5791_v6, %v5790_v56  ;;  %v2121_v1 = vrot.slane %v4820_v54, %v4137_v51  ;;  %v2213_v58 = vrot.slane %v4814_v50, %v4158_v45  ;;  %v2217_v56 = vrot.slane %v4820_v54, %v4158_v45  ;;  %v5799_v6 = vld [vmem:[#allocation34_spill] sm:$0xff] }
 0x2d2   :  { %v2003_v5 = vadd.f32 %v1987_v13, %v1907_v63  ;;  %v2309_v46 = vrot.slane %v4814_v50, %v4173_v44  ;;  %v2313_v12 = vrot.slane %v4820_v54, %v4173_v44  ;;  %v2178_v40 = vmul.f32 %v2117_v41, %v5796_v15 }
 0x2d3   :  { %v2002_v17 = vadd.f32 %v1986_v21, %v1906_v48  ;;  %v2179_v38 = vmul.f32 %v2121_v1, %v5797_v11  ;;  %v2274_v43 = vmul.f32 %v2213_v58, %v5798_v32  ;;  %v2275_v34 = vmul.f32 %v2217_v56, %v5799_v6  ;;  %v5801_v48 = vld [vmem:[#allocation49_spill] sm:$0xff]  ;;  %v5808_v32 = vld [vmem:[#allocation70_spill] sm:$0xff] }
 0x2d4   :  { %v2099_v37 = vadd.f32 %v2083_v59, %v2003_v5  ;;  %v2370_v33 = vmul.f32 %v2309_v46, %v5800_v60  ;;  %v2371_v63 = vmul.f32 %v2313_v12, %v5801_v48  ;;  %v2405_v21 = vrot.slane %v4814_v50, %v4176_v52  ;;  %v5802_v56 = vld [vmem:[#allocation65_spill] sm:$0xff]  ;;  %v5805_v12 = vld [vmem:[#allocation38_spill] sm:$0xff] }
 0x2d5   :  { %v2098_v16 = vadd.f32 %v2082_v20, %v2002_v17  ;;  %v2409_v13 = vrot.slane %v4820_v54, %v4176_v52  ;;  %v2292_v41 = vadd.f32 %v4808_v19, %v4854_v55  ;;  %v2293_v1 = vadd.f32 %v4861_v26, %v2197_v36  ;;  %v5804_v26 = vld [vmem:[#allocation45_spill] sm:$0xff] }
 0x2d6   :  { %v2195_v15 = vadd.f32 %v2179_v38, %v2099_v37  ;;  %v5803_v59 = vrot.slane %v4817_v14, %v4176_v52  ;;  %v1910_v20 = vadd.f32 %v1894_v23, %v1798_v27  ;;  %v2466_v17 = vmul.f32 %v2405_v21, %v5686_v29 }
 0x2d7   :  { %v2194_v58 = vadd.f32 %v2178_v40, %v2098_v16  ;;  %v2467_v50 = vmul.f32 %v2409_v13, %v5689_v39  ;;  %v2388_v5 = vadd.f32 %v4811_v18, %v2292_v41  ;;  %v2389_v54 = vadd.f32 %v4864_v28, %v2293_v1  ;;  %v5806_v40 = vld [vmem:[#allocation56_spill] sm:$0xff]  ;;  %v5807_v39 = vld [vmem:[#allocation50_spill] sm:$0xff]  ;;  %v5810_v1 = vld [vmem:[#allocation93_spill] sm:$0xff] }
 0x2d8   :  { %v2469_v60 = vmul.f32 %v5803_v59, %v5802_v56  ;;  %v2291_v55 = vadd.f32 %v2275_v34, %v2195_v15  ;;  %v1911_v19 = vadd.f32 %v1895_v47, %v1799_v35  ;;  %v1990_v16 = vmul.f32 %v1941_v53, %v5804_v26  ;;  %v5811_v15 = vld [vmem:[#allocation99_spill] sm:$0xff] }
 0x2d9   :  { %v2290_v46 = vadd.f32 %v2274_v43, %v2194_v58  ;;  %v2484_v37 = vadd.f32 %v4823_v30, %v2388_v5  ;;  %v1991_v14 = vmul.f32 %v1945_v49, %v5805_v12  ;;  %v2086_v23 = vmul.f32 %v2037_v42, %v5806_v40  ;;  %v5812_v5 = vld [vmem:[#allocation100_spill] sm:$0xff] }
 0x2da   :  { %v2485_v36 = vadd.f32 %v2469_v60, %v2389_v54  ;;  %v2387_v29 = vadd.f32 %v2371_v63, %v2291_v55  ;;  %v2006_v11 = vadd.f32 %v1990_v16, %v1910_v20  ;;  %v2087_v38 = vmul.f32 %v2041_v0, %v5807_v39  ;;  %v5813_v54 = vld [vmem:[#allocation40_spill] sm:$0xff] }
 0x2db   :  { %v2386_v27 = vadd.f32 %v2370_v33, %v2290_v46  ;;  %3429 = vtanh.f32 %v2484_v37  ;;  %v2007_v18 = vadd.f32 %v1991_v14, %v1911_v19  ;;  %v2133_v28 = vrot.slane %v4878_v3, %v4137_v51  ;;  %v5809_v33 = vld [vmem:[#allocation63_spill] sm:$0xff]  ;;  %v5817_v16 = vld [vmem:[#allocation16_spill] sm:$0xff] }
 0x2dc   :  { %v2137_v47 = vrot.slane %v4884_v61, %v4137_v51  ;;  %v2483_v30 = vadd.f32 %v2467_v50, %v2387_v29  ;;  %3431 = vtanh.f32 %v2485_v36  ;;  %v2102_v35 = vadd.f32 %v2086_v23, %v2006_v11  ;;  %v5815_v19 = vld [vmem:[#allocation51_spill] sm:$0xff] }
 0x2dd   :  { %v2482_v53 = vadd.f32 %v2466_v17, %v2386_v27  ;;  %v2103_v49 = vadd.f32 %v2087_v38, %v2007_v18  ;;  %v2182_v42 = vmul.f32 %v2133_v28, %v5808_v32  ;;  %v2229_v0 = vrot.slane %v4878_v3, %v4158_v45  ;;  %v5824_v32 = vld [vmem:[#allocation87_spill] sm:$0xff] }
 0x2de   :  { %v2183_v43 = vmul.f32 %v2137_v47, %v5809_v33  ;;  %v2233_v6 = vrot.slane %v4884_v61, %v4158_v45  ;;  %v2325_v34 = vrot.slane %v4878_v3, %v4173_v44  ;;  %v2329_v48 = vrot.slane %v4884_v61, %v4173_v44 }
 0x2df   :  { %3433 = vtanh.f32 %v2482_v53  ;;  %v2198_v63 = vadd.f32 %v2182_v42, %v2102_v35  ;;  %v2278_v13 = vmul.f32 %v2229_v0, %v4168_v24  ;;  %v2421_v59 = vrot.slane %v4878_v3, %v4176_v52  ;;  %v5822_v53 = vld [vmem:[#allocation72_spill] sm:$0xff]  ;;  %v5823_v35 = vld [vmem:[#allocation74_spill] sm:$0xff] }
 0x2e0   :  { %3435 = vtanh.f32 %v2483_v30  ;;  %v2199_v21 = vadd.f32 %v2183_v43, %v2103_v49  ;;  %v2279_v41 = vmul.f32 %v2233_v6, %v4189_v7  ;;  %v2374_v58 = vmul.f32 %v2325_v34, %v5810_v1 }
 0x2e1   :  { %v2375_v56 = vmul.f32 %v2329_v48, %v5811_v15  ;;  %v2294_v60 = vadd.f32 %v2278_v13, %v2198_v63  ;;  %v2425_v20 = vrot.slane %v4884_v61, %v4176_v52  ;;  %v1912_v17 = vadd.f32 %v4904_v62, %v4901_v57  ;;  %v5818_v62 = vld [vmem:[#allocation52_spill] sm:$0xff]  ;;  %v5825_v63 = vld [vmem:[#allocation89_spill] sm:$0xff] }
 0x2e2   :  { %v1913_v50 = vadd.f32 %v4926_v25, %v4923_v31  ;;  %v2295_v24 = vadd.f32 %v2279_v41, %v2199_v21  ;;  %v2470_v7 = vmul.f32 %v2421_v59, %v5812_v5  ;;  %v5814_v46 = vrot.slane %v4874_v2, %v4118_v8  ;;  %v5820_v25 = vld [vmem:[#allocation62_spill] sm:$0xff] }
 0x2e3   :  { %v5816_v3 = vrot.slane %v4881_v9, %v4118_v8  ;;  %v2390_v61 = vadd.f32 %v2374_v58, %v2294_v60  ;;  %v2471_v37 = vmul.f32 %v2425_v20, %v5817_v16  ;;  %v5819_v57 = vrot.slane %v4874_v2, %v4134_v4  ;;  %v5826_v58 = vld [vmem:[#allocation5_spill] sm:$0xff] }
 0x2e4   :  { %v1992_v55 = vmul.f32 %v5814_v46, %v5813_v54  ;;  %v5821_v36 = vrot.slane %v4881_v9, %v4134_v4  ;;  %v2391_v14 = vadd.f32 %v2375_v56, %v2295_v24  ;;  %v2141_v27 = vrot.slane %v4874_v2, %v4137_v51  ;;  %v5827_v60 = vld [vmem:[#allocation97_spill] sm:$0xff]  ;;  %v5829_v46 = vld [vmem:[#allocation60_spill] sm:$0xff] }
 0x2e5   :  { %v1993_v26 = vmul.f32 %v5816_v3, %v5815_v19  ;;  %v2088_v31 = vmul.f32 %v5819_v57, %v5818_v62  ;;  %v2486_v29 = vadd.f32 %v2470_v7, %v2390_v61  ;;  %v2145_v11 = vrot.slane %v4881_v9, %v4137_v51  ;;  %v5828_v24 = vld [vmem:[#allocation17_spill] sm:$0xff] }
 0x2e6   :  { %v2089_v12 = vmul.f32 %v5821_v36, %v5820_v25  ;;  %v2008_v40 = vadd.f32 %v1992_v55, %v1912_v17  ;;  %v2237_v39 = vrot.slane %v4874_v2, %v4158_v45  ;;  %v2241_v38 = vrot.slane %v4881_v9, %v4158_v45 }
 0x2e7   :  { %v2009_v23 = vadd.f32 %v1993_v26, %v1913_v50  ;;  %v2487_v18 = vadd.f32 %v2471_v37, %v2391_v14  ;;  %v2184_v30 = vmul.f32 %v2141_v27, %v5822_v53  ;;  %3437 = vtanh.f32 %v2486_v29  ;;  %v5832_v53 = vld [vmem:[#allocation85_spill] sm:$0xff] }
 0x2e8   :  { %v2104_v28 = vadd.f32 %v2088_v31, %v2008_v40  ;;  %v2185_v49 = vmul.f32 %v2145_v11, %v5823_v35  ;;  %v2280_v42 = vmul.f32 %v2237_v39, %v5824_v32  ;;  %v3430_v33 = vpop.eup %3429  ;;  %v2333_v0 = vrot.slane %v4874_v2, %v4173_v44  ;;  %v5831_v39 = vld [vmem:[#allocation31_spill] sm:$0xff] }
 0x2e9   :  { %v2105_v47 = vadd.f32 %v2089_v12, %v2009_v23  ;;  %3439 = vtanh.f32 %v2487_v18  ;;  %v2337_v6 = vrot.slane %v4881_v9, %v4173_v44  ;;  %v3432_v34 = vpop.eup %3431  ;;  %v2281_v21 = vmul.f32 %v2241_v38, %v5825_v63  ;;  %v5830_v12 = vld [vmem:[#allocation73_spill] sm:$0xff] }
 0x2ea   :  { %v2200_v43 = vadd.f32 %v2184_v30, %v2104_v28  ;;  %v2429_v13 = vrot.slane %v4874_v2, %v4176_v52  ;;  %v2433_v41 = vrot.slane %v4881_v9, %v4176_v52  ;;  %v2376_v15 = vmul.f32 %v2333_v0, %v5826_v58  ;;  %v5836_v58 = vld [vmem:[#allocation83_spill] sm:$0xff] }
 0x2eb   :  { %v2201_v48 = vadd.f32 %v2185_v49, %v2105_v47  ;;  %v2377_v20 = vmul.f32 %v2337_v6, %v5827_v60  ;;  %v2515_v19 = vpack.c.bf16 %v3432_v34, %v3430_v33  ;;  %v5833_v6 = vld [vmem:[#allocation95_spill] sm:$0xff] }
 0x2ec   :  { %v2296_v1 = vadd.f32 %v2280_v42, %v2200_v43  ;;  %v3434_v56 = vpop.eup %3433  ;;  %v2472_v5 = vmul.f32 %v2429_v13, %v5828_v24  ;;  %v2473_v55 = vmul.f32 %v2433_v41, %v5829_v46 }
 0x2ed   :  { %v2297_v59 = vadd.f32 %v2281_v21, %v2201_v48  ;;  %v3436_v17 = vpop.eup %3435  ;;  %v5834_v48 = vld [vmem:[#allocation29_spill] sm:$0xff]  ;;  %v5835_v21 = vld [vmem:[#allocation79_spill] sm:$0xff] }
 0x2ee   :  { %v2392_v50 = vadd.f32 %v2376_v15, %v2296_v1  ;;  %v2514_v7 = vpack.c.bf16 %v3436_v17, %v3434_v56 }
 0x2ef   :  { %v2393_v54 = vadd.f32 %v2377_v20, %v2297_v59  ;;  %v5837_v59 = vld [vmem:[#allocation42_spill] sm:$0xff] }
 0x2f0   :  { %v2488_v2 = vadd.f32 %v2472_v5, %v2392_v50  ;;  %3279 = vmatprep.mubr.msk.bf16.mxu0 %vm102_vm1, %v2514_v7  ;;  %v5838_v7 = vld [vmem:[#allocation11_spill] sm:$0xff] }
 0x2f1   :  { %v2489_v9 = vadd.f32 %v2473_v55, %v2393_v54  ;;  %3280 = vmatmul.mubr.msk.bf16.vlgmr.msra.gmra.mxu0 %vm102_vm1, %v2515_v19 }
 0x2f2   :  { %3441 = vtanh.f32 %v2488_v2  ;;  %v5839_v2 = vld [vmem:[#allocation77_spill] sm:$0xff] }
 0x2f3   :  { %3443 = vtanh.f32 %v2489_v9 }
 0x2f4   :  { %v3438_v3 = vpop.eup %3437 }
 0x2f6   :  { %v3440_v26 = vpop.eup %3439 }
 0x2f7   :  { %v2516_v61 = vpack.c.bf16 %v3440_v26, %v3438_v3  ;;  %v5840_v3 = vld [vmem:[#allocation10_spill] sm:$0xff] }
 0x2f9   :  { %3283 = vmatprep.mubr.msk.bf16.mxu0 %vm102_vm1, %v2516_v61  ;;  %v5841_v61 = vld [vmem:[#allocation53_spill] sm:$0xff] }
 0x2ff   :  { %v3442_v16 = vpop.eup %3441 }
 0x300   :  { %v3444_v37 = vpop.eup %3443 }
 0x301   :  { %v2517_v62 = vpack.c.bf16 %v3444_v37, %v3442_v16  ;;  %v5842_v37 = vld [vmem:[#allocation66_spill] sm:$0xff] }
 0x303   :  { %3284 = vmatmul.mubr.msk.bf16.gmra.mxu0 %vm102_vm1, %v2517_v62 }
 0x30f   :  { %v3271_v57 = vpop.f32.mrf.mxu1 }
 0x310   :  { %v5055_v31 = vadd.f32 %v3271_v57, %v4791_v22  ;;  %v5843_v57 = vld [vmem:[#allocation91_spill] sm:$0xff] }
 0x311   :  { %v1699_v25 = vpop.f32.mrf.mxu1 }
 0x312   :  { %v1773_v36 = vrot.slane %v5055_v31, %v3707_v10  ;;  %v1869_v14 = vrot.slane %v5055_v31, %v5830_v12  ;;  %v1965_v40 = vrot.slane %v5055_v31, %v4118_v8  ;;  %v2061_v23 = vrot.slane %v5055_v31, %v4134_v4 }
 0x313   :  { %v1700_v27 = vadd.f32 %v1699_v25, %v4791_v22  ;;  %v3272_v29 = vpop.f32.mrf.mxu1  ;;  %v2157_v11 = vrot.slane %v5055_v31, %v4137_v51  ;;  %v2253_v28 = vrot.slane %v5055_v31, %v4158_v45  ;;  %v2349_v47 = vrot.slane %v5055_v31, %v4173_v44 }
 0x314   :  { %v1804_v38 = vmul.f32 %v1773_v36, %v5831_v39  ;;  %v5070_v18 = vadd.f32 %v3272_v29, %v4791_v22  ;;  %v1900_v30 = vmul.f32 %v1869_v14, %v5832_v53  ;;  %v1996_v34 = vmul.f32 %v1965_v40, %v5833_v6  ;;  %v5844_v14 = vld [vmem:[#allocation98_spill] sm:$0xff] }
 0x315   :  { %v1765_v35 = vrot.slane %v1700_v27, %v3707_v10  ;;  %v1861_v49 = vrot.slane %v1700_v27, %v5830_v12  ;;  %v1957_v32 = vrot.slane %v1700_v27, %v4118_v8  ;;  %v1702_v42 = vpop.f32.mrf.mxu1  ;;  %v2053_v33 = vrot.slane %v1700_v27, %v4134_v4 }
 0x316   :  { %v1777_v43 = vrot.slane %v5070_v18, %v3707_v10  ;;  %v1873_v0 = vrot.slane %v5070_v18, %v5830_v12  ;;  %v1969_v41 = vrot.slane %v5070_v18, %v4118_v8  ;;  %v1703_v1 = vadd.f32 %v1702_v42, %v4791_v22  ;;  %v5845_v42 = vld [vmem:[#allocation102_spill] sm:$0xff] }
 0x317   :  { %v1802_v63 = vmul.f32 %v1765_v35, %v5834_v48  ;;  %v1898_v13 = vmul.f32 %v1861_v49, %v5835_v21  ;;  %v2065_v56 = vrot.slane %v5070_v18, %v4134_v4  ;;  %v1994_v60 = vmul.f32 %v1957_v32, %v5837_v59 }
 0x318   :  { %v1805_v15 = vmul.f32 %v1777_v43, %v5836_v58  ;;  %v2149_v20 = vrot.slane %v1700_v27, %v4137_v51  ;;  %v1769_v17 = vrot.slane %v1703_v1, %v3707_v10  ;;  %v1865_v50 = vrot.slane %v1703_v1, %v5830_v12 }
 0x319   :  { %v1961_v24 = vrot.slane %v1703_v1, %v4118_v8  ;;  %v2057_v5 = vrot.slane %v1703_v1, %v4134_v4  ;;  %v1901_v54 = vmul.f32 %v1873_v0, %v5838_v7  ;;  %v1914_v46 = vadd.f32 %v1898_v13, %v1802_v63  ;;  %v5847_v63 = vld [vmem:[#allocation107_spill] sm:$0xff]  ;;  %v5848_v13 = vld [vmem:[#allocation116_spill] sm:$0xff] }
 0x31a   :  { %v2153_v55 = vrot.slane %v1703_v1, %v4137_v51  ;;  %v2245_v19 = vrot.slane %v1700_v27, %v4158_v45  ;;  %v1803_v9 = vmul.f32 %v1769_v17, %v5839_v2  ;;  %v1899_v26 = vmul.f32 %v1865_v50, %v5840_v3  ;;  %v5851_v7 = vld [vmem:[#allocation123_spill] sm:$0xff]  ;;  %v5852_v2 = vld [vmem:[#allocation101_spill] sm:$0xff] }
 0x31b   :  { %v2090_v16 = vmul.f32 %v2053_v33, %v5841_v61  ;;  %v2186_v62 = vmul.f32 %v2149_v20, %v5842_v37  ;;  %v1995_v25 = vmul.f32 %v1961_v24, %v5843_v57  ;;  %v2010_v36 = vadd.f32 %v1994_v60, %v1914_v46  ;;  %v5846_v33 = vld [vmem:[#allocation78_spill] sm:$0xff]  ;;  %v5850_v24 = vld [vmem:[#allocation96_spill] sm:$0xff]  ;;  %v5856_v57 = vld [vmem:[#allocation125_spill] sm:$0xff] }
 0x31c   :  { %v2091_v40 = vmul.f32 %v2057_v5, %v5844_v14  ;;  %v2249_v29 = vrot.slane %v1703_v1, %v4158_v45  ;;  %v1915_v39 = vadd.f32 %v1899_v26, %v1803_v9  ;;  %v2341_v53 = vrot.slane %v1700_v27, %v4173_v44  ;;  %v5849_v20 = vld [vmem:[#allocation118_spill] sm:$0xff]  ;;  %v5857_v14 = vld [vmem:[#allocation80_spill] sm:$0xff] }
 0x31d   :  { %v2345_v35 = vrot.slane %v1703_v1, %v4173_v44  ;;  %v2437_v49 = vrot.slane %v1700_v27, %v4176_v52  ;;  %v2106_v32 = vadd.f32 %v2090_v16, %v2010_v36  ;;  %v2187_v43 = vmul.f32 %v2153_v55, %v5845_v42  ;;  %v5853_v9 = vld [vmem:[#allocation58_spill] sm:$0xff]  ;;  %v5854_v16 = vld [vmem:[#allocation103_spill] sm:$0xff] }
 0x31e   :  { %v2282_v0 = vmul.f32 %v2245_v19, %v5846_v33  ;;  %v1916_v6 = vadd.f32 %v1900_v30, %v1804_v38  ;;  %v2011_v48 = vadd.f32 %v1995_v25, %v1915_v39  ;;  %v2283_v21 = vmul.f32 %v2249_v29, %v5847_v63  ;;  %v5858_v39 = vld [vmem:[#allocation111_spill] sm:$0xff]  ;;  %v5859_v42 = vld [vmem:[#allocation122_spill] sm:$0xff] }
 0x31f   :  { %v2378_v58 = vmul.f32 %v2341_v53, %v5848_v13  ;;  %v2441_v59 = vrot.slane %v1703_v1, %v4176_v52  ;;  %v2202_v60 = vadd.f32 %v2186_v62, %v2106_v32  ;;  %v2379_v17 = vmul.f32 %v2345_v35, %v5849_v20 }
 0x320   :  { %v1917_v50 = vadd.f32 %v1901_v54, %v1805_v15  ;;  %v1997_v5 = vmul.f32 %v1969_v41, %v5850_v24  ;;  %v2107_v27 = vadd.f32 %v2091_v40, %v2011_v48  ;;  %v2474_v46 = vmul.f32 %v2437_v49, %v5851_v7 }
 0x321   :  { %v2012_v55 = vadd.f32 %v1996_v34, %v1916_v6  ;;  %v2092_v19 = vmul.f32 %v2061_v23, %v5852_v2  ;;  %v2298_v38 = vadd.f32 %v2282_v0, %v2202_v60  ;;  %v2093_v3 = vmul.f32 %v2065_v56, %v5853_v9  ;;  %v5855_v23 = vld [vmem:[#allocation68_spill] sm:$0xff] }
 0x322   :  { %v2013_v30 = vadd.f32 %v1997_v5, %v1917_v50  ;;  %v2161_v26 = vrot.slane %v5070_v18, %v4137_v51  ;;  %v2203_v1 = vadd.f32 %v2187_v43, %v2107_v27  ;;  %v2188_v41 = vmul.f32 %v2157_v11, %v5854_v16  ;;  %v5860_v6 = vld [vmem:[#allocation120_spill] sm:$0xff] }
 0x323   :  { %v2108_v61 = vadd.f32 %v2092_v19, %v2012_v55  ;;  %v2257_v15 = vrot.slane %v5070_v18, %v4158_v45  ;;  %v2394_v34 = vadd.f32 %v2378_v58, %v2298_v38  ;;  %v2353_v56 = vrot.slane %v5070_v18, %v4173_v44 }
 0x324   :  { %v2109_v54 = vadd.f32 %v2093_v3, %v2013_v30  ;;  %v2189_v37 = vmul.f32 %v2161_v26, %v5855_v23  ;;  %v2299_v62 = vadd.f32 %v2283_v21, %v2203_v1  ;;  %v2475_v25 = vmul.f32 %v2441_v59, %v5856_v57  ;;  %v5861_v21 = vld [vmem:[#allocation126_spill] sm:$0xff]  ;;  %v5862_v59 = vld [vmem:[#allocation129_spill] sm:$0xff]  ;;  %v5863_v26 = vld [vmem:[#allocation108_spill] sm:$0xff] }
 0x325   :  { %v2204_v36 = vadd.f32 %v2188_v41, %v2108_v61  ;;  %v2284_v40 = vmul.f32 %v2253_v28, %v5857_v14  ;;  %v2490_v11 = vadd.f32 %v2474_v46, %v2394_v34  ;;  %v2285_v53 = vmul.f32 %v2257_v15, %v5858_v39  ;;  %v5864_v15 = vld [vmem:[#allocation109_spill] sm:$0xff] }
 0x326   :  { %v2205_v29 = vadd.f32 %v2189_v37, %v2109_v54  ;;  %v2445_v35 = vrot.slane %v5055_v31, %v4176_v52  ;;  %v2395_v49 = vadd.f32 %v2379_v17, %v2299_v62  ;;  %v2380_v43 = vmul.f32 %v2349_v47, %v5859_v42 }
 0x327   :  { %v2300_v32 = vadd.f32 %v2284_v40, %v2204_v36  ;;  %v2449_v33 = vrot.slane %v5070_v18, %v4176_v52  ;;  %v2381_v28 = vmul.f32 %v2353_v56, %v5860_v6  ;;  %3445 = vtanh.f32 %v2490_v11  ;;  %v5865_v36 = vld [vmem:[#allocation46_spill] sm:$0xff]  ;;  %v5866_v40 = vld [vmem:[#allocation104_spill] sm:$0xff] }
 0x328   :  { %v2301_v0 = vadd.f32 %v2285_v53, %v2205_v29  ;;  %v2491_v48 = vadd.f32 %v2475_v25, %v2395_v49  ;;  %v2476_v13 = vmul.f32 %v2445_v35, %v5861_v21  ;;  %v5867_v29 = vld [vmem:[#allocation105_spill] sm:$0xff]  ;;  %v5868_v49 = vld [vmem:[#allocation35_spill] sm:$0xff]  ;;  %v5870_v21 = vld [vmem:[#allocation110_spill] sm:$0xff] }
 0x329   :  { %v2396_v63 = vadd.f32 %v2380_v43, %v2300_v32  ;;  %v2477_v60 = vmul.f32 %v2449_v33, %v5862_v59  ;;  %v5869_v43 = vld [vmem:[#allocation114_spill] sm:$0xff] }
 0x32a   :  { %v2397_v58 = vadd.f32 %v2381_v28, %v2301_v0  ;;  %3447 = vtanh.f32 %v2491_v48 }
 0x32b   :  { %v2492_v20 = vadd.f32 %v2476_v13, %v2396_v63 }
 0x32c   :  { %v2493_v17 = vadd.f32 %v2477_v60, %v2397_v58  ;;  %v5871_v60 = vld [vmem:[#allocation33_spill] sm:$0xff] }
 0x32d   :  { %3449 = vtanh.f32 %v2492_v20 }
 0x32e   :  { %3451 = vtanh.f32 %v2493_v17  ;;  %v5872_v17 = vld [vmem:[#allocation106_spill] sm:$0xff] }
 0x334   :  { %v3446_v31 = vpop.eup %3445 }
 0x337   :  { %v3448_v47 = vpop.eup %3447 }
 0x338   :  { %v2518_v50 = vpack.c.bf16 %v3448_v47, %v3446_v31  ;;  %v5873_v47 = vld [vmem:[#allocation121_spill] sm:$0xff] }
 0x33a   :  { %v3450_v18 = vpop.eup %3449  ;;  %3287 = vmatprep.mubr.msk.bf16.mxu0 %vm102_vm1, %v2518_v50 }
 0x33b   :  { %v3452_v24 = vpop.eup %3451  ;;  %v3275_v5 = vpop.f32.mrf.mxu1 }
 0x33c   :  { %v5153_v27 = vadd.f32 %v3275_v5, %v4791_v22  ;;  %v2519_v7 = vpack.c.bf16 %v3452_v24, %v3450_v18 }
 0x33d   :  { %v1715_v46 = vpop.f32.mrf.mxu1 }
 0x33e   :  { %v1789_v55 = vrot.slane %v5153_v27, %v3707_v10  ;;  %v1885_v2 = vrot.slane %v5153_v27, %v5830_v12  ;;  %v1981_v19 = vrot.slane %v5153_v27, %v4118_v8  ;;  %3288 = vmatmul.mubr.msk.bf16.gmra.mxu0 %vm102_vm1, %v2519_v7  ;;  %v2077_v38 = vrot.slane %v5153_v27, %v4134_v4  ;;  %v5876_v7 = vld [vmem:[#allocation55_spill] sm:$0xff] }
 0x33f   :  { %v1716_v30 = vadd.f32 %v1715_v46, %v4791_v22  ;;  %v3276_v9 = vpop.f32.mrf.mxu1  ;;  %v2173_v3 = vrot.slane %v5153_v27, %v4137_v51  ;;  %v2269_v16 = vrot.slane %v5153_v27, %v4158_v45  ;;  %v2365_v41 = vrot.slane %v5153_v27, %v4173_v44 }
 0x340   :  { %v1808_v1 = vmul.f32 %v1789_v55, %v5863_v26  ;;  %v5169_v61 = vadd.f32 %v3276_v9, %v4791_v22  ;;  %v1904_v34 = vmul.f32 %v1885_v2, %v5864_v15  ;;  %v2000_v14 = vmul.f32 %v1981_v19, %v5865_v36 }
 0x341   :  { %v1781_v54 = vrot.slane %v1716_v30, %v3707_v10  ;;  %v1877_v23 = vrot.slane %v1716_v30, %v5830_v12  ;;  %v1973_v37 = vrot.slane %v1716_v30, %v4118_v8  ;;  %v1718_v56 = vpop.f32.mrf.mxu1  ;;  %v2069_v62 = vrot.slane %v1716_v30, %v4134_v4 }
 0x342   :  { %v1793_v57 = vrot.slane %v5169_v61, %v3707_v10  ;;  %v1889_v25 = vrot.slane %v5169_v61, %v5830_v12  ;;  %v1985_v53 = vrot.slane %v5169_v61, %v4118_v8  ;;  %v1719_v35 = vadd.f32 %v1718_v56, %v4791_v22 }
 0x343   :  { %v1806_v11 = vmul.f32 %v1781_v54, %v5866_v40  ;;  %v1902_v39 = vmul.f32 %v1877_v23, %v5867_v29  ;;  %v2081_v42 = vrot.slane %v5169_v61, %v4134_v4  ;;  %v1998_v33 = vmul.f32 %v1973_v37, %v5869_v43  ;;  %v5877_v54 = vld [vmem:[#allocation71_spill] sm:$0xff]  ;;  %v5878_v37 = vld [vmem:[#allocation81_spill] sm:$0xff]  ;;  %v5880_v40 = vld [vmem:[#allocation138_spill] sm:$0xff] }
 0x344   :  { %v1809_v32 = vmul.f32 %v1793_v57, %v5868_v49  ;;  %v2165_v0 = vrot.slane %v1716_v30, %v4137_v51  ;;  %v1785_v6 = vrot.slane %v1719_v35, %v3707_v10  ;;  %v1881_v28 = vrot.slane %v1719_v35, %v5830_v12  ;;  %v5874_v10 = vld [vmem:[#allocation131_spill] sm:$0xff]  ;;  %v5875_v12 = vld [vmem:[#allocation44_spill] sm:$0xff] }
 0x345   :  { %v1977_v48 = vrot.slane %v1719_v35, %v4118_v8  ;;  %v2073_v63 = vrot.slane %v1719_v35, %v4134_v4  ;;  %v1905_v13 = vmul.f32 %v1889_v25, %v5870_v21  ;;  %v1918_v22 = vadd.f32 %v1902_v39, %v1806_v11  ;;  %v5879_v25 = vld [vmem:[#allocation136_spill] sm:$0xff]  ;;  %v5884_v21 = vld [vmem:[#allocation57_spill] sm:$0xff] }
 0x346   :  { %v2169_v58 = vrot.slane %v1719_v35, %v4137_v51  ;;  %v2261_v59 = vrot.slane %v1716_v30, %v4158_v45  ;;  %v1807_v20 = vmul.f32 %v1785_v6, %v5871_v60  ;;  %v1903_v31 = vmul.f32 %v1881_v28, %v5872_v17  ;;  %v5881_v49 = vld [vmem:[#allocation124_spill] sm:$0xff]  ;;  %v5886_v17 = vld [vmem:[#allocation133_spill] sm:$0xff] }
 0x347   :  { %v2094_v50 = vmul.f32 %v2069_v62, %v5873_v47  ;;  %v2190_v18 = vmul.f32 %v2165_v0, %v5874_v10  ;;  %v1999_v24 = vmul.f32 %v1977_v48, %v5875_v12  ;;  %v2014_v5 = vadd.f32 %v1998_v33, %v1918_v22  ;;  %v5882_v0 = vld [vmem:[#allocation119_spill] sm:$0xff]  ;;  %v5883_v28 = vld [vmem:[#allocation140_spill] sm:$0xff]  ;;  %v5889_v12 = vld [vmem:[#allocation137_spill] sm:$0xff] }
 0x348   :  { %v2095_v46 = vmul.f32 %v2073_v63, %v5876_v7  ;;  %v2265_v55 = vrot.slane %v1719_v35, %v4158_v45  ;;  %v1919_v2 = vadd.f32 %v1903_v31, %v1807_v20  ;;  %v2357_v19 = vrot.slane %v1716_v30, %v4173_v44 }
 0x349   :  { %v2361_v9 = vrot.slane %v1719_v35, %v4173_v44  ;;  %v2453_v26 = vrot.slane %v1716_v30, %v4176_v52  ;;  %v2110_v15 = vadd.f32 %v2094_v50, %v2014_v5  ;;  %v2191_v23 = vmul.f32 %v2169_v58, %v5877_v54  ;;  %v5885_v58 = vld [vmem:[#allocation127_spill] sm:$0xff]  ;;  %v5890_v5 = vld [vmem:[#allocation82_spill] sm:$0xff] }
 0x34a   :  { %v2286_v56 = vmul.f32 %v2261_v59, %v5878_v37  ;;  %v1920_v62 = vadd.f32 %v1904_v34, %v1808_v1  ;;  %v2015_v57 = vadd.f32 %v1999_v24, %v1919_v2  ;;  %v2287_v36 = vmul.f32 %v2265_v55, %v5879_v25  ;;  %v5888_v50 = vld [vmem:[#allocation143_spill] sm:$0xff]  ;;  %v5893_v37 = vld [vmem:[#allocation144_spill] sm:$0xff] }
 0x34b   :  { %v2382_v11 = vmul.f32 %v2357_v19, %v5880_v40  ;;  %v2457_v29 = vrot.slane %v1719_v35, %v4176_v52  ;;  %v2206_v39 = vadd.f32 %v2190_v18, %v2110_v15  ;;  %v2383_v43 = vmul.f32 %v2361_v9, %v5881_v49  ;;  %v5891_v19 = vld [vmem:[#allocation139_spill] sm:$0xff] }
 0x34c   :  { %v1921_v33 = vadd.f32 %v1905_v13, %v1809_v32  ;;  %v2001_v6 = vmul.f32 %v1985_v53, %v5882_v0  ;;  %v2111_v30 = vadd.f32 %v2095_v46, %v2015_v57  ;;  %v2478_v48 = vmul.f32 %v2453_v26, %v5883_v28  ;;  %v5894_v57 = vld [vmem:[#allocation142_spill] sm:$0xff] }
 0x34d   :  { %v2016_v63 = vadd.f32 %v2000_v14, %v1920_v62  ;;  %v2096_v22 = vmul.f32 %v2077_v38, %v5884_v21  ;;  %v2302_v1 = vadd.f32 %v2286_v56, %v2206_v39  ;;  %v2097_v59 = vmul.f32 %v2081_v42, %v5885_v58  ;;  %v5887_v38 = vld [vmem:[#allocation135_spill] sm:$0xff]  ;;  %v5898_v21 = vld [vmem:[#allocation69_spill] sm:$0xff] }
 0x34e   :  { %v2017_v34 = vadd.f32 %v2001_v6, %v1921_v33  ;;  %v2177_v60 = vrot.slane %v5169_v61, %v4137_v51  ;;  %v2207_v35 = vadd.f32 %v2191_v23, %v2111_v30  ;;  %v2192_v53 = vmul.f32 %v2173_v3, %v5886_v17  ;;  %v5897_v30 = vld [vmem:[#allocation67_spill] sm:$0xff]  ;;  %v5900_v17 = vld [vmem:[#allocation90_spill] sm:$0xff] }
 0x34f   :  { %v2112_v20 = vadd.f32 %v2096_v22, %v2016_v63  ;;  %v2273_v32 = vrot.slane %v5169_v61, %v4158_v45  ;;  %v2398_v14 = vadd.f32 %v2382_v11, %v2302_v1  ;;  %v2369_v42 = vrot.slane %v5169_v61, %v4173_v44  ;;  %v5892_v45 = vld [vmem:[#allocation141_spill] sm:$0xff] }
 0x350   :  { %v2113_v13 = vadd.f32 %v2097_v59, %v2017_v34  ;;  %v2193_v31 = vmul.f32 %v2177_v60, %v5887_v38  ;;  %v2303_v47 = vadd.f32 %v2287_v36, %v2207_v35  ;;  %v2479_v10 = vmul.f32 %v2457_v29, %v5888_v50  ;;  %v5895_v29 = vld [vmem:[#allocation145_spill] sm:$0xff]  ;;  %v5899_v34 = vld [vmem:[#allocation86_spill] sm:$0xff] }
 0x351   :  { %v2208_v18 = vadd.f32 %v2192_v53, %v2112_v20  ;;  %v2288_v51 = vmul.f32 %v2269_v16, %v5889_v12  ;;  %v2494_v3 = vadd.f32 %v2478_v48, %v2398_v14  ;;  %v2289_v7 = vmul.f32 %v2273_v32, %v5890_v5 }
 0x352   :  { %v2209_v24 = vadd.f32 %v2193_v31, %v2113_v13  ;;  %v2461_v46 = vrot.slane %v5153_v27, %v4176_v52  ;;  %v2399_v55 = vadd.f32 %v2383_v43, %v2303_v47  ;;  %v2384_v9 = vmul.f32 %v2365_v41, %v5891_v19  ;;  %v5896_v43 = vld [vmem:[#allocation64_spill] sm:$0xff] }
 0x353   :  { %v2304_v2 = vadd.f32 %v2288_v51, %v2208_v18  ;;  %v2465_v26 = vrot.slane %v5169_v61, %v4176_v52  ;;  %v2385_v16 = vmul.f32 %v2369_v42, %v5892_v45  ;;  %3453 = vtanh.f32 %v2494_v3  ;;  %v5901_v42 = vld [vmem:[#allocation94_spill] sm:$0xff]  ;;  %v5902_v3 = vld [vmem:[#allocation112_spill] sm:$0xff] }
 0x354   :  { %v2305_v15 = vadd.f32 %v2289_v7, %v2209_v24  ;;  %v2495_v54 = vadd.f32 %v2479_v10, %v2399_v55  ;;  %v2480_v56 = vmul.f32 %v2461_v46, %v5893_v37  ;;  %v5254_v39 = vrot.slane %v5895_v29, %v4118_v8  ;;  %v5903_v46 = vld [vmem:[#allocation113_spill] sm:$0xff] }
 0x355   :  { %v2400_v23 = vadd.f32 %v2384_v9, %v2304_v2  ;;  %v2481_v25 = vmul.f32 %v2465_v26, %v5894_v57  ;;  %v5904_v2 = vld [vmem:[#allocation88_spill] sm:$0xff] }
 0x356   :  { %v2401_v62 = vadd.f32 %v2385_v16, %v2305_v15  ;;  %3455 = vtanh.f32 %v2495_v54  ;;  %v5905_v15 = vld [vmem:[#allocation115_spill] sm:$0xff] }
 0x357   :  { %v2496_v36 = vadd.f32 %v2480_v56, %v2400_v23  ;;  %v5906_v23 = vld [vmem:[#allocation117_spill] sm:$0xff] }
 0x358   :  { %v2497_v40 = vadd.f32 %v2481_v25, %v2401_v62  ;;  %v5907_v62 = vld [vmem:[#allocation92_spill] sm:$0xff] }
 0x359   :  { %3457 = vtanh.f32 %v2496_v36 }
 0x35a   :  { %3459 = vtanh.f32 %v2497_v40 }
 0x360   :  { %v3454_v44 = vpop.eup %3453 }
 0x363   :  { %v3456_v27 = vpop.eup %3455 }
 0x364   :  { %v2520_v41 = vpack.c.bf16 %v3456_v27, %v3454_v44 }
 0x366   :  { %v3458_v52 = vpop.eup %3457  ;;  %3291 = vmatprep.mubr.msk.bf16.mxu0 %vm102_vm1, %v2520_v41 }
 0x367   :  { %v3460_v61 = vpop.eup %3459 }
 0x368   :  { %v2521_v11 = vpack.c.bf16 %v3460_v61, %v3458_v52 }
 0x36a   :  { %3292 = vmatmul.mubr.msk.bf16.gmra.mxu0 %vm102_vm1, %v2521_v11 }
 0x3b1   :  { %v3281_v49 = vpop.f32.mrf.mxu0 }
 0x3b2   :  { %v2593_v33 = vadd.f32 %v3281_v49, %v5896_v43 }
 0x3b3   :  { %v2584_v0 = vpop.f32.mrf.mxu0 }
 0x3b4   :  { %v2653_v6 = vadd.f32 %v5254_v39, %v2593_v33  ;;  %v2585_v28 = vadd.f32 %v2584_v0, %v5897_v30 }
 0x3b5   :  { %v3282_v48 = vpop.f32.mrf.mxu0 }
 0x3b6   :  { %3461 = vtanh.f32 %v2653_v6  ;;  %v2651_v63 = vadd.f32 %v5254_v39, %v2585_v28  ;;  %v2596_v22 = vadd.f32 %v3282_v48, %v5898_v21  ;;  %v3192_v44 = vmul.f32 -1.442695, %v2653_v6 }
 0x3b7   :  { %v2587_v1 = vpop.f32.mrf.mxu0 }
 0x3b8   :  { %v2588_v58 = vadd.f32 %v2587_v1, %v5899_v34  ;;  %3463 = vtanh.f32 %v2651_v63  ;;  %v2654_v8 = vadd.f32 %v5254_v39, %v2596_v22  ;;  %v3190_v52 = vmul.f32 -1.442695, %v2651_v63  ;;  %v5908_v1 = vld [vmem:[#allocation128_spill] sm:$0xff] }
 0x3ba   :  { %v2652_v59 = vadd.f32 %v5254_v39, %v2588_v58  ;;  %v3193_v61 = vmul.f32 -1.442695, %v2654_v8 }
 0x3bc   :  { %3465 = vtanh.f32 %v2652_v59  ;;  %v3191_v29 = vmul.f32 -1.442695, %v2652_v59 }
 0x3bd   :  { %3467 = vtanh.f32 %v2654_v8 }
 0x3c3   :  { %v3285_v60 = vpop.f32.mrf.mxu0  ;;  %v3462_v35 = vpop.eup %3461 }
 0x3c4   :  { %2799 = vrot.lane.b32.xlu1 %v3462_v35, %s3630_s4  ;;  %v2609_v19 = vadd.f32 %v3285_v60, %v5904_v2  ;;  %v5909_v35 = vld [vmem:[#allocation130_spill] sm:$0xff] }
 0x3c5   :  { %v2600_v20 = vpop.f32.mrf.mxu0  ;;  %v3464_v14 = vpop.eup %3463 }
 0x3c6   :  { %v2601_v53 = vadd.f32 %v2600_v20, %v5900_v17  ;;  %v5290_v56 = vadd.f32 %v5254_v39, %v2609_v19 }
 0x3c7   :  { %v3286_v32 = vpop.f32.mrf.mxu0 }
 0x3c8   :  { %2795 = vrot.lane.b32.xlu1 %v3464_v14, %s3630_s4  ;;  %v2655_v38 = vadd.f32 %v5254_v39, %v2601_v53  ;;  %v2612_v57 = vadd.f32 %v3286_v32, %v5907_v62  ;;  %v5910_v14 = vld [vmem:[#allocation134_spill] sm:$0xff] }
 0x3c9   :  { %v2603_v13 = vpop.f32.mrf.mxu0  ;;  %v3466_v31 = vpop.eup %3465 }
 0x3ca   :  { %v2604_v47 = vadd.f32 %v2603_v13, %v5901_v42  ;;  %v3468_v50 = vpop.eup %3467  ;;  %2797 = vrot.lane.b32.xlu0 %v3466_v31, %s3630_s4  ;;  %3469 = vtanh.f32 %v2655_v38  ;;  %v5300_v36 = vadd.f32 %v5254_v39, %v2612_v57  ;;  %v3194_v28 = vmul.f32 -1.442695, %v2655_v38  ;;  %v5911_v38 = vld [vmem:[#allocation132_spill] sm:$0xff] }
 0x3cc   :  { %2801 = vrot.lane.b32.xlu1 %v3468_v50, %s3630_s4  ;;  %v2656_v10 = vadd.f32 %v5254_v39, %v2604_v47 }
 0x3ce   :  { %3471 = vtanh.f32 %v2656_v10  ;;  %v3195_v59 = vmul.f32 -1.442695, %v2656_v10 }
 0x3d7   :  { %v3470_v18 = vpop.eup %3469 }
 0x3d8   :  { %2803 = vrot.lane.b32.xlu1 %v3470_v18, %s3630_s4 }
 0x3db   :  { %v3472_v12 = vpop.eup %3471 }
 0x3dc   :  { %2805 = vrot.lane.b32.xlu1 %v3472_v12, %s3630_s4 }
 0x3fe   :  { %v3289_v51 = vpop.f32.mrf.mxu0 }
 0x3ff   :  { %v2625_v24 = vadd.f32 %v3289_v51, %v5902_v3 }
 0x400   :  { %v2616_v5 = vpop.f32.mrf.mxu0 }
 0x401   :  { %v5276_v7 = vadd.f32 %v5254_v39, %v2625_v24  ;;  %v2617_v55 = vadd.f32 %v2616_v5, %v5903_v46 }
 0x402   :  { %v3290_v9 = vpop.f32.mrf.mxu0 }
 0x403   :  { %3473 = vtanh.f32 %v5276_v7  ;;  %v5282_v26 = vadd.f32 %v5254_v39, %v2617_v55  ;;  %v2628_v45 = vadd.f32 %v3290_v9, %v5905_v15 }
 0x404   :  { %v2619_v16 = vpop.f32.mrf.mxu0 }
 0x405   :  { %v5286_v54 = vadd.f32 %v5254_v39, %v2628_v45  ;;  %v2620_v37 = vadd.f32 %v2619_v16, %v5906_v23  ;;  %3475 = vtanh.f32 %v5282_v26 }
 0x407   :  { %3477 = vtanh.f32 %v5286_v54  ;;  %v5296_v25 = vadd.f32 %v5254_v39, %v2620_v37 }
 0x408   :  { %3479 = vtanh.f32 %v5290_v56 }
 0x409   :  { %3481 = vtanh.f32 %v5296_v25 }
 0x40a   :  { %3483 = vtanh.f32 %v5300_v36 }
 0x40b   :  { %3485 = vpow2.f32 %v3192_v44 }
 0x40c   :  { %3487 = vpow2.f32 %v3190_v52 }
 0x40d   :  { %3489 = vpow2.f32 %v3193_v61 }
 0x40e   :  { %3491 = vpow2.f32 %v3191_v29 }
 0x410   :  { %v3474_v40 = vpop.eup %3473 }
 0x411   :  { %2815 = vrot.lane.b32.xlu0 %v3474_v40, %s3630_s4 }
 0x412   :  { %v3476_v27 = vpop.eup %3475 }
 0x413   :  { %2811 = vrot.lane.b32.xlu1 %v3476_v27, %s3630_s4 }
 0x414   :  { %v3478_v41 = vpop.eup %3477 }
 0x415   :  { %2817 = vrot.lane.b32.xlu0 %v3478_v41, %s3630_s4  ;;  %v3480_v11 = vpop.eup %3479 }
 0x416   :  { %v3482_v49 = vpop.eup %3481 }
 0x417   :  { %2807 = vrot.lane.b32.xlu1 %v3480_v11, %s3630_s4  ;;  %v3484_v43 = vpop.eup %3483 }
 0x418   :  { %v3486_v33 = vpop.eup %3485 }
 0x419   :  { %2813 = vrot.lane.b32.xlu0 %v3482_v49, %s3630_s4  ;;  %v2717_v0 = vadd.f32 1.0, %v3486_v33  ;;  %v3488_v6 = vpop.eup %3487 }
 0x41a   :  { %v3490_v30 = vpop.eup %3489  ;;  %v2715_v63 = vadd.f32 1.0, %v3488_v6 }
 0x41b   :  { %2809 = vrot.lane.b32.xlu1 %v3484_v43, %s3630_s4  ;;  %v3492_v48 = vpop.eup %3491  ;;  %3493 = vrcp.f32 %v2717_v0  ;;  %v2718_v21 = vadd.f32 1.0, %v3490_v30 }
 0x41c   :  { %v2716_v58 = vadd.f32 1.0, %v3492_v48  ;;  %3495 = vpow2.f32 %v3194_v28 }
 0x41d   :  { %3497 = vrcp.f32 %v2715_v63 }
 0x41e   :  { %3499 = vrcp.f32 %v2718_v21 }
 0x428   :  { %v3494_v47 = vpop.eup %3493 }
 0x429   :  { %v3496_v12 = vpop.eup %3495 }
 0x42a   :  { %v3293_v22 = vpop.f32.mrf.mxu0  ;;  %v3498_v3 = vpop.eup %3497  ;;  %v2719_v19 = vadd.f32 1.0, %v3496_v12 }
 0x42b   :  { %v2641_v34 = vadd.f32 %v3293_v22, %v5908_v1  ;;  %v3500_v46 = vpop.eup %3499 }
 0x42c   :  { %v2632_v8 = vpop.f32.mrf.mxu0 }
 0x42d   :  { %v5312_v60 = vadd.f32 %v5254_v39, %v2641_v34  ;;  %v2633_v20 = vadd.f32 %v2632_v8, %v5909_v35 }
 0x42e   :  { %v3294_v17 = vpop.f32.mrf.mxu0 }
 0x42f   :  { %3501 = vtanh.f32 %v5312_v60  ;;  %v5317_v53 = vadd.f32 %v5254_v39, %v2633_v20  ;;  %v2644_v31 = vadd.f32 %v3294_v17, %v5911_v38 }
 0x430   :  { %3503 = vrcp.f32 %v2716_v58  ;;  %v2635_v32 = vpop.f32.mrf.mxu0 }
 0x431   :  { %3505 = vpow2.f32 %v3195_v59  ;;  %v2636_v13 = vadd.f32 %v2635_v32, %v5910_v14  ;;  %v5326_v18 = vadd.f32 %v5254_v39, %v2644_v31 }
 0x432   :  { %3507 = vtanh.f32 %v5317_v53 }
 0x433   :  { %v5323_v42 = vadd.f32 %v5254_v39, %v2636_v13 }
 0x435   :  { %3509 = vtanh.f32 %v5323_v42 }
 0x436   :  { %v2800_v50 = vpop.permute.xlu1 %2799  ;;  %3511 = vtanh.f32 %v5326_v18 }
 0x437   :  { %v2845_v10 = vmul.f32 %v3494_v47, %v2800_v50  ;;  %3513 = vrcp.f32 %v2719_v19 }
 0x439   :  { %v2874_v51 = vsel %vm2859_vm3, %v2845_v10, 0.0 }
 0x43a   :  { %v2875_v24 = vrot.slane %v2874_v51, 4  ;;  %v2796_v5 = vpop.permute.xlu1 %2795 }
 0x43b   :  { %v2843_v55 = vmul.f32 %v3498_v3, %v2796_v5 }
 0x43c   :  { %v3502_v2 = vpop.eup %3501  ;;  %v2876_v9 = vadd.f32 %v2875_v24, %v2874_v51  ;;  %v2798_v39 = vpop.permute.xlu0 %2797 }
 0x43d   :  { %v3504_v15 = vpop.eup %3503  ;;  %v2860_v45 = vsel %vm2859_vm3, %v2843_v55, 0.0  ;;  %2823 = vrot.lane.b32.xlu0 %v3502_v2, %s3630_s4 }
 0x43e   :  { %v3506_v16 = vpop.eup %3505  ;;  %v2877_v23 = vrot.slane %v2876_v9, 2  ;;  %v2861_v37 = vrot.slane %v2860_v45, 4  ;;  %v2844_v62 = vmul.f32 %v3504_v15, %v2798_v39  ;;  %v2802_v57 = vpop.permute.xlu1 %2801 }
 0x43f   :  { %v2846_v40 = vmul.f32 %v3500_v46, %v2802_v57  ;;  %v3508_v44 = vpop.eup %3507  ;;  %v2720_v61 = vadd.f32 1.0, %v3506_v16 }
 0x440   :  { %v2878_v27 = vadd.f32 %v2877_v23, %v2876_v9  ;;  %v2862_v41 = vadd.f32 %v2861_v37, %v2860_v45  ;;  %v2867_v52 = vsel %vm2859_vm3, %v2844_v62, 0.0  ;;  %v3200_v62 = vmul.f32 -1.442695, %v5276_v7  ;;  %v3396_v7 = vld [vmem:[%s5398_s5] sm:$0xff]  }
 0x441   :  { %v2868_v11 = vrot.slane %v2867_v52, 4  ;;  %v2881_v29 = vsel %vm2859_vm3, %v2846_v40, 0.0  ;;  %2819 = vrot.lane.b32.xlu0 %v3508_v44, %s3630_s4  ;;  %3515 = vrcp.f32 %v2720_v61 }
 0x442   :  { %v2879_v49 = vrot.slane %v2878_v27, 1  ;;  %v2863_v43 = vrot.slane %v2862_v41, 2  ;;  %v2882_v33 = vrot.slane %v2881_v29, 4  ;;  %v3510_v6 = vpop.eup %3509 }
 0x443   :  { %v2869_v0 = vadd.f32 %v2868_v11, %v2867_v52  ;;  %v3512_v34 = vpop.eup %3511 }
 0x444   :  { %v2864_v30 = vadd.f32 %v2863_v43, %v2862_v41  ;;  %v2883_v28 = vadd.f32 %v2882_v33, %v2881_v29  ;;  %v2880_v48 = vadd.f32 %v2879_v49, %v2878_v27  ;;  %v3514_v32 = vpop.eup %3513  ;;  %v3395_v41 = vld [vmem:[%s5398_s5 + $0x8] sm:$0xff]   ;;  %v3631_v29 = vmov 0.0  }
 0x445   :  { %v2870_v63 = vrot.slane %v2869_v0, 2  ;;  %2821 = vrot.lane.b32.xlu0 %v3510_v6, %s3630_s4  ;;  %3295 = vmatprep.subr.bf16.mxu1 %v3631_v29 }
 0x446   :  { %v2865_v21 = vrot.slane %v2864_v30, 1  ;;  %v2884_v22 = vrot.slane %v2883_v28, 2  ;;  %3517 = vtanh.f32 %v2880_v48  ;;  %3299 = vmatprep.mubr.msk.bf16.mxu1 %vm3632_vm7, %v3631_v29  ;;  %3296 = vmatpush3.bf16.msra.mxu1 %v3395_v41  ;;  %v3199_v48 = vmul.f32 -1.442695, %v5296_v25 }
 0x447   :  { %v2871_v1 = vadd.f32 %v2870_v63, %v2869_v0  ;;  %3297 = vmatprep.subr.bf16.mxu1 %v3631_v29  ;;  %v3198_v0 = vmul.f32 -1.442695, %v5282_v26  ;;  %v3197_v63 = vmul.f32 -1.442695, %v5300_v36  ;;  %v3202_v41 = vmul.f32 -1.442695, %v5317_v53 }
 0x448   :  { %v2866_v58 = vadd.f32 %v2865_v21, %v2864_v30  ;;  %v2885_v8 = vadd.f32 %v2884_v22, %v2883_v28  ;;  %v3201_v30 = vmul.f32 -1.442695, %v5286_v54  ;;  %v3196_v28 = vmul.f32 -1.442695, %v5290_v56 }
 0x449   :  { %v2872_v59 = vrot.slane %v2871_v1, 1  ;;  %2825 = vrot.lane.b32.xlu0 %v3512_v34, %s3630_s4  ;;  %v3205_v53 = vmul.f32 -1.442695, %v5326_v18 }
 0x44a   :  { %3519 = vtanh.f32 %v2866_v58  ;;  %v2886_v35 = vrot.slane %v2885_v8, 1  ;;  %v2804_v14 = vpop.permute.xlu1 %2803  ;;  %3298 = vmatpush3.bf16.msra.mxu1 %v3396_v7 }
 0x44b   :  { %v2873_v20 = vadd.f32 %v2872_v59, %v2871_v1  ;;  %v2847_v13 = vmul.f32 %v3514_v32, %v2804_v14 }
 0x44c   :  { %v2887_v17 = vadd.f32 %v2886_v35, %v2885_v8 }
 0x44d   :  { %3521 = vtanh.f32 %v2873_v20  ;;  %v2888_v38 = vsel %vm2859_vm3, %v2847_v13, 0.0 }
 0x44e   :  { %3523 = vtanh.f32 %v2887_v17  ;;  %v2889_v31 = vrot.slane %v2888_v38, 4  ;;  %v3516_v47 = vpop.eup %3515  ;;  %v2806_v50 = vpop.permute.xlu1 %2805 }
 0x44f   :  { %v2848_v12 = vmul.f32 %v3516_v47, %v2806_v50 }
 0x450   :  { %v2890_v10 = vadd.f32 %v2889_v31, %v2888_v38 }
 0x451   :  { %v2895_v3 = vsel %vm2859_vm3, %v2848_v12, 0.0 }
 0x452   :  { %v2891_v51 = vrot.slane %v2890_v10, 2  ;;  %v2896_v5 = vrot.slane %v2895_v3, 4 }
 0x453   :  { %v3518_v24 = vpop.eup %3517 }
 0x454   :  { %v2892_v55 = vadd.f32 %v2891_v51, %v2890_v10  ;;  %v2897_v19 = vadd.f32 %v2896_v5, %v2895_v3  ;;  %v2990_v45 = vpack.c.bf16 %v3518_v24, %v3518_v24 }
 0x456   :  { %v2893_v9 = vrot.slane %v2892_v55, 1  ;;  %v2898_v39 = vrot.slane %v2897_v19, 2  ;;  %v3030_v52 = vunpack.c.l.b16 %v2990_v45  ;;  %v3204_v45 = vmul.f32 -1.442695, %v5312_v60 }
 0x457   :  { %v3520_v46 = vpop.eup %3519 }
 0x458   :  { %v2988_v2 = vpack.c.bf16 %v3520_v46, %v3520_v46  ;;  %v2894_v37 = vadd.f32 %v2893_v9, %v2892_v55  ;;  %v2899_v44 = vadd.f32 %v2898_v39, %v2897_v19 }
 0x45a   :  { %v3522_v15 = vpop.eup %3521  ;;  %v3028_v57 = vunpack.c.l.b16 %v2988_v2  ;;  %3525 = vtanh.f32 %v2894_v37  ;;  %v2900_v11 = vrot.slane %v2899_v44, 1 }
 0x45b   :  { %v3524_v16 = vpop.eup %3523  ;;  %v2989_v23 = vpack.c.bf16 %v3522_v15, %v3522_v15  ;;  %3527 = vpow2.f32 %v3200_v62 }
 0x45c   :  { %v2991_v40 = vpack.c.bf16 %v3524_v16, %v3524_v16  ;;  %v2901_v33 = vadd.f32 %v2900_v11, %v2899_v44 }
 0x45d   :  { %v3029_v27 = vunpack.c.l.b16 %v2989_v23 }
 0x45e   :  { %v3031_v61 = vunpack.c.l.b16 %v2991_v40  ;;  %3529 = vtanh.f32 %v2901_v33 }
 0x45f   :  { %v3045_v49 = vsel %vm3044_vm4, %v3029_v27, %v3028_v57  ;;  %3531 = vpow2.f32 %v3198_v0 }
 0x460   :  { %v3047_v43 = vsel %vm3046_vm5, %v3030_v52, %v3045_v49  ;;  %3533 = vpow2.f32 %v3201_v30 }
 0x461   :  { %v3049_v6 = vsel %vm3048_vm6, %v3031_v61, %v3047_v43  ;;  %3535 = vpow2.f32 %v3196_v28 }
 0x462   :  { %3537 = vpow2.f32 %v3199_v48 }
 0x463   :  { %3539 = vpow2.f32 %v3197_v63 }
 0x467   :  { %v3526_v21 = vpop.eup %3525 }
 0x468   :  { %v2992_v22 = vpack.c.bf16 %v3526_v21, %v3526_v21  ;;  %v3528_v1 = vpop.eup %3527  ;;  %v3203_v21 = vmul.f32 -1.442695, %v5323_v42 }
 0x469   :  { %v2725_v8 = vadd.f32 1.0, %v3528_v1 }
 0x46a   :  { %v3032_v26 = vunpack.c.l.b16 %v2992_v22 }
 0x46b   :  { %v3530_v34 = vpop.eup %3529  ;;  %3541 = vrcp.f32 %v2725_v8 }
 0x46c   :  { %v3051_v54 = vsel %vm3050_vm8, %v3032_v26, %v3049_v6  ;;  %v2993_v58 = vpack.c.bf16 %v3530_v34, %v3530_v34  ;;  %v3532_v56 = vpop.eup %3531 }
 0x46d   :  { %v3534_v35 = vpop.eup %3533  ;;  %v2723_v36 = vadd.f32 1.0, %v3532_v56 }
 0x46e   :  { %v3033_v59 = vunpack.c.l.b16 %v2993_v58  ;;  %v3536_v20 = vpop.eup %3535  ;;  %v2726_v17 = vadd.f32 1.0, %v3534_v35 }
 0x46f   :  { %v3538_v32 = vpop.eup %3537  ;;  %v2721_v14 = vadd.f32 1.0, %v3536_v20  ;;  %3543 = vrcp.f32 %v2723_v36 }
 0x470   :  { %v5357_v25 = vsel %vm3052_vm9, %v3033_v59, %v3051_v54  ;;  %v3540_v13 = vpop.eup %3539  ;;  %3545 = vrcp.f32 %v2726_v17  ;;  %v2724_v38 = vadd.f32 1.0, %v3538_v32 }
 0x471   :  { %3547 = vrcp.f32 %v2721_v14  ;;  %v2722_v31 = vadd.f32 1.0, %v3540_v13 }
 0x472   :  { %3549 = vrcp.f32 %v2724_v38 }
 0x473   :  { %3551 = vrcp.f32 %v2722_v31 }
 0x474   :  { %3553 = vpow2.f32 %v3204_v45 }
 0x475   :  { %3555 = vpow2.f32 %v3202_v41 }
 0x476   :  { %3557 = vpow2.f32 %v3205_v53 }
 0x477   :  { %3559 = vpow2.f32 %v3203_v21 }
 0x478   :  { %v3542_v47 = vpop.eup %3541 }
 0x47c   :  { %v3544_v12 = vpop.eup %3543 }
 0x47d   :  { %v3546_v46 = vpop.eup %3545 }
 0x47e   :  { %v3548_v15 = vpop.eup %3547 }
 0x47f   :  { %v3550_v57 = vpop.eup %3549 }
 0x480   :  { %v3552_v29 = vpop.eup %3551 }
 0x483   :  { %v2816_v50 = vpop.permute.xlu0 %2815 }
 0x484   :  { %v2853_v10 = vmul.f32 %v3542_v47, %v2816_v50  ;;  %v3554_v47 = vpop.eup %3553 }
 0x485   :  { %v2812_v3 = vpop.permute.xlu1 %2811 }
 0x486   :  { %v2930_v51 = vsel %vm2859_vm3, %v2853_v10, 0.0  ;;  %v2851_v5 = vmul.f32 %v3544_v12, %v2812_v3  ;;  %v3556_v12 = vpop.eup %3555 }
 0x487   :  { %v2931_v24 = vrot.slane %v2930_v51, 4  ;;  %v2818_v55 = vpop.permute.xlu0 %2817  ;;  %v3558_v3 = vpop.eup %3557 }
 0x488   :  { %v2916_v19 = vsel %vm2859_vm3, %v2851_v5, 0.0  ;;  %v2854_v9 = vmul.f32 %v3546_v46, %v2818_v55  ;;  %v3560_v5 = vpop.eup %3559 }
 0x489   :  { %v2932_v2 = vadd.f32 %v2931_v24, %v2930_v51  ;;  %v2917_v39 = vrot.slane %v2916_v19, 4  ;;  %v2808_v16 = vpop.permute.xlu1 %2807  ;;  %v2729_v51 = vadd.f32 1.0, %v3554_v47  ;;  %v2727_v24 = vadd.f32 1.0, %v3556_v12 }
 0x48a   :  { %v2937_v37 = vsel %vm2859_vm3, %v2854_v9, 0.0  ;;  %v2849_v62 = vmul.f32 %v3548_v15, %v2808_v16  ;;  %v2730_v16 = vadd.f32 1.0, %v3558_v3 }
 0x48b   :  { %v2933_v23 = vrot.slane %v2932_v2, 2  ;;  %v2918_v40 = vadd.f32 %v2917_v39, %v2916_v19  ;;  %v2938_v44 = vrot.slane %v2937_v37, 4  ;;  %v2814_v27 = vpop.permute.xlu0 %2813  ;;  %v2728_v19 = vadd.f32 1.0, %v3560_v5 }
 0x48c   :  { %v2902_v61 = vsel %vm2859_vm3, %v2849_v62, 0.0  ;;  %v2852_v11 = vmul.f32 %v3550_v57, %v2814_v27 }
 0x48d   :  { %v2934_v52 = vadd.f32 %v2933_v23, %v2932_v2  ;;  %v2919_v49 = vrot.slane %v2918_v40, 2  ;;  %v2939_v60 = vadd.f32 %v2938_v44, %v2937_v37  ;;  %v2903_v7 = vrot.slane %v2902_v61, 4  ;;  %v2810_v43 = vpop.permute.xlu1 %2809 }
 0x48e   :  { %v2923_v0 = vsel %vm2859_vm3, %v2852_v11, 0.0  ;;  %v2850_v6 = vmul.f32 %v3552_v29, %v2810_v43 }
 0x48f   :  { %v2935_v33 = vrot.slane %v2934_v52, 1  ;;  %v2920_v30 = vadd.f32 %v2919_v49, %v2918_v40  ;;  %v2940_v28 = vrot.slane %v2939_v60, 2  ;;  %v2904_v48 = vadd.f32 %v2903_v7, %v2902_v61 }
 0x490   :  { %v2924_v63 = vrot.slane %v2923_v0, 4  ;;  %v2909_v22 = vsel %vm2859_vm3, %v2850_v6, 0.0 }
 0x491   :  { %v2921_v26 = vrot.slane %v2920_v30, 1  ;;  %v2941_v1 = vadd.f32 %v2940_v28, %v2939_v60  ;;  %v2905_v34 = vrot.slane %v2904_v48, 2  ;;  %v2936_v58 = vadd.f32 %v2935_v33, %v2934_v52 }
 0x492   :  { %v2925_v54 = vadd.f32 %v2924_v63, %v2923_v0  ;;  %v2910_v56 = vrot.slane %v2909_v22, 4 }
 0x493   :  { %v2922_v8 = vadd.f32 %v2921_v26, %v2920_v30  ;;  %v2942_v59 = vrot.slane %v2941_v1, 1  ;;  %v2906_v35 = vadd.f32 %v2905_v34, %v2904_v48  ;;  %3561 = vtanh.f32 %v2936_v58 }
 0x494   :  { %v2926_v36 = vrot.slane %v2925_v54, 2  ;;  %v2911_v20 = vadd.f32 %v2910_v56, %v2909_v22 }
 0x495   :  { %v2943_v17 = vadd.f32 %v2942_v59, %v2941_v1  ;;  %v2907_v32 = vrot.slane %v2906_v35, 1  ;;  %3563 = vtanh.f32 %v2922_v8 }
 0x496   :  { %v2927_v18 = vadd.f32 %v2926_v36, %v2925_v54  ;;  %v2912_v42 = vrot.slane %v2911_v20, 2 }
 0x497   :  { %v2908_v14 = vadd.f32 %v2907_v32, %v2906_v35  ;;  %3565 = vtanh.f32 %v2943_v17 }
 0x498   :  { %v2928_v13 = vrot.slane %v2927_v18, 1  ;;  %v2913_v38 = vadd.f32 %v2912_v42, %v2911_v20 }
 0x499   :  { %3567 = vtanh.f32 %v2908_v14 }
 0x49a   :  { %v2929_v31 = vadd.f32 %v2928_v13, %v2927_v18  ;;  %v2914_v50 = vrot.slane %v2913_v38, 1 }
 0x49c   :  { %3569 = vtanh.f32 %v2929_v31  ;;  %v2915_v10 = vadd.f32 %v2914_v50, %v2913_v38 }
 0x49e   :  { %3571 = vtanh.f32 %v2915_v10 }
 0x49f   :  { %3573 = vrcp.f32 %v2729_v51 }
 0x4a0   :  { %v3562_v46 = vpop.eup %3561  ;;  %3575 = vrcp.f32 %v2727_v24 }
 0x4a1   :  { %v2998_v23 = vpack.c.bf16 %v3562_v46, %v3562_v46  ;;  %3577 = vrcp.f32 %v2728_v19 }
 0x4a2   :  { %v3564_v55 = vpop.eup %3563  ;;  %3579 = vrcp.f32 %v2730_v16 }
 0x4a3   :  { %v2996_v15 = vpack.c.bf16 %v3564_v55, %v3564_v55  ;;  %v3038_v52 = vunpack.c.l.b16 %v2998_v23 }
 0x4a4   :  { %v3566_v2 = vpop.eup %3565 }
 0x4a5   :  { %v2999_v37 = vpack.c.bf16 %v3566_v2, %v3566_v2  ;;  %v3036_v44 = vunpack.c.l.b16 %v2996_v15 }
 0x4a6   :  { %v3568_v9 = vpop.eup %3567 }
 0x4a7   :  { %v2994_v45 = vpack.c.bf16 %v3568_v9, %v3568_v9  ;;  %v3039_v11 = vunpack.c.l.b16 %v2999_v37 }
 0x4a9   :  { %v3570_v39 = vpop.eup %3569  ;;  %v3034_v62 = vunpack.c.l.b16 %v2994_v45 }
 0x4aa   :  { %v2997_v57 = vpack.c.bf16 %v3570_v39, %v3570_v39 }
 0x4ab   :  { %v3572_v40 = vpop.eup %3571  ;;  %v3055_v27 = vsel %vm3054_vm10, %v3034_v62, %v5357_v25 }
 0x4ac   :  { %v3037_v41 = vunpack.c.l.b16 %v2997_v57  ;;  %v2995_v61 = vpack.c.bf16 %v3572_v40, %v3572_v40  ;;  %v3574_v49 = vpop.eup %3573 }
 0x4ad   :  { %v3576_v30 = vpop.eup %3575 }
 0x4ae   :  { %v3058_v29 = vsel %vm3044_vm4, %v3037_v41, %v3036_v44  ;;  %v3035_v7 = vunpack.c.l.b16 %v2995_v61  ;;  %v3578_v22 = vpop.eup %3577 }
 0x4af   :  { %v3059_v60 = vsel %vm3046_vm5, %v3038_v52, %v3058_v29  ;;  %v2824_v43 = vpop.permute.xlu0 %2823  ;;  %v3580_v59 = vpop.eup %3579 }
 0x4b0   :  { %v2857_v33 = vmul.f32 %v3574_v49, %v2824_v43  ;;  %v3060_v0 = vsel %vm3048_vm6, %v3039_v11, %v3059_v60  ;;  %v3057_v6 = vsel %vm3056_vm11, %v3035_v7, %v3055_v27  ;;  %v3598_v11 = vld [vmem:[%s5399_s6] sm:$0xf]  ;;  %s3633_s6 = smov [#allocation2]  }
 0x4b1   :  { %v3011_v29 = vrot.slane %v3598_v11, %v4134_v4  ;;  %s3146_s12 = sshll.u32 %s3633_s6, 4  ;;  %s3147_s12 = int_to_ptr.vmem [resolvable:$true] %s3146_s12 }
 0x4b2   :  { %v2958_v25 = vsel %vm2859_vm3, %v2857_v33, 0.0  ;;  %s3599_s13 = scalar_lea.vmem %s3147_s12, 256  ;;  %p3604_p1 = scmp.lt.s32.totalorder %s3147_s12, %s3147_s12 }
 0x4b3   :  { %v2959_v28 = vrot.slane %v2958_v25, 4  ;;  %v2820_v48 = vpop.permute.xlu0 %2819  ;;  %p3600_p0 = scmp.ne.s32.totalorder %s3147_s12, %s3599_s13  ;;  %p3605_p2 = scmp.lt.s32.totalorder %s3599_s13, %s3599_s13 }
 0x4b4   :  { %v2855_v63 = vmul.f32 %v3576_v30, %v2820_v48 }
 0x4b5   :  { %v2960_v53 = vadd.f32 %v2959_v28, %v2958_v25  ;;  %p3606_p3 = por %p3605_p2, %p3604_p1 }
 0x4b6   :  { %v2944_v21 = vsel %vm2859_vm3, %v2855_v63, 0.0 }
 0x4b7   :  { %v2961_v26 = vrot.slane %v2960_v53, 2  ;;  %v2945_v1 = vrot.slane %v2944_v21, 4  ;;  %v2822_v34 = vpop.permute.xlu0 %2821  ;;  %p3607_p4 = pnand %p3606_p3, %p3600_p0 }
 0x4b8   :  { %v2856_v54 = vmul.f32 %v3578_v22, %v2822_v34 }
 0x4b9   :  { %v2962_v58 = vadd.f32 %v2961_v26, %v2960_v53  ;;  %v2946_v56 = vadd.f32 %v2945_v1, %v2944_v21 }
 0x4ba   :  { %v2951_v8 = vsel %vm2859_vm3, %v2856_v54, 0.0 }
 0x4bb   :  { %v2947_v35 = vrot.slane %v2946_v56, 2  ;;  %v2952_v36 = vrot.slane %v2951_v8, 4  ;;  %v2826_v20 = vpop.permute.xlu0 %2825  ;;  %v2963_v17 = vrot.slane %v2962_v58, 1 }
 0x4bc   :  { %v2858_v32 = vmul.f32 %v3580_v59, %v2826_v20 }
 0x4bd   :  { %v2948_v18 = vadd.f32 %v2947_v35, %v2946_v56  ;;  %v2953_v42 = vadd.f32 %v2952_v36, %v2951_v8  ;;  %v2964_v47 = vadd.f32 %v2963_v17, %v2962_v58 }
 0x4be   :  { %v2965_v14 = vsel %vm2859_vm3, %v2858_v32, 0.0 }
 0x4bf   :  { %v2949_v13 = vrot.slane %v2948_v18, 1  ;;  %v2954_v38 = vrot.slane %v2953_v42, 2  ;;  %v2966_v31 = vrot.slane %v2965_v14, 4 }
 0x4c1   :  { %v2950_v50 = vadd.f32 %v2949_v13, %v2948_v18  ;;  %v2955_v10 = vadd.f32 %v2954_v38, %v2953_v42  ;;  %v2967_v12 = vadd.f32 %v2966_v31, %v2965_v14 }
 0x4c3   :  { %3581 = vtanh.f32 %v2950_v50  ;;  %v2956_v51 = vrot.slane %v2955_v10, 1  ;;  %v2968_v3 = vrot.slane %v2967_v12, 2 }
 0x4c4   :  { %3583 = vtanh.f32 %v2964_v47 }
 0x4c5   :  { %v2957_v24 = vadd.f32 %v2956_v51, %v2955_v10  ;;  %v2969_v5 = vadd.f32 %v2968_v3, %v2967_v12 }
 0x4c7   :  { %3585 = vtanh.f32 %v2957_v24  ;;  %v2970_v46 = vrot.slane %v2969_v5, 1 }
 0x4c9   :  { %v2971_v55 = vadd.f32 %v2970_v46, %v2969_v5 }
 0x4cb   :  { %3587 = vtanh.f32 %v2971_v55 }
 0x4d0   :  { %v3582_v2 = vpop.eup %3581 }
 0x4d1   :  { %v3584_v19 = vpop.eup %3583  ;;  %v3000_v9 = vpack.c.bf16 %v3582_v2, %v3582_v2 }
 0x4d2   :  { %v3002_v39 = vpack.c.bf16 %v3584_v19, %v3584_v19 }
 0x4d3   :  { %v3040_v15 = vunpack.c.l.b16 %v3000_v9 }
 0x4d4   :  { %v3586_v45 = vpop.eup %3585  ;;  %v3042_v57 = vunpack.c.l.b16 %v3002_v39 }
 0x4d5   :  { %v3061_v16 = vsel %vm3050_vm8, %v3040_v15, %v3060_v0  ;;  %v3001_v23 = vpack.c.bf16 %v3586_v45, %v3586_v45 }
 0x4d7   :  { %v3041_v37 = vunpack.c.l.b16 %v3001_v23 }
 0x4d8   :  { %v3588_v62 = vpop.eup %3587 }
 0x4d9   :  { %v3062_v40 = vsel %vm3052_vm9, %v3041_v37, %v3061_v16  ;;  %v3003_v44 = vpack.c.bf16 %v3588_v62, %v3588_v62 }
 0x4da   :  { %v3063_v27 = vsel %vm3054_vm10, %v3042_v57, %v3062_v40 }
 0x4db   :  { %v3043_v41 = vunpack.c.l.b16 %v3003_v44 }
 0x4dd   :  { %v3064_v52 = vsel %vm3056_vm11, %v3043_v41, %v3063_v27 }
 0x4de   :  { %v3065_v61 = vpack.c.b16 %v3064_v52, %v3057_v6 }
 0x4e0   :  { %3300 = vmatmul.mubr.msk.bf16.vlgmr.msra.gmra.mxu1 %vm2859_vm3, %v3065_v61 }
 0x5a0   :  { %v3115_v49 = vpop.f32.mrf.mxu1 }
 0x5a1   :  { %v3116_v60 = vadd.f32 %v3115_v49, %v3011_v29 }
 0x5a2   :  { %v3301_v7 = vpop.f32.mrf.mxu1 }
 0x5a3   :  { %v3209_v43 = vmul.f32 -1.442695, %v3116_v60 }
 0x5a4   :  { %v3118_v33 = vpop.f32.mrf.mxu1 }
 0x5a5   :  { %3589 = vpow2.f32 %v3209_v43  ;;  %v3119_v0 = vadd.f32 %v3118_v33, %v3011_v29 }
 0x5a6   :  { %v3302_v25 = vpop.f32.mrf.mxu1 }
 0x5a7   :  { %v3210_v30 = vmul.f32 -1.442695, %v3119_v0 }
 0x5a9   :  { %3591 = vpow2.f32 %v3210_v30 }
 0x5b2   :  { %v3590_v28 = vpop.eup %3589 }
 0x5b3   :  { %v3128_v6 = vadd.f32 1.0, %v3590_v28 }
 0x5b5   :  { %3593 = vrcp.f32 %v3128_v6 }
 0x5b6   :  { %v3592_v48 = vpop.eup %3591 }
 0x5b7   :  { %v3129_v63 = vadd.f32 1.0, %v3592_v48 }
 0x5b9   :  { %3595 = vrcp.f32 %v3129_v63 }
 0x5c2   :  { %v3594_v53 = vpop.eup %3593 }
 0x5c3   :  { %v3134_v4 = vsel %vm1608_vm2, %v3116_v60, %v3594_v53 }
 0x5c4   :  { %v3137_v21 = vsel %vm3136_vm12, %v3134_v4, 0.0 }
 0x5c5   :  { %3139 = vst [vmem:[#allocation2] sm:$0xff] %v3137_v21 }
 0x5c6   :  { %v3596_v22 = vpop.eup %3595 }
 0x5c7   :  { %v3135_v26 = vsel %vm1608_vm2, %v3119_v0, %v3596_v22 }
 0x5c8   :  { %v3138_v1 = vsel %vm3136_vm12, %v3135_v26, 0.0 }
 0x5c9   :  { %3140 = vst [vmem:[#allocation2 + $0x8] sm:$0xff] %v3138_v1 }
 0x5ca   :  { %3610 = shalt.err (!%p3607_p4)
}
 0x5cb   :  { %s3634_s15 = smov 128   ;;  %s3635_s16 = smov 8  }
 0x5cc   :  { %3152 = dma.vmem_to_hbm [thread:$0]  %s3147_s12, 256, %s5400_s7, [#allocation3], %s3634_s15, %s3634_s15, %s3635_s16  }
 0x5cd   :  { %3619 = dma.done.wait [#allocation3], 256  }
 0x5ce   :  { %3620 = vsyncadd [#allocation3], 4294967040 }
 0x5cf   :  { %3156 = vsyncpa [#allocation3], 1 }

</bundles_post_ra>
